<compile_context>
chip_gen: v5e
topology: v5e:2x2
jax: 0.10.0
libtpu: 0.0.40
codegen_flags: <defaults>
</compile_context>

<pallas_src>
import numpy as np

import jax
import jax.numpy as jnp
from jax.experimental import pallas as pl
from jax.experimental.pallas import tpu as pltpu


# ---------------------------------------------------------------------------
# Spatial configuration (input 16x16, three stride-2 encoder stages)
# ---------------------------------------------------------------------------
S_IN, S1, S2, S3 = 16, 8, 4, 2          # spatial sizes: input, f1, f2, f3


def _padded(s):                          # positions of a zero-padded flat map
    return (s + 2) * (s + 2)


def _ceil8(x):
    return ((x + 7) // 8) * 8


# ---------------------------------------------------------------------------
# Conv layer table and packed-slab layout (weights / biases)
# ---------------------------------------------------------------------------
def _layer_defs(in_ch, out_ch):
    """(name, cout_padded, cin_for_matmul, cin_real, ksize) for every conv.

    Channel plan (synthetic encoder stand-in, see TODO in init_params):
    encoder 8/16/32, UpCat0 -> 32, UpCat1 -> 16, head -> out_ch + 1.  Each
    block's rows are padded to a multiple of 8 so every slab slice starts on an
    f32 sublane-tile boundary (head channels are zero-padded, dropped in XLA).
    """
    cin_pad = _ceil8(in_ch)
    c_head = out_ch + 1
    return [
        ("enc1", 8, cin_pad, in_ch, 3),
        ("enc2", 16, 8, 8, 3),
        ("enc3", 32, 16, 16, 3),
        ("pre0", 16, 32, 32, 1),
        ("c00", 32, 32, 32, 3),
        ("c01", 32, 32, 32, 3),
        ("pre1", 16, 32, 32, 1),
        ("c10", 16, 24, 24, 3),
        ("c11", 16, 16, 16, 3),
        ("head", _ceil8(c_head), 16, 16, 3),
    ]


def _weight_layout(in_ch, out_ch):
    """Row offsets of every conv inside the packed weight / bias slabs."""
    layout, off, kmax = {}, 0, 0
    for name, cout, cin_w, _, ks in _layer_defs(in_ch, out_ch):
        kk = ks * ks * cin_w
        layout[name] = (off, cout, kk)
        off += cout
        kmax = max(kmax, kk)
    return layout, off, kmax


# ---------------------------------------------------------------------------
# 0/1 structure matrices + interior masks (numpy, data independent)
# ---------------------------------------------------------------------------
def _down_np(s_in, s_out):
    """Stride-2 position selection between padded flat maps (per image):
    out (i+1, j+1) <- in (2i+1, 2j+1); output padding-ring rows stay all-zero."""
    spi, spo = s_in + 2, s_out + 2
    d = np.zeros((spo * spo, spi * spi), np.float32)
    for i in range(s_out):
        for j in range(s_out):
            d[(i + 1) * spo + (j + 1), (2 * i + 1) * spi + (2 * j + 1)] = 1.0
    return d


def _up_np(s_lo, s_hi):
    """Nearest-neighbour 2x upsample between padded flat maps.  Output padding
    rows are all-zero and ONLY interior positions of the input are read."""
    spl, sph = s_lo + 2, s_hi + 2
    u = np.zeros((sph * sph, spl * spl), np.float32)
    for a in range(s_hi):
        for b in range(s_hi):
            u[(a + 1) * sph + (b + 1), (a // 2 + 1) * spl + (b // 2 + 1)] = 1.0
    return u


def _sel_np(s):
    """Select the s*s interior positions (row-major) of a padded flat map."""
    sp = s + 2
    m = np.zeros((s * s, sp * sp), np.float32)
    for i in range(s):
        for j in range(s):
            m[i * s + j, (i + 1) * sp + (j + 1)] = 1.0
    return m


def _mask_np(s):
    """(1, (s+2)^2) f32 mask: 1 on interior positions, 0 on the padding ring."""
    sp = s + 2
    m = np.zeros((sp, sp), np.float32)
    m[1:1 + s, 1:1 + s] = 1.0
    return m.reshape(1, sp * sp)


def _block_diag_T(m, batch):
    """Right-multiply form (X_new = X @ out), block-diagonal over the batch."""
    r, c = m.shape
    out = np.zeros((batch * c, batch * r), np.float32)
    for b in range(batch):
        out[b * c:(b + 1) * c, b * r:(b + 1) * r] = m.T
    return out


def _build_struct_slab(batch):
    """Pack all structure matrices + masks into ONE f32 slab (one DMA); every
    block starts on an 8-row boundary so in-kernel slices are tile aligned."""
    parts = [
        ("D1", _block_diag_T(_down_np(S_IN, S1), batch)),
        ("D2", _block_diag_T(_down_np(S1, S2), batch)),
        ("D3", _block_diag_T(_down_np(S2, S3), batch)),
        ("U0", _block_diag_T(_up_np(S3, S2), batch)),
        ("U1", _block_diag_T(_up_np(S2, S1), batch)),
        ("SEL", _block_diag_T(_sel_np(S1), batch)),
        ("M_S2", np.tile(_mask_np(S2), (1, batch))),
        ("M_S1", np.tile(_mask_np(S1), (1, batch))),
    ]
    cols = max(p.shape[1] for _, p in parts)
    offs, blocks, row = {}, [], 0
    for name, p in parts:
        r, c = p.shape
        rpad = _ceil8(r)
        offs[name] = (row, r, c)
        blk = np.zeros((rpad, cols), np.float32)
        blk[:r, :c] = p
        blocks.append(blk)
        row += rpad
    return np.concatenate(blocks, axis=0), offs


# ---------------------------------------------------------------------------
# The fused forward kernel (one grid step = one batch chunk)
# ---------------------------------------------------------------------------
def _make_kernel(wl, so):
    """wl: name -> (row_off, cout, K) in the weight/bias slabs.
    so: name -> (row_off, rows, cols) in the structure slab."""

    def _w(ref, name):                       # bf16 weight block for the MXU
        r0, co, kk = wl[name]
        return ref[r0:r0 + co, :kk].astype(jnp.bfloat16)

    def _bias(ref, name):                    # (Cout, 1) f32 bias block
        r0, co, _ = wl[name]
        return ref[r0:r0 + co, :]

    def _s(ref, name):                       # f32 structure / mask block
        r0, rr, cc = so[name]
        return ref[r0:r0 + rr, :cc]

    def _conv3x3(x, sp, w, b, *, relu, mask=None):
        """3x3 / stride-1 / pad-1 conv on a channels-in-sublanes slab.

        x : (Cin, M) f32, M = chunk * (sp*sp) flattened padded maps whose
            per-image padding-ring columns are exactly zero.
        w : (Cout, 9*Cin) bf16, tap-major columns, BN scale pre-folded.
        The 9 taps are static lane-shifted slices of the zero-extended slab,
        concatenated along the 8-row-aligned sublane axis -> one MXU matmul
        with K = 9*Cin.  Padding-ring columns of the result are garbage
        (partial windows / cross-image taps) and are masked or never read.
        """
        cin, m = x.shape
        e = sp + 1                                       # max |column shift|
        z = jnp.zeros((cin, e), jnp.float32)
        ext = jnp.concatenate([z, x, z], axis=1)         # (Cin, M + 2e)
        taps = []
        for ky in range(3):
            for kx in range(3):
                s0 = e + (ky - 1) * sp + (kx - 1)
                taps.append(ext[:, s0:s0 + m])           # static lane slice
        lhs = jnp.concatenate(taps, axis=0).astype(jnp.bfloat16)   # (9Cin, M)
        out = jnp.dot(w, lhs, preferred_element_type=jnp.float32) + b
        if relu:
            out = jnp.maximum(out, 0.0)
        if mask is not None:
            out = out * mask                             # re-zero padding ring
        return out

    def _conv1x1(x, w, b):
        return jnp.dot(w, x.astype(jnp.bfloat16),
                       preferred_element_type=jnp.float32) + b

    def _sel(x, s):
        # Exact-f32 0/1 selection matmul (stride-2 select / nearest upsample /
        # interior gather): both operands stay f32 so selected activations are
        # not rounded to bf16.
        return jnp.dot(x, s, preferred_element_type=jnp.float32)

    def kernel(x_ref, w_ref, b_ref, s_ref, o_ref):
        x = x_ref[0]                                     # (Cin_pad, c*324) f32
        m_s2 = _s(s_ref, "M_S2")                         # (1, c*36)
        m_s1 = _s(s_ref, "M_S1")                         # (1, c*100)

        # --- synthetic encoder: stride-2 conv == stride-1 conv (one matmul)
        #     followed by an exact even-position selection (D*) --------------
        f1 = _sel(_conv3x3(x, S_IN + 2, _w(w_ref, "enc1"), _bias(b_ref, "enc1"),
                           relu=True), _s(s_ref, "D1"))            # (8,  c*100)
        f2 = _sel(_conv3x3(f1, S1 + 2, _w(w_ref, "enc2"), _bias(b_ref, "enc2"),
                           relu=True), _s(s_ref, "D2"))            # (16, c*36)
        f3 = _sel(_conv3x3(f2, S2 + 2, _w(w_ref, "enc3"), _bias(b_ref, "enc3"),
                           relu=True), _s(s_ref, "D3"))            # (32, c*16)

        # --- UpCat 0: x = f3, skip = f2 (1x1 pre-conv -> nearest x2 -> cat ->
        #     two 3x3 conv+BN+ReLU).  NOTE: the 1x1 pre-conv bias also lands on
        #     the zero padding ring; this is safe ONLY because U0/U1 read
        #     interior columns exclusively (all-zero rows elsewhere). ---------
        up = _sel(_conv1x1(f3, _w(w_ref, "pre0"), _bias(b_ref, "pre0")),
                  _s(s_ref, "U0"))                                 # (16, c*36)
        cat = jnp.concatenate([f2, up], axis=0)          # [skip, up], sublanes
        h = _conv3x3(cat, S2 + 2, _w(w_ref, "c00"), _bias(b_ref, "c00"),
                     relu=True, mask=m_s2)
        b0 = _conv3x3(h, S2 + 2, _w(w_ref, "c01"), _bias(b_ref, "c01"),
                      relu=True, mask=m_s2)                        # (32, c*36)

        # --- UpCat 1: x = b0, skip = f1 --------------------------------------
        up = _sel(_conv1x1(b0, _w(w_ref, "pre1"), _bias(b_ref, "pre1")),
                  _s(s_ref, "U1"))                                 # (16, c*100)
        cat = jnp.concatenate([f1, up], axis=0)                    # (24, c*100)
        h = _conv3x3(cat, S1 + 2, _w(w_ref, "c10"), _bias(b_ref, "c10"),
                     relu=True, mask=m_s1)
        b1 = _conv3x3(h, S1 + 2, _w(w_ref, "c11"), _bias(b_ref, "c11"),
                      relu=True, mask=m_s1)                        # (16, c*100)

        # --- segmentation head whose output TestNet returns; the interior
        #     gather makes the store lane-dense: (8, chunk*64) f32 ------------
        logits = _conv3x3(b1, S1 + 2, _w(w_ref, "head"), _bias(b_ref, "head"),
                          relu=False)
        o_ref[0] = _sel(logits, _s(s_ref, "SEL"))

    return kernel


# ---------------------------------------------------------------------------
# Deterministic parameter construction (synthetic; no checkpoint load)
# ---------------------------------------------------------------------------
def init_params(key, in_ch, out_ch):
    """All conv weights go into ONE (rows, K_max) f32 slab with tap-major
    columns and the eval-mode BatchNorm scale folded in (f32 storage keeps
    every block 8-row aligned; the kernel casts blocks to bf16 at the MXU).
    All biases (with the BN shift folded in) go into one (rows, 1) f32 slab."""
    defs = _layer_defs(in_ch, out_ch)
    layout, rows, kmax = _weight_layout(in_ch, out_ch)
    c_head = out_ch + 1

    def nk(i):
        return jax.random.fold_in(key, i)

    def conv_w(k, ks, cin, cout):
        fan_in = ks * ks * cin
        return jax.random.normal(k, (ks, ks, cin, cout), jnp.float32) / np.sqrt(
            float(fan_in))

    def plain_bias(k, c):                # plain conv bias (scale = 1)
        return jnp.ones((c,), jnp.float32), 0.1 * jax.random.normal(
            k, (c,), jnp.float32)

    def bn_fold(k, c, eps=1e-3):         # eval-mode BatchNorm -> (scale, shift)
        k1, k2, k3, k4 = jax.random.split(k, 4)
        gamma = 1.0 + 0.1 * jax.random.normal(k1, (c,), jnp.float32)
        beta = 0.1 * jax.random.normal(k2, (c,), jnp.float32)
        mean = 0.1 * jax.random.normal(k3, (c,), jnp.float32)
        var = 1.0 + 0.1 * jax.random.uniform(k4, (c,), jnp.float32)
        scale = gamma / jnp.sqrt(var + eps)
        return scale, beta - mean * scale

    bn_layers = {"c00", "c01", "c10", "c11"}   # decoder convs: conv+BN+ReLU
    w_slab = jnp.zeros((rows, kmax), jnp.float32)
    b_slab = jnp.zeros((rows, 1), jnp.float32)

    # TODO(synk): FLEXUNET_BACKBONE (efficientnet/resnet) is an external
    # registry; the encoder below is a synthetic stand-in with three stride-2
    # 3x3 conv+ReLU stages of 8/16/32 channels.
    for idx, (name, cout_pad, cin_w, cin_real, ks) in enumerate(defs):
        cout_real = c_head if name == "head" else cout_pad
        w = conv_w(nk(2 * idx), ks, cin_real, cout_real)
        scale, bias = (bn_fold(nk(2 * idx + 1), cout_real) if name in bn_layers
                       else plain_bias(nk(2 * idx + 1), cout_real))
        w = w * scale                                         # fold BN scale
        w = jnp.pad(w, ((0, 0), (0, 0), (0, cin_w - cin_real),
                        (0, cout_pad - cout_real)))
        bias = jnp.pad(bias, ((0, cout_pad - cout_real),))
        wf = jnp.transpose(w, (3, 0, 1, 2)).reshape(cout_pad, ks * ks * cin_w)
        off, _, kk = layout[name]
        w_slab = w_slab.at[off:off + cout_pad, :kk].set(wf)
        b_slab = b_slab.at[off:off + cout_pad, 0].set(bias)

    return {"w_slab": w_slab, "b_slab": b_slab, "meta": (in_ch, out_ch)}


# ---------------------------------------------------------------------------
# Forward builder: one fused pallas_call; batch folded into the matmul lanes
# ---------------------------------------------------------------------------
def _make_forward(batch, in_ch, out_ch, grid_splits=1):
    """grid_splits: 1 on v5e/v6e (grid is a serial loop on one TensorCore, so a
    single step minimises overhead); 2 on v7x so both TensorCores get half the
    batch (dimension_semantics=("parallel",))."""
    assert batch % grid_splits == 0
    chunk = batch // grid_splits

    wl, w_rows, kmax = _weight_layout(in_ch, out_ch)
    s_slab_np, so = _build_struct_slab(chunk)
    s_slab = jnp.asarray(s_slab_np)
    kernel = _make_kernel(wl, so)

    cin_pad = _ceil8(in_ch)
    c_head = out_ch + 1
    c_head_pad = _ceil8(c_head)
    m_img = _padded(S_IN)                      # 324
    m_in = chunk * m_img
    m_out = chunk * S1 * S1

    flops = 7_000_000 * batch                  # ~= real matmul flops (advisory)
    bytes_acc = int(s_slab_np.nbytes + w_rows * (kmax + 1) * 4
                    + batch * (cin_pad * m_img + c_head_pad * S1 * S1) * 4)

    @jax.jit
    def fwd(x_nchw, w_slab, b_slab):
        _, cin, _, _ = x_nchw.shape
        # NCHW -> channels-in-sublanes / (batch*padded-spatial)-in-lanes slabs,
        # split into `grid_splits` chunks (only HBM-side layout work).
        xp = jnp.pad(x_nchw, ((0, 0), (0, cin_pad - cin), (1, 1), (1, 1)))
        xs = xp.transpose(1, 0, 2, 3).reshape(cin_pad, grid_splits, m_in)
        xs = xs.transpose(1, 0, 2)             # (G, Cin_pad, chunk*324)

        out = pl.pallas_call(
            kernel,
            out_shape=jax.ShapeDtypeStruct(
                (grid_splits, c_head_pad, m_out), jnp.float32),
            grid=(grid_splits,),
            in_specs=[
                pl.BlockSpec((1, cin_pad, m_in), lambda i: (i, 0, 0)),
                pl.BlockSpec((w_rows, kmax), lambda i: (0, 0)),
                pl.BlockSpec((w_rows, 1), lambda i: (0, 0)),
                pl.BlockSpec(s_slab.shape, lambda i: (0, 0)),
            ],
            out_specs=pl.BlockSpec((1, c_head_pad, m_out), lambda i: (i, 0, 0)),
            compiler_params=pltpu.CompilerParams(
                dimension_semantics=("parallel",)),
            cost_estimate=pl.CostEstimate(
                flops=flops, transcendentals=0, bytes_accessed=bytes_acc),
        )(xs, w_slab, b_slab, s_slab)

        # (G, c_head_pad, chunk*64) -> (N, out_ch + 1, 8, 8)
        out = out.transpose(1, 0, 2).reshape(c_head_pad, batch, S1, S1)
        return out[:c_head].transpose(1, 0, 2, 3)

    return fwd


_FWD_CACHE = {}


def testnet_forward(params, x_nchw):
    n, cin, h, w = x_nchw.shape
    in_ch, out_ch = params["meta"]
    assert cin == in_ch and (h, w) == (S_IN, S_IN)
    key = (n, in_ch, out_ch)
    if key not in _FWD_CACHE:
        # TODO(synk): pass grid_splits=2 on v7x so both TensorCores are busy.
        _FWD_CACHE[key] = _make_forward(n, in_ch, out_ch, grid_splits=1)
    return _FWD_CACHE[key](x_nchw, params["w_slab"], params["b_slab"])


if __name__ == "__main__":
    in_channels, out_channels = 4, 3
    key = jax.random.PRNGKey(0)
    kx, kp = jax.random.split(key)
    x = jax.random.normal(kx, (2, in_channels, S_IN, S_IN), jnp.float32)
    params = init_params(kp, in_channels, out_channels)

    logits = testnet_forward(params, x)
    jax.block_until_ready(logits)

    assert logits.shape == (2, out_channels + 1, S1, S1), logits.shape
    assert bool(jnp.all(jnp.isfinite(logits)))
    print("KERNEL_OK")
</pallas_src>

<mosaic_0001>
module attributes {stable_mosaic.version = 11 : i64} {
  func.func @kernel(%arg0: i32, %arg1: memref<1x8x648xf32, #tpu.memory_space<vmem>>, %arg2: memref<192x288xf32, #tpu.memory_space<vmem>>, %arg3: memref<192x1xf32, #tpu.memory_space<vmem>>, %arg4: memref<1240x200xf32, #tpu.memory_space<vmem>>, %arg5: memref<1x8x128xf32, #tpu.memory_space<vmem>>) attributes {dimension_semantics = [#tpu.dimension_semantics<parallel>], iteration_bounds = array<i64: 1>, scalar_prefetch = 0 : i64, scratch_operands = 0 : i64, tpu.core_type = #tpu.core_type<tc>, window_params = [{transform_indices = @transform_0, window_bounds = array<i64: 1, 8, 648>}, {pipeline_mode = #tpu.pipeline_mode<synchronous>, transform_indices = @transform_1, window_bounds = array<i64: 192, 288>}, {pipeline_mode = #tpu.pipeline_mode<synchronous>, transform_indices = @transform_2, window_bounds = array<i64: 192, 1>}, {pipeline_mode = #tpu.pipeline_mode<synchronous>, transform_indices = @transform_3, window_bounds = array<i64: 1240, 200>}, {transform_indices = @transform_4, window_bounds = array<i64: 1, 8, 128>}]} {
    %c0 = arith.constant 0 : index
    %c0_0 = arith.constant 0 : index
    %c0_1 = arith.constant 0 : index
    %0 = vector.load %arg1[%c0, %c0_0, %c0_1] : memref<1x8x648xf32, #tpu.memory_space<vmem>>, vector<1x8x648xf32>
    %1 = vector.shape_cast %0 : vector<1x8x648xf32> to vector<8x648xf32>
    %c1224 = arith.constant 1224 : index
    %c0_2 = arith.constant 0 : index
    %2 = vector.load %arg4[%c1224, %c0_2] : memref<1240x200xf32, #tpu.memory_space<vmem>>, vector<1x72xf32>
    %c1232 = arith.constant 1232 : index
    %c0_3 = arith.constant 0 : index
    %3 = vector.load %arg4[%c1232, %c0_3] : memref<1240x200xf32, #tpu.memory_space<vmem>>, vector<1x200xf32>
    %c0_4 = arith.constant 0 : index
    %c0_5 = arith.constant 0 : index
    %4 = vector.load %arg2[%c0_4, %c0_5] : memref<192x288xf32, #tpu.memory_space<vmem>>, vector<8x72xf32>
    %5 = arith.truncf %4 : vector<8x72xf32> to vector<8x72xbf16>
    %c0_6 = arith.constant 0 : index
    %c0_7 = arith.constant 0 : index
    %6 = vector.load %arg3[%c0_6, %c0_7] : memref<192x1xf32, #tpu.memory_space<vmem>>, vector<8x1xf32>
    %cst = arith.constant 0.000000e+00 : f32
    %7 = vector.broadcast %cst : f32 to vector<8x19xf32>
    %8 = tpu.concatenate %7, %1, %7 in 1 : vector<8x19xf32>, vector<8x648xf32>, vector<8x19xf32> -> vector<8x686xf32>
    %9 = vector.extract_strided_slice %8 {offsets = [0, 0], sizes = [8, 648], strides = [1, 1]} : vector<8x686xf32> to vector<8x648xf32>
    %10 = vector.extract_strided_slice %8 {offsets = [0, 1], sizes = [8, 648], strides = [1, 1]} : vector<8x686xf32> to vector<8x648xf32>
    %11 = vector.extract_strided_slice %8 {offsets = [0, 2], sizes = [8, 648], strides = [1, 1]} : vector<8x686xf32> to vector<8x648xf32>
    %12 = vector.extract_strided_slice %8 {offsets = [0, 18], sizes = [8, 648], strides = [1, 1]} : vector<8x686xf32> to vector<8x648xf32>
    %13 = vector.extract_strided_slice %8 {offsets = [0, 19], sizes = [8, 648], strides = [1, 1]} : vector<8x686xf32> to vector<8x648xf32>
    %14 = vector.extract_strided_slice %8 {offsets = [0, 20], sizes = [8, 648], strides = [1, 1]} : vector<8x686xf32> to vector<8x648xf32>
    %15 = vector.extract_strided_slice %8 {offsets = [0, 36], sizes = [8, 648], strides = [1, 1]} : vector<8x686xf32> to vector<8x648xf32>
    %16 = vector.extract_strided_slice %8 {offsets = [0, 37], sizes = [8, 648], strides = [1, 1]} : vector<8x686xf32> to vector<8x648xf32>
    %17 = vector.extract_strided_slice %8 {offsets = [0, 38], sizes = [8, 648], strides = [1, 1]} : vector<8x686xf32> to vector<8x648xf32>
    %18 = tpu.concatenate %9, %10, %11, %12, %13, %14, %15, %16, %17 in 0 : vector<8x648xf32>, vector<8x648xf32>, vector<8x648xf32>, vector<8x648xf32>, vector<8x648xf32>, vector<8x648xf32>, vector<8x648xf32>, vector<8x648xf32>, vector<8x648xf32> -> vector<72x648xf32>
    %19 = arith.truncf %18 : vector<72x648xf32> to vector<72x648xbf16>
    %cst_8 = arith.constant dense<0.000000e+00> : vector<8x648xf32>
    %20 = tpu.matmul %5, %19, %cst_8 {dimension_numbers = #tpu.dot_dimension_numbers<[1], [0], [0], [1], [0, 0, 1, 1], [], []>} : vector<8x72xbf16>, vector<72x648xbf16>, vector<8x648xf32> -> vector<8x648xf32>
    %21 = vector.broadcast %6 : vector<8x1xf32> to vector<8x648xf32>
    %22 = arith.addf %20, %21 : vector<8x648xf32>
    %cst_9 = arith.constant 0.000000e+00 : f32
    %23 = vector.broadcast %cst_9 : f32 to vector<8x648xf32>
    %24 = arith.maximumf %22, %23 : vector<8x648xf32>
    %c0_10 = arith.constant 0 : index
    %c0_11 = arith.constant 0 : index
    %25 = vector.load %arg4[%c0_10, %c0_11] : memref<1240x200xf32, #tpu.memory_space<vmem>>, vector<648x200xf32>
    %cst_12 = arith.constant dense<0.000000e+00> : vector<8x200xf32>
    %26 = tpu.matmul %24, %25, %cst_12 {dimension_numbers = #tpu.dot_dimension_numbers<[1], [0], [0], [1], [0, 0, 1, 1], [], []>} : vector<8x648xf32>, vector<648x200xf32>, vector<8x200xf32> -> vector<8x200xf32>
    %c8 = arith.constant 8 : index
    %c0_13 = arith.constant 0 : index
    %27 = vector.load %arg2[%c8, %c0_13] : memref<192x288xf32, #tpu.memory_space<vmem>>, vector<16x72xf32>
    %28 = arith.truncf %27 : vector<16x72xf32> to vector<16x72xbf16>
    %c8_14 = arith.constant 8 : index
    %c0_15 = arith.constant 0 : index
    %29 = vector.load %arg3[%c8_14, %c0_15] : memref<192x1xf32, #tpu.memory_space<vmem>>, vector<16x1xf32>
    %cst_16 = arith.constant 0.000000e+00 : f32
    %30 = vector.broadcast %cst_16 : f32 to vector<8x11xf32>
    %31 = tpu.concatenate %30, %26, %30 in 1 : vector<8x11xf32>, vector<8x200xf32>, vector<8x11xf32> -> vector<8x222xf32>
    %32 = vector.extract_strided_slice %31 {offsets = [0, 0], sizes = [8, 200], strides = [1, 1]} : vector<8x222xf32> to vector<8x200xf32>
    %33 = vector.extract_strided_slice %31 {offsets = [0, 1], sizes = [8, 200], strides = [1, 1]} : vector<8x222xf32> to vector<8x200xf32>
    %34 = vector.extract_strided_slice %31 {offsets = [0, 2], sizes = [8, 200], strides = [1, 1]} : vector<8x222xf32> to vector<8x200xf32>
    %35 = vector.extract_strided_slice %31 {offsets = [0, 10], sizes = [8, 200], strides = [1, 1]} : vector<8x222xf32> to vector<8x200xf32>
    %36 = vector.extract_strided_slice %31 {offsets = [0, 11], sizes = [8, 200], strides = [1, 1]} : vector<8x222xf32> to vector<8x200xf32>
    %37 = vector.extract_strided_slice %31 {offsets = [0, 12], sizes = [8, 200], strides = [1, 1]} : vector<8x222xf32> to vector<8x200xf32>
    %38 = vector.extract_strided_slice %31 {offsets = [0, 20], sizes = [8, 200], strides = [1, 1]} : vector<8x222xf32> to vector<8x200xf32>
    %39 = vector.extract_strided_slice %31 {offsets = [0, 21], sizes = [8, 200], strides = [1, 1]} : vector<8x222xf32> to vector<8x200xf32>
    %40 = vector.extract_strided_slice %31 {offsets = [0, 22], sizes = [8, 200], strides = [1, 1]} : vector<8x222xf32> to vector<8x200xf32>
    %41 = tpu.concatenate %32, %33, %34, %35, %36, %37, %38, %39, %40 in 0 : vector<8x200xf32>, vector<8x200xf32>, vector<8x200xf32>, vector<8x200xf32>, vector<8x200xf32>, vector<8x200xf32>, vector<8x200xf32>, vector<8x200xf32>, vector<8x200xf32> -> vector<72x200xf32>
    %42 = arith.truncf %41 : vector<72x200xf32> to vector<72x200xbf16>
    %cst_17 = arith.constant dense<0.000000e+00> : vector<16x200xf32>
    %43 = tpu.matmul %28, %42, %cst_17 {dimension_numbers = #tpu.dot_dimension_numbers<[1], [0], [0], [1], [0, 0, 1, 1], [], []>} : vector<16x72xbf16>, vector<72x200xbf16>, vector<16x200xf32> -> vector<16x200xf32>
    %44 = vector.broadcast %29 : vector<16x1xf32> to vector<16x200xf32>
    %45 = arith.addf %43, %44 : vector<16x200xf32>
    %cst_18 = arith.constant 0.000000e+00 : f32
    %46 = vector.broadcast %cst_18 : f32 to vector<16x200xf32>
    %47 = arith.maximumf %45, %46 : vector<16x200xf32>
    %c648 = arith.constant 648 : index
    %c0_19 = arith.constant 0 : index
    %48 = vector.load %arg4[%c648, %c0_19] : memref<1240x200xf32, #tpu.memory_space<vmem>>, vector<200x72xf32>
    %cst_20 = arith.constant dense<0.000000e+00> : vector<16x72xf32>
    %49 = tpu.matmul %47, %48, %cst_20 {dimension_numbers = #tpu.dot_dimension_numbers<[1], [0], [0], [1], [0, 0, 1, 1], [], []>} : vector<16x200xf32>, vector<200x72xf32>, vector<16x72xf32> -> vector<16x72xf32>
    %c24 = arith.constant 24 : index
    %c0_21 = arith.constant 0 : index
    %50 = vector.load %arg2[%c24, %c0_21] : memref<192x288xf32, #tpu.memory_space<vmem>>, vector<32x144xf32>
    %51 = arith.truncf %50 : vector<32x144xf32> to vector<32x144xbf16>
    %c24_22 = arith.constant 24 : index
    %c0_23 = arith.constant 0 : index
    %52 = vector.load %arg3[%c24_22, %c0_23] : memref<192x1xf32, #tpu.memory_space<vmem>>, vector<32x1xf32>
    %cst_24 = arith.constant 0.000000e+00 : f32
    %53 = vector.broadcast %cst_24 : f32 to vector<16x7xf32>
    %54 = tpu.concatenate %53, %49, %53 in 1 : vector<16x7xf32>, vector<16x72xf32>, vector<16x7xf32> -> vector<16x86xf32>
    %55 = vector.extract_strided_slice %54 {offsets = [0, 0], sizes = [16, 72], strides = [1, 1]} : vector<16x86xf32> to vector<16x72xf32>
    %56 = vector.extract_strided_slice %54 {offsets = [0, 1], sizes = [16, 72], strides = [1, 1]} : vector<16x86xf32> to vector<16x72xf32>
    %57 = vector.extract_strided_slice %54 {offsets = [0, 2], sizes = [16, 72], strides = [1, 1]} : vector<16x86xf32> to vector<16x72xf32>
    %58 = vector.extract_strided_slice %54 {offsets = [0, 6], sizes = [16, 72], strides = [1, 1]} : vector<16x86xf32> to vector<16x72xf32>
    %59 = vector.extract_strided_slice %54 {offsets = [0, 7], sizes = [16, 72], strides = [1, 1]} : vector<16x86xf32> to vector<16x72xf32>
    %60 = vector.extract_strided_slice %54 {offsets = [0, 8], sizes = [16, 72], strides = [1, 1]} : vector<16x86xf32> to vector<16x72xf32>
    %61 = vector.extract_strided_slice %54 {offsets = [0, 12], sizes = [16, 72], strides = [1, 1]} : vector<16x86xf32> to vector<16x72xf32>
    %62 = vector.extract_strided_slice %54 {offsets = [0, 13], sizes = [16, 72], strides = [1, 1]} : vector<16x86xf32> to vector<16x72xf32>
    %63 = vector.extract_strided_slice %54 {offsets = [0, 14], sizes = [16, 72], strides = [1, 1]} : vector<16x86xf32> to vector<16x72xf32>
    %64 = tpu.concatenate %55, %56, %57, %58, %59, %60, %61, %62, %63 in 0 : vector<16x72xf32>, vector<16x72xf32>, vector<16x72xf32>, vector<16x72xf32>, vector<16x72xf32>, vector<16x72xf32>, vector<16x72xf32>, vector<16x72xf32>, vector<16x72xf32> -> vector<144x72xf32>
    %65 = arith.truncf %64 : vector<144x72xf32> to vector<144x72xbf16>
    %cst_25 = arith.constant dense<0.000000e+00> : vector<32x72xf32>
    %66 = tpu.matmul %51, %65, %cst_25 {dimension_numbers = #tpu.dot_dimension_numbers<[1], [0], [0], [1], [0, 0, 1, 1], [], []>} : vector<32x144xbf16>, vector<144x72xbf16>, vector<32x72xf32> -> vector<32x72xf32>
    %67 = vector.broadcast %52 : vector<32x1xf32> to vector<32x72xf32>
    %68 = arith.addf %66, %67 : vector<32x72xf32>
    %cst_26 = arith.constant 0.000000e+00 : f32
    %69 = vector.broadcast %cst_26 : f32 to vector<32x72xf32>
    %70 = arith.maximumf %68, %69 : vector<32x72xf32>
    %c848 = arith.constant 848 : index
    %c0_27 = arith.constant 0 : index
    %71 = vector.load %arg4[%c848, %c0_27] : memref<1240x200xf32, #tpu.memory_space<vmem>>, vector<72x32xf32>
    %cst_28 = arith.constant dense<0.000000e+00> : vector<32x32xf32>
    %72 = tpu.matmul %70, %71, %cst_28 {dimension_numbers = #tpu.dot_dimension_numbers<[1], [0], [0], [1], [0, 0, 1, 1], [], []>} : vector<32x72xf32>, vector<72x32xf32>, vector<32x32xf32> -> vector<32x32xf32>
    %c56 = arith.constant 56 : index
    %c0_29 = arith.constant 0 : index
    %73 = vector.load %arg2[%c56, %c0_29] : memref<192x288xf32, #tpu.memory_space<vmem>>, vector<16x32xf32>
    %74 = arith.truncf %73 : vector<16x32xf32> to vector<16x32xbf16>
    %c56_30 = arith.constant 56 : index
    %c0_31 = arith.constant 0 : index
    %75 = vector.load %arg3[%c56_30, %c0_31] : memref<192x1xf32, #tpu.memory_space<vmem>>, vector<16x1xf32>
    %76 = arith.truncf %72 : vector<32x32xf32> to vector<32x32xbf16>
    %cst_32 = arith.constant dense<0.000000e+00> : vector<16x32xf32>
    %77 = tpu.matmul %74, %76, %cst_32 {dimension_numbers = #tpu.dot_dimension_numbers<[1], [0], [0], [1], [0, 0, 1, 1], [], []>} : vector<16x32xbf16>, vector<32x32xbf16>, vector<16x32xf32> -> vector<16x32xf32>
    %78 = vector.broadcast %75 : vector<16x1xf32> to vector<16x32xf32>
    %79 = arith.addf %77, %78 : vector<16x32xf32>
    %c920 = arith.constant 920 : index
    %c0_33 = arith.constant 0 : index
    %80 = vector.load %arg4[%c920, %c0_33] : memref<1240x200xf32, #tpu.memory_space<vmem>>, vector<32x72xf32>
    %cst_34 = arith.constant dense<0.000000e+00> : vector<16x72xf32>
    %81 = tpu.matmul %79, %80, %cst_34 {dimension_numbers = #tpu.dot_dimension_numbers<[1], [0], [0], [1], [0, 0, 1, 1], [], []>} : vector<16x32xf32>, vector<32x72xf32>, vector<16x72xf32> -> vector<16x72xf32>
    %82 = tpu.concatenate %49, %81 in 0 : vector<16x72xf32>, vector<16x72xf32> -> vector<32x72xf32>
    %c72 = arith.constant 72 : index
    %c0_35 = arith.constant 0 : index
    %83 = vector.load %arg2[%c72, %c0_35] : memref<192x288xf32, #tpu.memory_space<vmem>>, vector<32x288xf32>
    %84 = arith.truncf %83 : vector<32x288xf32> to vector<32x288xbf16>
    %c72_36 = arith.constant 72 : index
    %c0_37 = arith.constant 0 : index
    %85 = vector.load %arg3[%c72_36, %c0_37] : memref<192x1xf32, #tpu.memory_space<vmem>>, vector<32x1xf32>
    %cst_38 = arith.constant 0.000000e+00 : f32
    %86 = vector.broadcast %cst_38 : f32 to vector<32x7xf32>
    %87 = tpu.concatenate %86, %82, %86 in 1 : vector<32x7xf32>, vector<32x72xf32>, vector<32x7xf32> -> vector<32x86xf32>
    %88 = vector.extract_strided_slice %87 {offsets = [0, 0], sizes = [32, 72], strides = [1, 1]} : vector<32x86xf32> to vector<32x72xf32>
    %89 = vector.extract_strided_slice %87 {offsets = [0, 1], sizes = [32, 72], strides = [1, 1]} : vector<32x86xf32> to vector<32x72xf32>
    %90 = vector.extract_strided_slice %87 {offsets = [0, 2], sizes = [32, 72], strides = [1, 1]} : vector<32x86xf32> to vector<32x72xf32>
    %91 = vector.extract_strided_slice %87 {offsets = [0, 6], sizes = [32, 72], strides = [1, 1]} : vector<32x86xf32> to vector<32x72xf32>
    %92 = vector.extract_strided_slice %87 {offsets = [0, 7], sizes = [32, 72], strides = [1, 1]} : vector<32x86xf32> to vector<32x72xf32>
    %93 = vector.extract_strided_slice %87 {offsets = [0, 8], sizes = [32, 72], strides = [1, 1]} : vector<32x86xf32> to vector<32x72xf32>
    %94 = vector.extract_strided_slice %87 {offsets = [0, 12], sizes = [32, 72], strides = [1, 1]} : vector<32x86xf32> to vector<32x72xf32>
    %95 = vector.extract_strided_slice %87 {offsets = [0, 13], sizes = [32, 72], strides = [1, 1]} : vector<32x86xf32> to vector<32x72xf32>
    %96 = vector.extract_strided_slice %87 {offsets = [0, 14], sizes = [32, 72], strides = [1, 1]} : vector<32x86xf32> to vector<32x72xf32>
    %97 = tpu.concatenate %88, %89, %90, %91, %92, %93, %94, %95, %96 in 0 : vector<32x72xf32>, vector<32x72xf32>, vector<32x72xf32>, vector<32x72xf32>, vector<32x72xf32>, vector<32x72xf32>, vector<32x72xf32>, vector<32x72xf32>, vector<32x72xf32> -> vector<288x72xf32>
    %98 = arith.truncf %97 : vector<288x72xf32> to vector<288x72xbf16>
    %cst_39 = arith.constant dense<0.000000e+00> : vector<32x72xf32>
    %99 = tpu.matmul %84, %98, %cst_39 {dimension_numbers = #tpu.dot_dimension_numbers<[1], [0], [0], [1], [0, 0, 1, 1], [], []>} : vector<32x288xbf16>, vector<288x72xbf16>, vector<32x72xf32> -> vector<32x72xf32>
    %100 = vector.broadcast %85 : vector<32x1xf32> to vector<32x72xf32>
    %101 = arith.addf %99, %100 : vector<32x72xf32>
    %cst_40 = arith.constant 0.000000e+00 : f32
    %102 = vector.broadcast %cst_40 : f32 to vector<32x72xf32>
    %103 = arith.maximumf %101, %102 : vector<32x72xf32>
    %104 = vector.broadcast %2 : vector<1x72xf32> to vector<32x72xf32>
    %105 = arith.mulf %103, %104 : vector<32x72xf32>
    %c104 = arith.constant 104 : index
    %c0_41 = arith.constant 0 : index
    %106 = vector.load %arg2[%c104, %c0_41] : memref<192x288xf32, #tpu.memory_space<vmem>>, vector<32x288xf32>
    %107 = arith.truncf %106 : vector<32x288xf32> to vector<32x288xbf16>
    %c104_42 = arith.constant 104 : index
    %c0_43 = arith.constant 0 : index
    %108 = vector.load %arg3[%c104_42, %c0_43] : memref<192x1xf32, #tpu.memory_space<vmem>>, vector<32x1xf32>
    %cst_44 = arith.constant 0.000000e+00 : f32
    %109 = vector.broadcast %cst_44 : f32 to vector<32x7xf32>
    %110 = tpu.concatenate %109, %105, %109 in 1 : vector<32x7xf32>, vector<32x72xf32>, vector<32x7xf32> -> vector<32x86xf32>
    %111 = vector.extract_strided_slice %110 {offsets = [0, 0], sizes = [32, 72], strides = [1, 1]} : vector<32x86xf32> to vector<32x72xf32>
    %112 = vector.extract_strided_slice %110 {offsets = [0, 1], sizes = [32, 72], strides = [1, 1]} : vector<32x86xf32> to vector<32x72xf32>
    %113 = vector.extract_strided_slice %110 {offsets = [0, 2], sizes = [32, 72], strides = [1, 1]} : vector<32x86xf32> to vector<32x72xf32>
    %114 = vector.extract_strided_slice %110 {offsets = [0, 6], sizes = [32, 72], strides = [1, 1]} : vector<32x86xf32> to vector<32x72xf32>
    %115 = vector.extract_strided_slice %110 {offsets = [0, 7], sizes = [32, 72], strides = [1, 1]} : vector<32x86xf32> to vector<32x72xf32>
    %116 = vector.extract_strided_slice %110 {offsets = [0, 8], sizes = [32, 72], strides = [1, 1]} : vector<32x86xf32> to vector<32x72xf32>
    %117 = vector.extract_strided_slice %110 {offsets = [0, 12], sizes = [32, 72], strides = [1, 1]} : vector<32x86xf32> to vector<32x72xf32>
    %118 = vector.extract_strided_slice %110 {offsets = [0, 13], sizes = [32, 72], strides = [1, 1]} : vector<32x86xf32> to vector<32x72xf32>
    %119 = vector.extract_strided_slice %110 {offsets = [0, 14], sizes = [32, 72], strides = [1, 1]} : vector<32x86xf32> to vector<32x72xf32>
    %120 = tpu.concatenate %111, %112, %113, %114, %115, %116, %117, %118, %119 in 0 : vector<32x72xf32>, vector<32x72xf32>, vector<32x72xf32>, vector<32x72xf32>, vector<32x72xf32>, vector<32x72xf32>, vector<32x72xf32>, vector<32x72xf32>, vector<32x72xf32> -> vector<288x72xf32>
    %121 = arith.truncf %120 : vector<288x72xf32> to vector<288x72xbf16>
    %cst_45 = arith.constant dense<0.000000e+00> : vector<32x72xf32>
    %122 = tpu.matmul %107, %121, %cst_45 {dimension_numbers = #tpu.dot_dimension_numbers<[1], [0], [0], [1], [0, 0, 1, 1], [], []>} : vector<32x288xbf16>, vector<288x72xbf16>, vector<32x72xf32> -> vector<32x72xf32>
    %123 = vector.broadcast %108 : vector<32x1xf32> to vector<32x72xf32>
    %124 = arith.addf %122, %123 : vector<32x72xf32>
    %cst_46 = arith.constant 0.000000e+00 : f32
    %125 = vector.broadcast %cst_46 : f32 to vector<32x72xf32>
    %126 = arith.maximumf %124, %125 : vector<32x72xf32>
    %127 = vector.broadcast %2 : vector<1x72xf32> to vector<32x72xf32>
    %128 = arith.mulf %126, %127 : vector<32x72xf32>
    %c136 = arith.constant 136 : index
    %c0_47 = arith.constant 0 : index
    %129 = vector.load %arg2[%c136, %c0_47] : memref<192x288xf32, #tpu.memory_space<vmem>>, vector<16x32xf32>
    %130 = arith.truncf %129 : vector<16x32xf32> to vector<16x32xbf16>
    %c136_48 = arith.constant 136 : index
    %c0_49 = arith.constant 0 : index
    %131 = vector.load %arg3[%c136_48, %c0_49] : memref<192x1xf32, #tpu.memory_space<vmem>>, vector<16x1xf32>
    %132 = arith.truncf %128 : vector<32x72xf32> to vector<32x72xbf16>
    %cst_50 = arith.constant dense<0.000000e+00> : vector<16x72xf32>
    %133 = tpu.matmul %130, %132, %cst_50 {dimension_numbers = #tpu.dot_dimension_numbers<[1], [0], [0], [1], [0, 0, 1, 1], [], []>} : vector<16x32xbf16>, vector<32x72xbf16>, vector<16x72xf32> -> vector<16x72xf32>
    %134 = vector.broadcast %131 : vector<16x1xf32> to vector<16x72xf32>
    %135 = arith.addf %133, %134 : vector<16x72xf32>
    %c952 = arith.constant 952 : index
    %c0_51 = arith.constant 0 : index
    %136 = vector.load %arg4[%c952, %c0_51] : memref<1240x200xf32, #tpu.memory_space<vmem>>, vector<72x200xf32>
    %cst_52 = arith.constant dense<0.000000e+00> : vector<16x200xf32>
    %137 = tpu.matmul %135, %136, %cst_52 {dimension_numbers = #tpu.dot_dimension_numbers<[1], [0], [0], [1], [0, 0, 1, 1], [], []>} : vector<16x72xf32>, vector<72x200xf32>, vector<16x200xf32> -> vector<16x200xf32>
    %138 = tpu.concatenate %26, %137 in 0 : vector<8x200xf32>, vector<16x200xf32> -> vector<24x200xf32>
    %c152 = arith.constant 152 : index
    %c0_53 = arith.constant 0 : index
    %139 = vector.load %arg2[%c152, %c0_53] : memref<192x288xf32, #tpu.memory_space<vmem>>, vector<16x216xf32>
    %140 = arith.truncf %139 : vector<16x216xf32> to vector<16x216xbf16>
    %c152_54 = arith.constant 152 : index
    %c0_55 = arith.constant 0 : index
    %141 = vector.load %arg3[%c152_54, %c0_55] : memref<192x1xf32, #tpu.memory_space<vmem>>, vector<16x1xf32>
    %cst_56 = arith.constant 0.000000e+00 : f32
    %142 = vector.broadcast %cst_56 : f32 to vector<24x11xf32>
    %143 = tpu.concatenate %142, %138, %142 in 1 : vector<24x11xf32>, vector<24x200xf32>, vector<24x11xf32> -> vector<24x222xf32>
    %144 = vector.extract_strided_slice %143 {offsets = [0, 0], sizes = [24, 200], strides = [1, 1]} : vector<24x222xf32> to vector<24x200xf32>
    %145 = vector.extract_strided_slice %143 {offsets = [0, 1], sizes = [24, 200], strides = [1, 1]} : vector<24x222xf32> to vector<24x200xf32>
    %146 = vector.extract_strided_slice %143 {offsets = [0, 2], sizes = [24, 200], strides = [1, 1]} : vector<24x222xf32> to vector<24x200xf32>
    %147 = vector.extract_strided_slice %143 {offsets = [0, 10], sizes = [24, 200], strides = [1, 1]} : vector<24x222xf32> to vector<24x200xf32>
    %148 = vector.extract_strided_slice %143 {offsets = [0, 11], sizes = [24, 200], strides = [1, 1]} : vector<24x222xf32> to vector<24x200xf32>
    %149 = vector.extract_strided_slice %143 {offsets = [0, 12], sizes = [24, 200], strides = [1, 1]} : vector<24x222xf32> to vector<24x200xf32>
    %150 = vector.extract_strided_slice %143 {offsets = [0, 20], sizes = [24, 200], strides = [1, 1]} : vector<24x222xf32> to vector<24x200xf32>
    %151 = vector.extract_strided_slice %143 {offsets = [0, 21], sizes = [24, 200], strides = [1, 1]} : vector<24x222xf32> to vector<24x200xf32>
    %152 = vector.extract_strided_slice %143 {offsets = [0, 22], sizes = [24, 200], strides = [1, 1]} : vector<24x222xf32> to vector<24x200xf32>
    %153 = tpu.concatenate %144, %145, %146, %147, %148, %149, %150, %151, %152 in 0 : vector<24x200xf32>, vector<24x200xf32>, vector<24x200xf32>, vector<24x200xf32>, vector<24x200xf32>, vector<24x200xf32>, vector<24x200xf32>, vector<24x200xf32>, vector<24x200xf32> -> vector<216x200xf32>
    %154 = arith.truncf %153 : vector<216x200xf32> to vector<216x200xbf16>
    %cst_57 = arith.constant dense<0.000000e+00> : vector<16x200xf32>
    %155 = tpu.matmul %140, %154, %cst_57 {dimension_numbers = #tpu.dot_dimension_numbers<[1], [0], [0], [1], [0, 0, 1, 1], [], []>} : vector<16x216xbf16>, vector<216x200xbf16>, vector<16x200xf32> -> vector<16x200xf32>
    %156 = vector.broadcast %141 : vector<16x1xf32> to vector<16x200xf32>
    %157 = arith.addf %155, %156 : vector<16x200xf32>
    %cst_58 = arith.constant 0.000000e+00 : f32
    %158 = vector.broadcast %cst_58 : f32 to vector<16x200xf32>
    %159 = arith.maximumf %157, %158 : vector<16x200xf32>
    %160 = vector.broadcast %3 : vector<1x200xf32> to vector<16x200xf32>
    %161 = arith.mulf %159, %160 : vector<16x200xf32>
    %c168 = arith.constant 168 : index
    %c0_59 = arith.constant 0 : index
    %162 = vector.load %arg2[%c168, %c0_59] : memref<192x288xf32, #tpu.memory_space<vmem>>, vector<16x144xf32>
    %163 = arith.truncf %162 : vector<16x144xf32> to vector<16x144xbf16>
    %c168_60 = arith.constant 168 : index
    %c0_61 = arith.constant 0 : index
    %164 = vector.load %arg3[%c168_60, %c0_61] : memref<192x1xf32, #tpu.memory_space<vmem>>, vector<16x1xf32>
    %cst_62 = arith.constant 0.000000e+00 : f32
    %165 = vector.broadcast %cst_62 : f32 to vector<16x11xf32>
    %166 = tpu.concatenate %165, %161, %165 in 1 : vector<16x11xf32>, vector<16x200xf32>, vector<16x11xf32> -> vector<16x222xf32>
    %167 = vector.extract_strided_slice %166 {offsets = [0, 0], sizes = [16, 200], strides = [1, 1]} : vector<16x222xf32> to vector<16x200xf32>
    %168 = vector.extract_strided_slice %166 {offsets = [0, 1], sizes = [16, 200], strides = [1, 1]} : vector<16x222xf32> to vector<16x200xf32>
    %169 = vector.extract_strided_slice %166 {offsets = [0, 2], sizes = [16, 200], strides = [1, 1]} : vector<16x222xf32> to vector<16x200xf32>
    %170 = vector.extract_strided_slice %166 {offsets = [0, 10], sizes = [16, 200], strides = [1, 1]} : vector<16x222xf32> to vector<16x200xf32>
    %171 = vector.extract_strided_slice %166 {offsets = [0, 11], sizes = [16, 200], strides = [1, 1]} : vector<16x222xf32> to vector<16x200xf32>
    %172 = vector.extract_strided_slice %166 {offsets = [0, 12], sizes = [16, 200], strides = [1, 1]} : vector<16x222xf32> to vector<16x200xf32>
    %173 = vector.extract_strided_slice %166 {offsets = [0, 20], sizes = [16, 200], strides = [1, 1]} : vector<16x222xf32> to vector<16x200xf32>
    %174 = vector.extract_strided_slice %166 {offsets = [0, 21], sizes = [16, 200], strides = [1, 1]} : vector<16x222xf32> to vector<16x200xf32>
    %175 = vector.extract_strided_slice %166 {offsets = [0, 22], sizes = [16, 200], strides = [1, 1]} : vector<16x222xf32> to vector<16x200xf32>
    %176 = tpu.concatenate %167, %168, %169, %170, %171, %172, %173, %174, %175 in 0 : vector<16x200xf32>, vector<16x200xf32>, vector<16x200xf32>, vector<16x200xf32>, vector<16x200xf32>, vector<16x200xf32>, vector<16x200xf32>, vector<16x200xf32>, vector<16x200xf32> -> vector<144x200xf32>
    %177 = arith.truncf %176 : vector<144x200xf32> to vector<144x200xbf16>
    %cst_63 = arith.constant dense<0.000000e+00> : vector<16x200xf32>
    %178 = tpu.matmul %163, %177, %cst_63 {dimension_numbers = #tpu.dot_dimension_numbers<[1], [0], [0], [1], [0, 0, 1, 1], [], []>} : vector<16x144xbf16>, vector<144x200xbf16>, vector<16x200xf32> -> vector<16x200xf32>
    %179 = vector.broadcast %164 : vector<16x1xf32> to vector<16x200xf32>
    %180 = arith.addf %178, %179 : vector<16x200xf32>
    %cst_64 = arith.constant 0.000000e+00 : f32
    %181 = vector.broadcast %cst_64 : f32 to vector<16x200xf32>
    %182 = arith.maximumf %180, %181 : vector<16x200xf32>
    %183 = vector.broadcast %3 : vector<1x200xf32> to vector<16x200xf32>
    %184 = arith.mulf %182, %183 : vector<16x200xf32>
    %c184 = arith.constant 184 : index
    %c0_65 = arith.constant 0 : index
    %185 = vector.load %arg2[%c184, %c0_65] : memref<192x288xf32, #tpu.memory_space<vmem>>, vector<8x144xf32>
    %186 = arith.truncf %185 : vector<8x144xf32> to vector<8x144xbf16>
    %c184_66 = arith.constant 184 : index
    %c0_67 = arith.constant 0 : index
    %187 = vector.load %arg3[%c184_66, %c0_67] : memref<192x1xf32, #tpu.memory_space<vmem>>, vector<8x1xf32>
    %cst_68 = arith.constant 0.000000e+00 : f32
    %188 = vector.broadcast %cst_68 : f32 to vector<16x11xf32>
    %189 = tpu.concatenate %188, %184, %188 in 1 : vector<16x11xf32>, vector<16x200xf32>, vector<16x11xf32> -> vector<16x222xf32>
    %190 = vector.extract_strided_slice %189 {offsets = [0, 0], sizes = [16, 200], strides = [1, 1]} : vector<16x222xf32> to vector<16x200xf32>
    %191 = vector.extract_strided_slice %189 {offsets = [0, 1], sizes = [16, 200], strides = [1, 1]} : vector<16x222xf32> to vector<16x200xf32>
    %192 = vector.extract_strided_slice %189 {offsets = [0, 2], sizes = [16, 200], strides = [1, 1]} : vector<16x222xf32> to vector<16x200xf32>
    %193 = vector.extract_strided_slice %189 {offsets = [0, 10], sizes = [16, 200], strides = [1, 1]} : vector<16x222xf32> to vector<16x200xf32>
    %194 = vector.extract_strided_slice %189 {offsets = [0, 11], sizes = [16, 200], strides = [1, 1]} : vector<16x222xf32> to vector<16x200xf32>
    %195 = vector.extract_strided_slice %189 {offsets = [0, 12], sizes = [16, 200], strides = [1, 1]} : vector<16x222xf32> to vector<16x200xf32>
    %196 = vector.extract_strided_slice %189 {offsets = [0, 20], sizes = [16, 200], strides = [1, 1]} : vector<16x222xf32> to vector<16x200xf32>
    %197 = vector.extract_strided_slice %189 {offsets = [0, 21], sizes = [16, 200], strides = [1, 1]} : vector<16x222xf32> to vector<16x200xf32>
    %198 = vector.extract_strided_slice %189 {offsets = [0, 22], sizes = [16, 200], strides = [1, 1]} : vector<16x222xf32> to vector<16x200xf32>
    %199 = tpu.concatenate %190, %191, %192, %193, %194, %195, %196, %197, %198 in 0 : vector<16x200xf32>, vector<16x200xf32>, vector<16x200xf32>, vector<16x200xf32>, vector<16x200xf32>, vector<16x200xf32>, vector<16x200xf32>, vector<16x200xf32>, vector<16x200xf32> -> vector<144x200xf32>
    %200 = arith.truncf %199 : vector<144x200xf32> to vector<144x200xbf16>
    %cst_69 = arith.constant dense<0.000000e+00> : vector<8x200xf32>
    %201 = tpu.matmul %186, %200, %cst_69 {dimension_numbers = #tpu.dot_dimension_numbers<[1], [0], [0], [1], [0, 0, 1, 1], [], []>} : vector<8x144xbf16>, vector<144x200xbf16>, vector<8x200xf32> -> vector<8x200xf32>
    %202 = vector.broadcast %187 : vector<8x1xf32> to vector<8x200xf32>
    %203 = arith.addf %201, %202 : vector<8x200xf32>
    %c1024 = arith.constant 1024 : index
    %c0_70 = arith.constant 0 : index
    %204 = vector.load %arg4[%c1024, %c0_70] : memref<1240x200xf32, #tpu.memory_space<vmem>>, vector<200x128xf32>
    %cst_71 = arith.constant dense<0.000000e+00> : vector<8x128xf32>
    %205 = tpu.matmul %203, %204, %cst_71 {dimension_numbers = #tpu.dot_dimension_numbers<[1], [0], [0], [1], [0, 0, 1, 1], [], []>} : vector<8x200xf32>, vector<200x128xf32>, vector<8x128xf32> -> vector<8x128xf32>
    %c0_72 = arith.constant 0 : index
    %c0_73 = arith.constant 0 : index
    %c0_74 = arith.constant 0 : index
    %206 = vector.load %arg5[%c0_72, %c0_73, %c0_74] : memref<1x8x128xf32, #tpu.memory_space<vmem>>, vector<1x8x128xf32>
    %207 = vector.shape_cast %206 : vector<1x8x128xf32> to vector<8x128xf32>
    %208 = vector.shape_cast %205 : vector<8x128xf32> to vector<1x8x128xf32>
    tpu.vector_store %arg5[%c0_72, %c0_73, %c0_74], %208 {strides = array<i32>} : memref<1x8x128xf32, #tpu.memory_space<vmem>>, vector<1x8x128xf32>,
    return
  }
  func.func @transform_0(%arg0: i32) -> (i32, i32, i32) {
    %c0_i32 = arith.constant 0 : i32
    %c0_i32_0 = arith.constant 0 : i32
    %c0_i32_1 = arith.constant 0 : i32
    return %arg0, %c0_i32, %c0_i32_0 : i32, i32, i32
  }
  func.func @transform_1(%arg0: i32) -> (i32, i32) {
    %c0_i32 = arith.constant 0 : i32
    %c0_i32_0 = arith.constant 0 : i32
    %c0_i32_1 = arith.constant 0 : i32
    return %c0_i32, %c0_i32_0 : i32, i32
  }
  func.func @transform_2(%arg0: i32) -> (i32, i32) {
    %c0_i32 = arith.constant 0 : i32
    %c0_i32_0 = arith.constant 0 : i32
    %c0_i32_1 = arith.constant 0 : i32
    return %c0_i32, %c0_i32_0 : i32, i32
  }
  func.func @transform_3(%arg0: i32) -> (i32, i32) {
    %c0_i32 = arith.constant 0 : i32
    %c0_i32_0 = arith.constant 0 : i32
    %c0_i32_1 = arith.constant 0 : i32
    return %c0_i32, %c0_i32_0 : i32, i32
  }
  func.func @transform_4(%arg0: i32) -> (i32, i32, i32) {
    %c0_i32 = arith.constant 0 : i32
    %c0_i32_0 = arith.constant 0 : i32
    %c0_i32_1 = arith.constant 0 : i32
    return %arg0, %c0_i32, %c0_i32_0 : i32, i32, i32
  }
}

</mosaic_0001>

<bundles_post_ra>
// kernel: fwd.1
= control target key start
LH: loop header
LB: loop body
LE: loop exit
PB: predicated region body
PF: predicated region fallthrough
CT: control target
= control target key end

     0   :  { %9 = vsyncpa [#allocation3], 0  ;;  %s4445_s0 = inlined_call_operand.vmem [shape: f32[1,8,648], index: 0, kind: input, shape index: {}]   ;;  %s4446_s1 = inlined_call_operand.hbm [shape: f32[192,288], index: 1, kind: input, shape index: {}]   ;;  %s4447_s2 = inlined_call_operand.vmem [shape: f32[192,1], index: 2, kind: input, shape index: {}]   ;;  %s4448_s3 = inlined_call_operand.hbm [shape: f32[1240,200], index: 3, kind: input, shape index: {}]   ;;  %s4449_s4 = inlined_call_operand.vmem [shape: f32[1,8,128], index: 4, kind: output, shape index: {}]  }
   0x1   :  { %s17_s17 = sshll.u32 %s4446_s1, 4  ;;  %s18_s17 = int_to_ptr.hbm [resolvable:$true] %s17_s17 }
   0x2   :  { %10 = vsyncpa [#allocation5], 0  ;;  %s3486_s18 = smov [#allocation2]   ;;  %s32_s22 = sshll.u32 %s4448_s3, 4  ;;  %s33_s22 = int_to_ptr.hbm [resolvable:$true] %s32_s22 }
   0x3   :  { %s19_s19 = sshll.u32 %s3486_s18, 4  ;;  %s3487_s23 = smov 384   ;;  %s20_s19 = int_to_ptr.vmem [resolvable:$true] %s19_s19 }
   0x4   :  { %s3488_s24 = smov 24   ;;  %s3489_s25 = smov [#allocation4]  }
   0x5   :  { %25 = dma.hbm_to_vmem [thread:$0]  %s18_s17, 9216, %s20_s19, [#allocation3], %s3487_s23, %s3487_s23, %s3488_s24  }
   0x6   :  { %s34_s26 = sshll.u32 %s3489_s25, 4  ;;  %s3490_s27 = smov 256   ;;  %s35_s26 = int_to_ptr.vmem [resolvable:$true] %s34_s26 }
   0x7   :  { %s3491_s28 = smov 16  }
   0x8   :  { %40 = dma.hbm_to_vmem [thread:$0]  %s33_s22, 39680, %s35_s26, [#allocation5], %s3490_s27, %s3490_s27, %s3491_s28  }
   0x9   :  { %3482 = dma.done.wait [#allocation3], 9216  }
   0xa   :  { %3483 = vsyncadd [#allocation3], 4294958080 }
   0xb   :  { %3484 = dma.done.wait [#allocation5], 39680  }
   0xc   :  { %3485 = vsyncadd [#allocation5], 4294927616  ;;  %v50_v0 = vld [vmem:[%s4445_s0] sm:$0xff]  ;;  %v51_v1 = vld [vmem:[%s4445_s0 + $0x8] sm:$0xff]  ;;  %s3492_s9 = smov 19   ;;  %vm80_vm0 = vcmask 154624  }
   0xd   :  { %v53_v2 = vld [vmem:[%s4445_s0 + $0x18] sm:$0xff]  ;;  %v2801_v3 = vpack.i.bf16 %v51_v1, %v50_v0  ;;  %v55_v4 = vld [vmem:[%s4445_s0 + $0x28] sm:$0xff]  ;;  %v52_v6 = vld [vmem:[%s4445_s0 + $0x10] sm:$0xff]  ;;  %s3494_s14 = smov 92   ;;  %s3495_s15 = smov 90   ;;  %vm93_vm1 = vcmask 220160  }
   0xe   :  { %v2811_v5 = vpack.i.bf16 %v53_v2, %v55_v4  ;;  %v54_v7 = vld [vmem:[%s4445_s0 + $0x20] sm:$0xff]  ;;  %s3493_s0 = smov 109   ;;  %s3496_s16 = smov 126   ;;  %vm277_vm2 = vcmask 736256   ;;  %vm253_vm3 = vcmask 744448   ;;  %vm328_vm4 = vcmask 1043456   ;;  %vm2675_vm12 = vmneg %vm80_vm0 }
   0xf   :  { %2802 = vrot.lane.b32.xlu0 %v2801_v3, %s3492_s9  ;;  %v2806_v8 = vpack.i.bf16 %v54_v7, %v52_v6  ;;  %s3497_s17 = smov 91   ;;  %s3498_s18 = smov 108   ;;  %vm229_vm5 = vcmask 752640   ;;  %vm181_vm6 = vcmask 891904   ;;  %vm4451_vm7 = vcmask 883712   ;;  %v61_v59 = vld [vmem:[%s4447_s2] sm:$0xff] }
  0x10   :  { %2812 = vrot.lane.b32.xlu1 %v2811_v5, %s3492_s9  ;;  %s3499_s19 = smov 110   ;;  %s3500_s20 = smov 127   ;;  %v3501_v58 = vmov 0   ;;  %vm133_vm8 = vcmask 1031168   ;;  %vm157_vm9 = vcmask 900096   ;;  %vm4452_vm10 = vcmask 1039360  }
  0x11   :  { %2936 = vset.pattern.permute.xlu0 %v3501_v58  ;;  %2982 = vset.pattern.permute.xlu2 %v3501_v58  ;;  %vm324_vm11 = vcmask 588800   ;;  %vm3502_vm13 = vmmov 1   ;;  %s3503_s23 = smov 11   ;;  %s3504_s24 = smov 117  }
  0x12   :  { %3028 = vset.pattern.permute.xlu1 %v3501_v58  ;;  %vm2676_vm14 = vmpackc.low %vm3502_vm13, %vm2675_vm12  ;;  %s3505_s25 = smov 106   ;;  %s3506_s26 = smov 118   ;;  %vm875_vm12 = vcmask 965632  }
  0x13   :  { %vm2684_vm15 = vmpackc.low %vm3502_vm13, %vm93_vm1  ;;  %s3507_s27 = smov 116   ;;  %s3508_s28 = smov 107  }
  0x14   :  { %s3509_s5 = smov 7   ;;  %s3510_s6 = smov 120  }
  0x15   :  { %s3511_s7 = smov 115   ;;  %s3512_s8 = smov 122  }
  0x16   :  { %s3514_s10 = smov 114  }
  0x17   :  { %2807 = vrot.lane.b32.xlu0 %v2806_v8, %s3492_s9  ;;  %s3513_s9 = smov 121  }
  0x81   :  { %v2803_v9 = vpop.permute.xlu0 %2802 }
  0x82   :  { %v2805_v10 = vunpack.i.h.bf16 %v2803_v9  ;;  %v3564_v11 = vunpack.i.l.bf16 %v2803_v9  ;;  %v2813_v17 = vpop.permute.xlu1 %2812 }
  0x83   :  { %v2814_v18 = vunpack.i.l.bf16 %v2813_v17  ;;  %v2815_v24 = vunpack.i.h.bf16 %v2813_v17 }
  0x84   :  { %v3568_v14 = vsel %vm80_vm0, %v3564_v11, %v2805_v10  ;;  %v92_v22 = vsel %vm80_vm0, 0.0, %v3564_v11 }
  0x89   :  { %v2808_v12 = vpop.permute.xlu0 %2807 }
  0x8a   :  { %v2809_v13 = vunpack.i.l.bf16 %v2808_v12  ;;  %v2810_v19 = vunpack.i.h.bf16 %v2808_v12 }
  0x8c   :  { %v3571_v15 = vsel %vm80_vm0, %v2805_v10, %v2809_v13  ;;  %v3579_v20 = vsel %vm80_vm0, %v2810_v19, %v2814_v18  ;;  %v3595_v25 = vsel %vm80_vm0, %v2815_v24, %v2810_v19  ;;  %v3598_v26 = vsel %vm80_vm0, %v2809_v13, %v2815_v24 }
  0x8d   :  { %v2831_v16 = vpack.i.bf16 %v3571_v15, %v3568_v14  ;;  %v94_v21 = vsel %vm93_vm1, %v3579_v20, 0.0  ;;  %v2906_v27 = vpack.i.bf16 %v3595_v25, %v3598_v26  ;;  %vm593_vm0 = vcmask 64512  }
  0x8e   :  { %v2866_v23 = vpack.i.bf16 %v94_v21, %v92_v22  ;;  %vm848_vm1 = vcmask 89088  }
  0x8f   :  { %2832 = vrot.lane.b32.xlu0 %v2831_v16, %s3493_s0  ;;  %2822 = vrot.lane.b32.xlu2 %v2831_v16, %s3494_s14 }
  0x90   :  { %2817 = vrot.lane.b32.xlu1 %v2831_v16, %s3495_s15 }
  0x97   :  { %2842 = vrot.lane.b32.xlu0 %v2831_v16, %s3496_s16  ;;  %2827 = vrot.lane.b32.xlu2 %v2831_v16, %s3497_s17 }
  0x98   :  { %2837 = vrot.lane.b32.xlu1 %v2831_v16, %s3498_s18 }
  0x9f   :  { %2867 = vrot.lane.b32.xlu0 %v2866_v23, %s3497_s17  ;;  %2857 = vrot.lane.b32.xlu2 %v2866_v23, %s3495_s15 }
  0xa0   :  { %2847 = vrot.lane.b32.xlu1 %v2831_v16, %s3499_s19 }
  0xa7   :  { %2877 = vrot.lane.b32.xlu0 %v2866_v23, %s3498_s18  ;;  %2862 = vrot.lane.b32.xlu2 %v2866_v23, %s3494_s14 }
  0xa8   :  { %2852 = vrot.lane.b32.xlu1 %v2831_v16, %s3500_s20 }
  0xaf   :  { %2892 = vrot.lane.b32.xlu0 %v2866_v23, %s3500_s20  ;;  %2872 = vrot.lane.b32.xlu2 %v2866_v23, %s3493_s0 }
  0xb0   :  { %2882 = vrot.lane.b32.xlu1 %v2866_v23, %s3496_s16 }
  0xb7   :  { %2907 = vrot.lane.b32.xlu0 %v2906_v27, %s3497_s17  ;;  %2887 = vrot.lane.b32.xlu2 %v2866_v23, %s3499_s19 }
  0xb8   :  { %2897 = vrot.lane.b32.xlu1 %v2906_v27, %s3495_s15 }
  0xbf   :  { %2922 = vrot.lane.b32.xlu0 %v2906_v27, %s3496_s16  ;;  %2902 = vrot.lane.b32.xlu2 %v2906_v27, %s3494_s14 }
  0xc0   :  { %2912 = vrot.lane.b32.xlu1 %v2906_v27, %s3493_s0 }
  0xc7   :  { %2917 = vrot.lane.b32.xlu2 %v2906_v27, %s3498_s18  ;;  %321 = vperm.xlu0 %2936, %v61_v59  }
  0xc8   :  { %2927 = vrot.lane.b32.xlu1 %v2906_v27, %s3499_s19 }
  0xcf   :  { %2932 = vrot.lane.b32.xlu2 %v2906_v27, %s3500_s20 }
  0xe9   :  { %v3608_v28 = vpop.permute.xlu2 %2822 }
  0xea   :  { %v2825_v41 = vunpack.i.h.bf16 %v3608_v28  ;;  %v2824_v42 = vunpack.i.l.bf16 %v3608_v28 }
  0xec   :  { %v231_v52 = vsel %vm229_vm5, %v2824_v42, %v2825_v41 }
  0xf1   :  { %v3610_v29 = vpop.permute.xlu2 %2827 }
  0xf2   :  { %v2830_v36 = vunpack.i.h.bf16 %v3610_v29  ;;  %v2829_v37 = vunpack.i.l.bf16 %v3610_v29 }
  0xf4   :  { %v255_v47 = vsel %vm253_vm3, %v2829_v37, %v2830_v36 }
  0xf5   :  { %v308_v55 = vpack.c.bf16 %v255_v47, %v231_v52 }
  0xf9   :  { %v2858_v30 = vpop.permute.xlu2 %2857 }
  0xfa   :  { %v2859_v33 = vunpack.i.l.bf16 %v2858_v30  ;;  %v3673_v13 = vunpack.i.h.bf16 %v2858_v30 }
  0xfc   :  { %v318_v30 = vpack.c.bf16 %v3673_v13, %v3673_v13 }
 0x101   :  { %v3612_v31 = vpop.permute.xlu0 %2832  ;;  %v3620_v38 = vpop.permute.xlu2 %2862 }
 0x102   :  { %v3614_v32 = vpop.permute.xlu1 %2817  ;;  %v2835_v48 = vunpack.i.h.bf16 %v3612_v31  ;;  %v2834_v49 = vunpack.i.l.bf16 %v3612_v31  ;;  %v2864_v62 = vunpack.i.l.bf16 %v3620_v38 }
 0x103   :  { %v2820_v34 = vunpack.i.h.bf16 %v3614_v32  ;;  %v2819_v35 = vunpack.i.l.bf16 %v3614_v32 }
 0x104   :  { %v183_v56 = vsel %vm181_vm6, %v2834_v49, %v2835_v48  ;;  %v230_v6 = vsel %vm229_vm5, %v2864_v62, %v2824_v42 }
 0x105   :  { %v278_v39 = vsel %vm277_vm2, %v2859_v33, %v2819_v35  ;;  %v279_v40 = vsel %vm277_vm2, %v2819_v35, %v2820_v34  ;;  %v59_v33 = vld [vmem:[#allocation2] sm:$0xff] }
 0x106   :  { %v313_v43 = vpack.c.bf16 %v278_v39, %v278_v39  ;;  %v314_v44 = vpack.c.bf16 %v279_v40, %v279_v40  ;;  %v3694_v42 = vpack.c.bf16 %v59_v33, %v59_v33 }
 0x108   :  { %v330_v45 = vsel %vm328_vm4, %v313_v43, 0  ;;  %v333_v46 = vsel %vm328_vm4, %v314_v44, 0  ;;  %v345_v43 = vsel %vm328_vm4, %v318_v30, 0  ;;  %v2865_v44 = vunpack.i.h.bf16 %v3620_v38 }
 0x109   :  { %350 = vmatpush.bf16.msra.mxu0 %v330_v45  ;;  %363 = vmatpush.bf16.msra.mxu1 %v333_v46  ;;  %v3635_v50 = vpop.permute.xlu0 %2842  ;;  %v3653_v60 = vpop.permute.xlu2 %2872 }
 0x10a   :  { %v3637_v51 = vpop.permute.xlu1 %2837  ;;  %v2845_v63 = vunpack.i.h.bf16 %v3635_v50  ;;  %v2844_v0 = vunpack.i.l.bf16 %v3635_v50  ;;  %v2874_v16 = vunpack.i.l.bf16 %v3653_v60 }
 0x10b   :  { %v2840_v53 = vunpack.i.h.bf16 %v3637_v51  ;;  %v2839_v54 = vunpack.i.l.bf16 %v3637_v51 }
 0x10c   :  { %v135_v9 = vsel %vm133_vm8, %v2844_v0, %v2845_v63  ;;  %v182_v24 = vsel %vm181_vm6, %v2874_v16, %v2834_v49 }
 0x10d   :  { %364 = vmatpush.bf16.msra.mxu1 %v308_v55  ;;  %v207_v57 = vsel %vm4451_vm7, %v2839_v54, %v2840_v53 }
 0x10e   :  { %v302_v61 = vpack.c.bf16 %v207_v57, %v183_v56  ;;  %v2875_v56 = vunpack.i.h.bf16 %v3653_v60 }
 0x111   :  { %365 = vmatpush.bf16.msra.mxu1 %v302_v61  ;;  %v3658_v1 = vpop.permute.xlu0 %2867  ;;  %v3676_v17 = vpop.permute.xlu2 %2887 }
 0x112   :  { %v2869_v2 = vunpack.i.l.bf16 %v3658_v1  ;;  %v3661_v3 = vpop.permute.xlu1 %2847  ;;  %v2870_v40 = vunpack.i.h.bf16 %v3658_v1  ;;  %v2889_v45 = vunpack.i.l.bf16 %v3676_v17 }
 0x113   :  { %v2850_v4 = vunpack.i.h.bf16 %v3661_v3  ;;  %v2849_v5 = vunpack.i.l.bf16 %v3661_v3 }
 0x114   :  { %v254_v7 = vsel %vm253_vm3, %v2869_v2, %v2829_v37  ;;  %v312_v55 = vpack.c.bf16 %v2870_v40, %v2865_v44 }
 0x115   :  { %v307_v8 = vpack.c.bf16 %v254_v7, %v230_v6  ;;  %v159_v10 = vsel %vm157_vm9, %v2849_v5, %v2850_v4  ;;  %v158_v58 = vsel %vm157_vm9, %v2889_v45, %v2849_v5  ;;  %v2890_v6 = vunpack.i.h.bf16 %v3676_v17 }
 0x116   :  { %v296_v12 = vpack.c.bf16 %v159_v10, %v135_v9 }
 0x117   :  { %351 = vmatpush.bf16.msra.mxu0 %v307_v8 }
 0x118   :  { %366 = vmatpush.bf16.msra.mxu1 %v296_v12 }
 0x119   :  { %v3678_v18 = vpop.permute.xlu0 %2877  ;;  %v2903_v47 = vpop.permute.xlu2 %2902 }
 0x11a   :  { %v2879_v19 = vunpack.i.l.bf16 %v3678_v18  ;;  %v3681_v21 = vpop.permute.xlu1 %2852  ;;  %v2905_v16 = vunpack.i.h.bf16 %v2903_v47  ;;  %v2904_v33 = vunpack.i.l.bf16 %v2903_v47 }
 0x11b   :  { %v2855_v22 = vunpack.i.h.bf16 %v3681_v21  ;;  %v2854_v23 = vunpack.i.l.bf16 %v3681_v21  ;;  %v459_v21 = vld [vmem:[#allocation4 + $0xe0] sm:$0xff] }
 0x11c   :  { %v206_v27 = vsel %vm4451_vm7, %v2879_v19, %v2839_v54  ;;  %v234_v29 = vsel %vm229_vm5, %v2905_v16, %v2865_v44 }
 0x11d   :  { %v301_v35 = vpack.c.bf16 %v206_v27, %v182_v24  ;;  %v111_v37 = vsel %vm4452_vm10, %v2854_v23, %v2855_v22 }
 0x11e   :  { %v290_v39 = vpack.c.bf16 %v111_v37, %v3568_v14  ;;  %v2880_v14 = vunpack.i.h.bf16 %v3678_v18 }
 0x11f   :  { %352 = vmatpush.bf16.msra.mxu0 %v301_v35 }
 0x120   :  { %367 = vmatpush.bf16.msra.mxu1 %v290_v39  ;;  %v306_v62 = vpack.c.bf16 %v2880_v14, %v2875_v56 }
 0x121   :  { %v3699_v46 = vpop.permute.xlu0 %2892  ;;  %v2918_v19 = vpop.permute.xlu2 %2917 }
 0x122   :  { %v3701_v49 = vpop.permute.xlu1 %2882  ;;  %v2894_v52 = vunpack.i.l.bf16 %v3699_v46  ;;  %v2895_v8 = vunpack.i.h.bf16 %v3699_v46  ;;  %v2920_v45 = vunpack.i.h.bf16 %v2918_v19  ;;  %v525_v46 = vld [vmem:[#allocation4 + $0x2f0] sm:$0xff] }
 0x123   :  { %v2884_v54 = vunpack.i.l.bf16 %v3701_v49  ;;  %2680 = vmatmul.msk.bf16.vlgmr.msra.gmra.mxu1 %vm324_vm11, %v3694_v42  ;;  %v2885_v61 = vunpack.i.h.bf16 %v3701_v49 }
 0x124   :  { %415 = vmatpush.bf16.msrb.mxu1 %v345_v43  ;;  %v110_v2 = vsel %vm4452_vm10, %v2894_v52, %v2854_v23  ;;  %v2685_v43 = vpack.c.bf16 %v2895_v8, %v3579_v20  ;;  %v2919_v52 = vunpack.i.l.bf16 %v2918_v19  ;;  %v210_v28 = vsel %vm4451_vm7, %v2920_v45, %v2880_v14 }
 0x125   :  { %v134_v57 = vsel %vm133_vm8, %v2884_v54, %v2844_v0  ;;  %v2677_v5 = vpack.c.bf16 %v110_v2, %v3564_v11  ;;  %v300_v12 = vpack.c.bf16 %v2890_v6, %v2885_v61 }
 0x126   :  { %v295_v59 = vpack.c.bf16 %v158_v58, %v134_v57  ;;  %v232_v57 = vsel %vm229_vm5, %v2825_v41, %v2904_v33  ;;  %v233_v58 = vsel %vm229_vm5, %v2904_v33, %v2905_v16  ;;  %v208_v1 = vsel %vm4451_vm7, %v2840_v53, %v2919_v52  ;;  %v493_v33 = vld [vmem:[#allocation4 + $0x1f0] sm:$0xff] }
 0x127   :  { %vm906_vm5 = vcmask 875520  }
 0x128   :  { %416 = vmatpush.bf16.msrb.mxu1 %v312_v55  ;;  %353 = vmatpush.bf16.msra.mxu0 %v295_v59 }
 0x129   :  { %v2908_v7 = vpop.permute.xlu0 %2907 }
 0x12a   :  { %v2898_v0 = vpop.permute.xlu1 %2897  ;;  %v2909_v23 = vunpack.i.l.bf16 %v2908_v7  ;;  %v2910_v24 = vunpack.i.h.bf16 %v2908_v7  ;;  %v209_v7 = vsel %vm4451_vm7, %v2919_v52, %v2920_v45  ;;  %v485_v45 = vld [vmem:[#allocation4 + $0x1b0] sm:$0xff]  ;;  %v451_v52 = vld [vmem:[#allocation4 + $0xa0] sm:$0xff] }
 0x12b   :  { %v2900_v9 = vunpack.i.h.bf16 %v2898_v0  ;;  %v2899_v10 = vunpack.i.l.bf16 %v2898_v0  ;;  %v2933_v0 = vpop.permute.xlu2 %2932 }
 0x12c   :  { %417 = vmatpush.bf16.msrb.mxu1 %v306_v62  ;;  %2678 = vmatpush.bf16.msk.msra.mxu0 %vm2676_vm14, %v2677_v5  ;;  %v256_v47 = vsel %vm253_vm3, %v2830_v36, %v2909_v23  ;;  %v257_v20 = vsel %vm253_vm3, %v2909_v23, %v2910_v24  ;;  %v258_v54 = vsel %vm253_vm3, %v2910_v24, %v2870_v40  ;;  %vm914_vm3 = vcmask 867328   ;;  %vm3923_vm14 = vmneg %vm848_vm1 }
 0x12d   :  { %v280_v27 = vsel %vm277_vm2, %v2820_v34, %v2899_v10  ;;  %v281_v11 = vsel %vm277_vm2, %v2899_v10, %v2900_v9  ;;  %v282_v30 = vsel %vm277_vm2, %v2900_v9, %v3673_v13  ;;  %v309_v62 = vpack.c.bf16 %v256_v47, %v232_v57  ;;  %v519_v47 = vld [vmem:[#allocation4 + $0x2c0] sm:$0xff] }
 0x12e   :  { %v315_v35 = vpack.c.bf16 %v280_v27, %v280_v27  ;;  %v316_v37 = vpack.c.bf16 %v281_v11, %v281_v11  ;;  %v317_v39 = vpack.c.bf16 %v282_v30, %v282_v30  ;;  %v310_v40 = vpack.c.bf16 %v257_v20, %v233_v58  ;;  %v551_v20 = vld [vmem:[#allocation4 + $0x3c0] sm:$0xff]  ;;  %v445_v58 = vld [vmem:[#allocation4 + $0x70] sm:$0xff] }
 0x12f   :  { %2679 = vmatmul.msk.bf16.vlgmr.msra.gmra.mxu0 %vm324_vm11, %v3694_v42  ;;  %v311_v2 = vpack.c.bf16 %v258_v54, %v234_v29  ;;  %v2935_v10 = vunpack.i.h.bf16 %v2933_v0  ;;  %v481_v54 = vld [vmem:[#allocation4 + $0x190] sm:$0xff]  ;;  %v479_v57 = vld [vmem:[#allocation4 + $0x180] sm:$0xff]  ;;  %vm853_vm2 = vcmask 678912  }
 0x130   :  { %418 = vmatpush.bf16.msrb.mxu1 %v300_v12  ;;  %v336_v32 = vsel %vm328_vm4, %v315_v35, 0  ;;  %v339_v34 = vsel %vm328_vm4, %v316_v37, 0  ;;  %v342_v13 = vsel %vm328_vm4, %v317_v39, 0  ;;  %v487_v35 = vld [vmem:[#allocation4 + $0x1c0] sm:$0xff]  ;;  %v453_v37 = vld [vmem:[#allocation4 + $0xb0] sm:$0xff] }
 0x131   :  { %376 = vmatpush.bf16.msra.mxu2 %v336_v32  ;;  %389 = vmatpush.bf16.msra.mxu3 %v339_v34  ;;  %v2923_v41 = vpop.permute.xlu0 %2922  ;;  %v523_v39 = vld [vmem:[#allocation4 + $0x2e0] sm:$0xff]  ;;  %v553_v32 = vld [vmem:[#allocation4 + $0x3d0] sm:$0xff] }
 0x132   :  { %402 = vmatpush.bf16.msrb.mxu0 %v342_v13  ;;  %v2913_v55 = vpop.permute.xlu1 %2912  ;;  %v2925_v5 = vunpack.i.h.bf16 %v2923_v41  ;;  %v2924_v9 = vunpack.i.l.bf16 %v2923_v41  ;;  %v483_v34 = vld [vmem:[#allocation4 + $0x1a0] sm:$0xff]  ;;  %v449_v13 = vld [vmem:[#allocation4 + $0x90] sm:$0xff] }
 0x133   :  { %v2915_v36 = vunpack.i.h.bf16 %v2913_v55  ;;  %v2914_v59 = vunpack.i.l.bf16 %v2913_v55  ;;  %v447_v55 = vld [vmem:[#allocation4 + $0x80] sm:$0xff]  ;;  %v477_v29 = vld [vmem:[#allocation4 + $0x170] sm:$0xff] }
 0x134   :  { %2686 = vmatpush.bf16.msk.msrb.mxu1 %vm2684_vm15, %v2685_v43  ;;  %v136_v60 = vsel %vm133_vm8, %v2845_v63, %v2924_v9  ;;  %v138_v24 = vsel %vm133_vm8, %v2925_v5, %v2885_v61  ;;  %v461_v61 = vld [vmem:[#allocation4 + $0xf0] sm:$0xff]  ;;  %v555_v43 = vld [vmem:[#allocation4 + $0x3e0] sm:$0xff]  ;;  %vm3931_vm15 = vmpackc.low %vm3502_vm13, %vm853_vm2 }
 0x135   :  { %377 = vmatpush.bf16.msra.mxu2 %v309_v62  ;;  %v184_v38 = vsel %vm181_vm6, %v2835_v48, %v2914_v59  ;;  %v185_v51 = vsel %vm181_vm6, %v2914_v59, %v2915_v36  ;;  %v186_v53 = vsel %vm181_vm6, %v2915_v36, %v2875_v56  ;;  %390 = vmatpush.bf16.msra.mxu3 %v310_v40  ;;  %v2934_v48 = vunpack.i.l.bf16 %v2933_v0  ;;  %v443_v36 = vld [vmem:[#allocation4 + $0x60] sm:$0xff]  ;;  %v441_v62 = vld [vmem:[#allocation4 + $0x50] sm:$0xff] }
 0x136   :  { %403 = vmatpush.bf16.msrb.mxu0 %v311_v2  ;;  %v303_v18 = vpack.c.bf16 %v208_v1, %v184_v38  ;;  %v304_v44 = vpack.c.bf16 %v209_v7, %v185_v51  ;;  %v305_v14 = vpack.c.bf16 %v210_v28, %v186_v53  ;;  %v137_v56 = vsel %vm133_vm8, %v2924_v9, %v2925_v5  ;;  %v475_v59 = vld [vmem:[#allocation4 + $0x160] sm:$0xff]  ;;  %v473_v1 = vld [vmem:[#allocation4 + $0x150] sm:$0xff] }
 0x137   :  { %2687 = vmatmul.msk.bf16.vlgmr.msrb.gmra.mxu1 %vm324_vm11, %v3694_v42  ;;  %v112_v63 = vsel %vm4452_vm10, %v2855_v22, %v2934_v48  ;;  %v113_v3 = vsel %vm4452_vm10, %v2934_v48, %v2935_v10  ;;  %v491_v22 = vld [vmem:[#allocation4 + $0x1e0] sm:$0xff]  ;;  %v437_v7 = vld [vmem:[#allocation4 + $0x30] sm:$0xff]  ;;  %vm883_vm6 = vcmask 957440  }
 0x138   :  { %v291_v17 = vpack.c.bf16 %v112_v63, %v3571_v15  ;;  %v292_v49 = vpack.c.bf16 %v113_v3, %v3598_v26  ;;  %v457_v15 = vld [vmem:[#allocation4 + $0xd0] sm:$0xff]  ;;  %v455_v26 = vld [vmem:[#allocation4 + $0xc0] sm:$0xff] }
 0x139   :  { %378 = vmatpush.bf16.msra.mxu2 %v303_v18  ;;  %391 = vmatpush.bf16.msra.mxu3 %v304_v44  ;;  %v439_v40 = vld [vmem:[#allocation4 + $0x40] sm:$0xff]  ;;  %v469_v28 = vld [vmem:[#allocation4 + $0x130] sm:$0xff] }
 0x13a   :  { %404 = vmatpush.bf16.msrb.mxu0 %v305_v14  ;;  %v2928_v31 = vpop.permute.xlu1 %2927  ;;  %v471_v2 = vld [vmem:[#allocation4 + $0x140] sm:$0xff]  ;;  %v433_v51 = vld [vmem:[#allocation4 + $0x10] sm:$0xff] }
 0x13b   :  { %v2930_v12 = vunpack.i.h.bf16 %v2928_v31  ;;  %v2929_v16 = vunpack.i.l.bf16 %v2928_v31  ;;  %v435_v41 = vld [vmem:[#allocation4 + $0x20] sm:$0xff]  ;;  %v589_v18 = vld [vmem:[#allocation4 + $0x4f0] sm:$0xff] }
 0x13c   :  { %v467_v38 = vld [vmem:[#allocation4 + $0x120] sm:$0xff]  ;;  %v585_v14 = vld [vmem:[#allocation4 + $0x4d0] sm:$0xff] }
 0x13d   :  { %v160_v19 = vsel %vm157_vm9, %v2850_v4, %v2929_v16  ;;  %v161_v23 = vsel %vm157_vm9, %v2929_v16, %v2930_v12  ;;  %v162_v27 = vsel %vm157_vm9, %v2930_v12, %v2890_v6  ;;  %v114_v4 = vsel %vm4452_vm10, %v2935_v10, %v2895_v8  ;;  %v557_v8 = vld [vmem:[#allocation4 + $0x3f0] sm:$0xff]  ;;  %v431_v53 = vld [vmem:[#allocation4] sm:$0xff] }
 0x13e   :  { %v297_v11 = vpack.c.bf16 %v160_v19, %v136_v60  ;;  %v298_v50 = vpack.c.bf16 %v161_v23, %v137_v56  ;;  %v299_v30 = vpack.c.bf16 %v162_v27, %v138_v24  ;;  %v293_v6 = vpack.c.bf16 %v114_v4, %v3595_v25  ;;  %v489_v25 = vld [vmem:[#allocation4 + $0x1d0] sm:$0xff]  ;;  %657 = vmatpush.msra.mxu1 %v557_v8  ;;  %v587_v44 = vld [vmem:[#allocation4 + $0x4e0] sm:$0xff] }
 0x13f   :  { %v583_v0 = vld [vmem:[#allocation4 + $0x4c0] sm:$0xff]  ;;  %v581_v5 = vld [vmem:[#allocation4 + $0x4b0] sm:$0xff]  ;;  %vm4450_vm9 = vcmask 949248  }
 0x140   :  { %379 = vmatpush.bf16.msra.mxu2 %v297_v11  ;;  %392 = vmatpush.bf16.msra.mxu3 %v298_v50  ;;  %v579_v9 = vld [vmem:[#allocation4 + $0x4a0] sm:$0xff]  ;;  %v577_v31 = vld [vmem:[#allocation4 + $0x490] sm:$0xff] }
 0x141   :  { %405 = vmatpush.bf16.msrb.mxu0 %v299_v30  ;;  %658 = vmatpush.msra.mxu1 %v555_v43  ;;  %v465_v10 = vld [vmem:[#allocation4 + $0x110] sm:$0xff]  ;;  %v575_v16 = vld [vmem:[#allocation4 + $0x480] sm:$0xff] }
 0x142   :  { %v517_v48 = vld [vmem:[#allocation4 + $0x2b0] sm:$0xff]  ;;  %v463_v60 = vld [vmem:[#allocation4 + $0x100] sm:$0xff] }
 0x143   :  { %659 = vmatpush.msra.mxu1 %v553_v32  ;;  %v549_v12 = vld [vmem:[#allocation4 + $0x3b0] sm:$0xff]  ;;  %v515_v56 = vld [vmem:[#allocation4 + $0x2a0] sm:$0xff] }
 0x144   :  { %380 = vmatpush.bf16.msra.mxu2 %v291_v17  ;;  %393 = vmatpush.bf16.msra.mxu3 %v292_v49  ;;  %v547_v19 = vld [vmem:[#allocation4 + $0x3a0] sm:$0xff]  ;;  %v573_v23 = vld [vmem:[#allocation4 + $0x470] sm:$0xff] }
 0x145   :  { %406 = vmatpush.bf16.msrb.mxu0 %v293_v6  ;;  %660 = vmatpush.msra.mxu1 %v551_v20  ;;  %v591_v24 = vld [vmem:[#allocation4 + $0x500] sm:$0xff]  ;;  %v513_v27 = vld [vmem:[#allocation4 + $0x290] sm:$0xff]  ;;  %v524_v20 = vld [vmem:[#allocation4 + $0x2e8] sm:$0xff] }
 0x146   :  { %v545_v11 = vld [vmem:[#allocation4 + $0x390] sm:$0xff]  ;;  %v571_v50 = vld [vmem:[#allocation4 + $0x460] sm:$0xff] }
 0x147   :  { %2681 = vmatmul.msk.bf16.vlgmr.msra.gmra.mxu2 %vm324_vm11, %v3694_v42  ;;  %2682 = vmatmul.msk.bf16.vlgmr.msra.gmra.mxu3 %vm324_vm11, %v3694_v42  ;;  %v511_v30 = vld [vmem:[#allocation4 + $0x280] sm:$0xff]  ;;  %v569_v3 = vld [vmem:[#allocation4 + $0x450] sm:$0xff] }
 0x148   :  { %597 = vmatpush.msrb.mxu2 %v461_v61  ;;  %617 = vmatpush.msrb.mxu3 %v493_v33  ;;  %v543_v63 = vld [vmem:[#allocation4 + $0x380] sm:$0xff]  ;;  %v509_v4 = vld [vmem:[#allocation4 + $0x270] sm:$0xff] }
 0x149   :  { %2683 = vmatmul.msk.bf16.vlgmr.msrb.gmra.mxu0 %vm324_vm11, %v3694_v42  ;;  %v521_v42 = vld [vmem:[#allocation4 + $0x2d0] sm:$0xff]  ;;  %661 = vmatpush.msra.mxu1 %v549_v12  ;;  %v567_v49 = vld [vmem:[#allocation4 + $0x440] sm:$0xff]  ;;  %v452_v12 = vld [vmem:[#allocation4 + $0xa8] sm:$0xff] }
 0x14a   :  { %598 = vmatpush.msrb.mxu2 %v459_v21  ;;  %618 = vmatpush.msrb.mxu3 %v491_v22  ;;  %v541_v17 = vld [vmem:[#allocation4 + $0x370] sm:$0xff]  ;;  %v507_v61 = vld [vmem:[#allocation4 + $0x260] sm:$0xff] }
 0x14b   :  { %637 = vmatpush.msra.mxu0 %v525_v46  ;;  %662 = vmatpush.msra.mxu1 %v547_v19  ;;  %v539_v6 = vld [vmem:[#allocation4 + $0x360] sm:$0xff]  ;;  %v565_v33 = vld [vmem:[#allocation4 + $0x430] sm:$0xff] }
 0x14c   :  { %599 = vmatpush.msrb.mxu2 %v457_v15  ;;  %619 = vmatpush.msrb.mxu3 %v489_v25  ;;  %v505_v21 = vld [vmem:[#allocation4 + $0x250] sm:$0xff]  ;;  %v563_v15 = vld [vmem:[#allocation4 + $0x420] sm:$0xff] }
 0x14d   :  { %638 = vmatpush.msra.mxu0 %v523_v39  ;;  %663 = vmatpush.msra.mxu1 %v545_v11  ;;  %v537_v22 = vld [vmem:[#allocation4 + $0x350] sm:$0xff]  ;;  %v503_v25 = vld [vmem:[#allocation4 + $0x240] sm:$0xff]  ;;  %v472_v11 = vld [vmem:[#allocation4 + $0x148] sm:$0xff] }
 0x14e   :  { %600 = vmatpush.msrb.mxu2 %v455_v26  ;;  %620 = vmatpush.msrb.mxu3 %v487_v35  ;;  %v535_v26 = vld [vmem:[#allocation4 + $0x340] sm:$0xff]  ;;  %v561_v46 = vld [vmem:[#allocation4 + $0x410] sm:$0xff] }
 0x14f   :  { %639 = vmatpush.msra.mxu0 %v521_v42  ;;  %664 = vmatpush.msra.mxu1 %v543_v63  ;;  %v501_v8 = vld [vmem:[#allocation4 + $0x230] sm:$0xff]  ;;  %v499_v39 = vld [vmem:[#allocation4 + $0x220] sm:$0xff] }
 0x150   :  { %601 = vmatpush.msrb.mxu2 %v453_v37  ;;  %621 = vmatpush.msrb.mxu3 %v485_v45  ;;  %v533_v35 = vld [vmem:[#allocation4 + $0x330] sm:$0xff]  ;;  %v559_v37 = vld [vmem:[#allocation4 + $0x400] sm:$0xff] }
 0x151   :  { %640 = vmatpush.msra.mxu0 %v519_v47  ;;  %665 = vmatpush.msra.mxu1 %v541_v17  ;;  %v531_v43 = vld [vmem:[#allocation4 + $0x320] sm:$0xff]  ;;  %v497_v45 = vld [vmem:[#allocation4 + $0x210] sm:$0xff]  ;;  %v492_v47 = vld [vmem:[#allocation4 + $0x1e8] sm:$0xff] }
 0x152   :  { %602 = vmatpush.msrb.mxu2 %v451_v52  ;;  %622 = vmatpush.msrb.mxu3 %v483_v34  ;;  %v529_v52 = vld [vmem:[#allocation4 + $0x310] sm:$0xff]  ;;  %v495_v42 = vld [vmem:[#allocation4 + $0x200] sm:$0xff]  ;;  %v494_v34 = vld [vmem:[#allocation4 + $0x1f8] sm:$0xff] }
 0x153   :  { %641 = vmatpush.msra.mxu0 %v517_v48  ;;  %666 = vmatpush.msra.mxu1 %v539_v6  ;;  %v527_v32 = vld [vmem:[#allocation4 + $0x300] sm:$0xff] }
 0x154   :  { %603 = vmatpush.msrb.mxu2 %v449_v13  ;;  %623 = vmatpush.msrb.mxu3 %v481_v54  ;;  %v526_v13 = vld [vmem:[#allocation4 + $0x2f8] sm:$0xff]  ;;  %v3806_v54 = vpop.permute.xlu0 %321 }
 0x155   :  { %642 = vmatpush.msra.mxu0 %v515_v56  ;;  %667 = vmatpush.msra.mxu1 %v537_v22  ;;  %v474_v56 = vld [vmem:[#allocation4 + $0x158] sm:$0xff]  ;;  %v444_v22 = vld [vmem:[#allocation4 + $0x68] sm:$0xff] }
 0x156   :  { %604 = vmatpush.msrb.mxu2 %v447_v55  ;;  %624 = vmatpush.msrb.mxu3 %v479_v57  ;;  %v490_v55 = vld [vmem:[#allocation4 + $0x1d8] sm:$0xff] }
 0x157   :  { %643 = vmatpush.msra.mxu0 %v513_v27  ;;  %668 = vmatpush.msra.mxu1 %v535_v26  ;;  %v522_v57 = vld [vmem:[#allocation4 + $0x2d8] sm:$0xff]  ;;  %v500_v26 = vld [vmem:[#allocation4 + $0x228] sm:$0xff] }
 0x158   :  { %605 = vmatpush.msrb.mxu2 %v445_v58  ;;  %625 = vmatpush.msrb.mxu3 %v477_v29  ;;  %v488_v29 = vld [vmem:[#allocation4 + $0x1c8] sm:$0xff]  ;;  %v506_v27 = vld [vmem:[#allocation4 + $0x258] sm:$0xff] }
 0x159   :  { %644 = vmatpush.msra.mxu0 %v511_v30  ;;  %669 = vmatpush.msra.mxu1 %v533_v35  ;;  %v556_v30 = vld [vmem:[#allocation4 + $0x3e8] sm:$0xff]  ;;  %v466_v35 = vld [vmem:[#allocation4 + $0x118] sm:$0xff] }
 0x15a   :  { %606 = vmatpush.msrb.mxu2 %v443_v36  ;;  %626 = vmatpush.msrb.mxu3 %v475_v59  ;;  %v520_v36 = vld [vmem:[#allocation4 + $0x2c8] sm:$0xff] }
 0x15b   :  { %645 = vmatpush.msra.mxu0 %v509_v4  ;;  %670 = vmatpush.msra.mxu1 %v531_v43  ;;  %v470_v4 = vld [vmem:[#allocation4 + $0x138] sm:$0xff]  ;;  %v548_v43 = vld [vmem:[#allocation4 + $0x3a8] sm:$0xff] }
 0x15c   :  { %607 = vmatpush.msrb.mxu2 %v441_v62  ;;  %627 = vmatpush.msrb.mxu3 %v473_v1  ;;  %v486_v62 = vld [vmem:[#allocation4 + $0x1b8] sm:$0xff] }
 0x15d   :  { %646 = vmatpush.msra.mxu0 %v507_v61  ;;  %671 = vmatpush.msra.mxu1 %v529_v52  ;;  %v554_v61 = vld [vmem:[#allocation4 + $0x3d8] sm:$0xff]  ;;  %v464_v52 = vld [vmem:[#allocation4 + $0x108] sm:$0xff] }
 0x15e   :  { %608 = vmatpush.msrb.mxu2 %v439_v40  ;;  %628 = vmatpush.msrb.mxu3 %v471_v2  ;;  %v462_v40 = vld [vmem:[#allocation4 + $0xf8] sm:$0xff] }
 0x15f   :  { %647 = vmatpush.msra.mxu0 %v505_v21  ;;  %672 = vmatpush.msra.mxu1 %v527_v32  ;;  %v518_v2 = vld [vmem:[#allocation4 + $0x2b8] sm:$0xff] }
 0x160   :  { %609 = vmatpush.msrb.mxu2 %v437_v7  ;;  %629 = vmatpush.msrb.mxu3 %v469_v28  ;;  %v484_v7 = vld [vmem:[#allocation4 + $0x1a8] sm:$0xff]  ;;  %v438_v32 = vld [vmem:[#allocation4 + $0x38] sm:$0xff] }
 0x161   :  { %648 = vmatpush.msra.mxu0 %v503_v25  ;;  %757 = vmatpush.msrb.mxu1 %v526_v13  ;;  %v460_v28 = vld [vmem:[#allocation4 + $0xe8] sm:$0xff] }
 0x162   :  { %610 = vmatpush.msrb.mxu2 %v435_v41  ;;  %630 = vmatpush.msrb.mxu3 %v467_v38  ;;  %v516_v41 = vld [vmem:[#allocation4 + $0x2a8] sm:$0xff]  ;;  %v458_v38 = vld [vmem:[#allocation4 + $0xd8] sm:$0xff] }
 0x163   :  { %649 = vmatpush.msra.mxu0 %v501_v8  ;;  %758 = vmatpush.msrb.mxu1 %v524_v20  ;;  %v468_v25 = vld [vmem:[#allocation4 + $0x128] sm:$0xff]  ;;  %v550_v8 = vld [vmem:[#allocation4 + $0x3b8] sm:$0xff] }
 0x164   :  { %611 = vmatpush.msrb.mxu2 %v433_v51  ;;  %631 = vmatpush.msrb.mxu3 %v465_v10  ;;  %v436_v13 = vld [vmem:[#allocation4 + $0x28] sm:$0xff]  ;;  %v434_v20 = vld [vmem:[#allocation4 + $0x18] sm:$0xff] }
 0x165   :  { %650 = vmatpush.msra.mxu0 %v499_v39  ;;  %759 = vmatpush.msrb.mxu1 %v522_v57  ;;  %v440_v39 = vld [vmem:[#allocation4 + $0x48] sm:$0xff] }
 0x166   :  { %612 = vmatpush.msrb.mxu2 %v431_v53  ;;  %632 = vmatpush.msrb.mxu3 %v463_v60  ;;  %v482_v53 = vld [vmem:[#allocation4 + $0x198] sm:$0xff]  ;;  %v508_v60 = vld [vmem:[#allocation4 + $0x268] sm:$0xff] }
 0x167   :  { %651 = vmatpush.msra.mxu0 %v497_v45  ;;  %760 = vmatpush.msrb.mxu1 %v520_v36  ;;  %v432_v57 = vld [vmem:[#allocation4 + $0x8] sm:$0xff]  ;;  %v538_v36 = vld [vmem:[#allocation4 + $0x358] sm:$0xff] }
 0x168   :  { %677 = vmatpush.msra.mxu2 %v589_v18  ;;  %712 = vmatpush.msra.mxu3 %v591_v24  ;;  %v514_v18 = vld [vmem:[#allocation4 + $0x298] sm:$0xff] }
 0x169   :  { %652 = vmatpush.msra.mxu0 %v495_v42  ;;  %761 = vmatpush.msrb.mxu1 %v518_v2  ;;  %v558_v24 = vld [vmem:[#allocation4 + $0x3f8] sm:$0xff]  ;;  %v496_v42 = vld [vmem:[#allocation4 + $0x208] sm:$0xff] }
 0x16a   :  { %678 = vmatpush.msra.mxu2 %v587_v44  ;;  %v456_v44 = vld [vmem:[#allocation4 + $0xc8] sm:$0xff] }
 0x16b   :  { %737 = vmatpush.msrb.mxu0 %v494_v34  ;;  %762 = vmatpush.msrb.mxu1 %v516_v41  ;;  %v546_v34 = vld [vmem:[#allocation4 + $0x398] sm:$0xff]  ;;  %v536_v2 = vld [vmem:[#allocation4 + $0x348] sm:$0xff] }
 0x16c   :  { %679 = vmatpush.msra.mxu2 %v585_v14  ;;  %v480_v14 = vld [vmem:[#allocation4 + $0x188] sm:$0xff] }
 0x16d   :  { %738 = vmatpush.msrb.mxu0 %v492_v47  ;;  %763 = vmatpush.msrb.mxu1 %v514_v18  ;;  %v544_v47 = vld [vmem:[#allocation4 + $0x388] sm:$0xff] }
 0x16e   :  { %680 = vmatpush.msra.mxu2 %v583_v0  ;;  %v512_v0 = vld [vmem:[#allocation4 + $0x288] sm:$0xff] }
 0x16f   :  { %739 = vmatpush.msrb.mxu0 %v490_v55  ;;  %764 = vmatpush.msrb.mxu1 %v512_v0  ;;  %v542_v55 = vld [vmem:[#allocation4 + $0x378] sm:$0xff] }
 0x170   :  { %681 = vmatpush.msra.mxu2 %v581_v5  ;;  %v478_v5 = vld [vmem:[#allocation4 + $0x178] sm:$0xff] }
 0x171   :  { %740 = vmatpush.msrb.mxu0 %v488_v29  ;;  %v590_v29 = vld [vmem:[#allocation4 + $0x4f8] sm:$0xff] }
 0x172   :  { %682 = vmatpush.msra.mxu2 %v579_v9  ;;  %v454_v9 = vld [vmem:[#allocation4 + $0xb8] sm:$0xff] }
 0x173   :  { %741 = vmatpush.msrb.mxu0 %v486_v62 }
 0x174   :  { %683 = vmatpush.msra.mxu2 %v577_v31  ;;  %v510_v31 = vld [vmem:[#allocation4 + $0x278] sm:$0xff] }
 0x175   :  { %742 = vmatpush.msrb.mxu0 %v484_v7  ;;  %765 = vmatpush.msrb.mxu1 %v510_v31 }
 0x176   :  { %684 = vmatpush.msra.mxu2 %v575_v16  ;;  %v476_v16 = vld [vmem:[#allocation4 + $0x168] sm:$0xff] }
 0x177   :  { %743 = vmatpush.msrb.mxu0 %v482_v53  ;;  %766 = vmatpush.msrb.mxu1 %v508_v60  ;;  %v578_v60 = vld [vmem:[#allocation4 + $0x498] sm:$0xff] }
 0x178   :  { %685 = vmatpush.msra.mxu2 %v573_v23  ;;  %v450_v23 = vld [vmem:[#allocation4 + $0x98] sm:$0xff] }
 0x179   :  { %744 = vmatpush.msrb.mxu0 %v480_v14  ;;  %767 = vmatpush.msrb.mxu1 %v506_v27  ;;  %v572_v27 = vld [vmem:[#allocation4 + $0x468] sm:$0xff] }
 0x17a   :  { %686 = vmatpush.msra.mxu2 %v571_v50  ;;  %v448_v50 = vld [vmem:[#allocation4 + $0x88] sm:$0xff] }
 0x17b   :  { %745 = vmatpush.msrb.mxu0 %v478_v5  ;;  %v582_v5 = vld [vmem:[#allocation4 + $0x4b8] sm:$0xff] }
 0x17c   :  { %687 = vmatpush.msra.mxu2 %v569_v3  ;;  %v504_v3 = vld [vmem:[#allocation4 + $0x248] sm:$0xff] }
 0x17d   :  { %746 = vmatpush.msrb.mxu0 %v476_v16  ;;  %768 = vmatpush.msrb.mxu1 %v504_v3  ;;  %v528_v16 = vld [vmem:[#allocation4 + $0x308] sm:$0xff]  ;;  %v562_v3 = vld [vmem:[#allocation4 + $0x418] sm:$0xff] }
 0x17e   :  { %688 = vmatpush.msra.mxu2 %v567_v49  ;;  %v446_v49 = vld [vmem:[#allocation4 + $0x78] sm:$0xff] }
 0x17f   :  { %747 = vmatpush.msrb.mxu0 %v474_v56  ;;  %v592_v56 = vld [vmem:[#allocation4 + $0x508] sm:$0xff] }
 0x180   :  { %689 = vmatpush.msra.mxu2 %v565_v33  ;;  %v502_v33 = vld [vmem:[#allocation4 + $0x238] sm:$0xff] }
 0x181   :  { %748 = vmatpush.msrb.mxu0 %v472_v11  ;;  %769 = vmatpush.msrb.mxu1 %v502_v33  ;;  %v570_v11 = vld [vmem:[#allocation4 + $0x458] sm:$0xff] }
 0x182   :  { %690 = vmatpush.msra.mxu2 %v563_v15  ;;  %v552_v15 = vld [vmem:[#allocation4 + $0x3c8] sm:$0xff] }
 0x183   :  { %749 = vmatpush.msrb.mxu0 %v470_v4  ;;  %770 = vmatpush.msrb.mxu1 %v500_v26  ;;  %v560_v4 = vld [vmem:[#allocation4 + $0x408] sm:$0xff] }
 0x184   :  { %691 = vmatpush.msra.mxu2 %v561_v46  ;;  %v442_v46 = vld [vmem:[#allocation4 + $0x58] sm:$0xff] }
 0x185   :  { %750 = vmatpush.msrb.mxu0 %v468_v25 }
 0x186   :  { %692 = vmatpush.msra.mxu2 %v559_v37  ;;  %v498_v37 = vld [vmem:[#allocation4 + $0x218] sm:$0xff] }
 0x187   :  { %751 = vmatpush.msrb.mxu0 %v466_v35  ;;  %771 = vmatpush.msrb.mxu1 %v498_v37 }
 0x189   :  { %752 = vmatpush.msrb.mxu0 %v464_v52  ;;  %772 = vmatpush.msrb.mxu1 %v496_v42 }
 0x1a0   :  { %v369_v58 = vpop.f32.mrf.mxu1 }
 0x1a1   :  { %v3809_v59 = vadd.f32 %v369_v58, %v3806_v54  ;;  %v540_v58 = vld [vmem:[#allocation4 + $0x368] sm:$0xff] }
 0x1a3   :  { %v426_v1 = vmax.f32 %v3809_v59, 0.0 }
 0x1a5   :  { %633 = vmatmul.f32.vlgmr.msrb.gmra.mxu3 %v426_v1 }
 0x1a6   :  { %717 = vmatpush.msrb.mxu3 %v462_v40  ;;  %v588_v40 = vld [vmem:[#allocation4 + $0x4e8] sm:$0xff] }
 0x1a8   :  { %718 = vmatpush.msrb.mxu3 %v460_v28  ;;  %v371_v51 = vpop.f32.mrf.mxu1  ;;  %v586_v28 = vld [vmem:[#allocation4 + $0x4d8] sm:$0xff] }
 0x1a9   :  { %v584_v51 = vld [vmem:[#allocation4 + $0x4c8] sm:$0xff] }
 0x1aa   :  { %719 = vmatpush.msrb.mxu3 %v458_v38  ;;  %v534_v38 = vld [vmem:[#allocation4 + $0x338] sm:$0xff] }
 0x1ac   :  { %720 = vmatpush.msrb.mxu3 %v456_v44  ;;  %v356_v10 = vpop.f32.mrf.mxu0  ;;  %v532_v44 = vld [vmem:[#allocation4 + $0x328] sm:$0xff] }
 0x1ad   :  { %v3815_v48 = vadd.f32 %v356_v10, %v3806_v54 }
 0x1ae   :  { %721 = vmatpush.msrb.mxu3 %v454_v9  ;;  %v530_v9 = vld [vmem:[#allocation4 + $0x318] sm:$0xff] }
 0x1af   :  { %v425_v19 = vmax.f32 %v3815_v48, 0.0  ;;  %v580_v48 = vld [vmem:[#allocation4 + $0x4a8] sm:$0xff] }
 0x1b0   :  { %722 = vmatpush.msrb.mxu3 %v452_v12 }
 0x1b1   :  { %613 = vmatmul.f32.vlgmr.msrb.gmra.mxu2 %v425_v19 }
 0x1b2   :  { %723 = vmatpush.msrb.mxu3 %v450_v23  ;;  %777 = vmatpush.msrb.mxu2 %v558_v24  ;;  %v574_v24 = vld [vmem:[#allocation4 + $0x478] sm:$0xff] }
 0x1b4   :  { %v421_v63 = vpop.f32.mrf.mxu1  ;;  %724 = vmatpush.msrb.mxu3 %v448_v50  ;;  %778 = vmatpush.msrb.mxu2 %v556_v30  ;;  %v358_v6 = vpop.f32.mrf.mxu0  ;;  %v568_v50 = vld [vmem:[#allocation4 + $0x448] sm:$0xff]  ;;  %v566_v30 = vld [vmem:[#allocation4 + $0x438] sm:$0xff] }
 0x1b5   :  { %v3821_v17 = vadd.f32 %v421_v63, %v3806_v54  ;;  %v564_v63 = vld [vmem:[#allocation4 + $0x428] sm:$0xff] }
 0x1b6   :  { %725 = vmatpush.msrb.mxu3 %v446_v49  ;;  %779 = vmatpush.msrb.mxu2 %v554_v61 }
 0x1b7   :  { %v430_v21 = vmax.f32 %v3821_v17, 0.0 }
 0x1b8   :  { %726 = vmatpush.msrb.mxu3 %v444_v22  ;;  %780 = vmatpush.msrb.mxu2 %v552_v15 }
 0x1b9   :  { %2688 = vmatmul.msk.f32.vlgmr.msra.gmra.mxu3 %vm593_vm0, %v430_v21 }
 0x1ba   :  { %727 = vmatpush.msrb.mxu3 %v442_v46  ;;  %781 = vmatpush.msrb.mxu2 %v550_v8 }
 0x1bc   :  { %v423_v45 = vpop.f32.mrf.mxu1  ;;  %728 = vmatpush.msrb.mxu3 %v440_v39  ;;  %782 = vmatpush.msrb.mxu2 %v548_v43 }
 0x1be   :  { %729 = vmatpush.msrb.mxu3 %v438_v32  ;;  %783 = vmatpush.msrb.mxu2 %v546_v34 }
 0x1c0   :  { %730 = vmatpush.msrb.mxu3 %v436_v13  ;;  %784 = vmatpush.msrb.mxu2 %v544_v47 }
 0x1c2   :  { %731 = vmatpush.msrb.mxu3 %v434_v20  ;;  %785 = vmatpush.msrb.mxu2 %v542_v55 }
 0x1c4   :  { %732 = vmatpush.msrb.mxu3 %v432_v57  ;;  %786 = vmatpush.msrb.mxu2 %v540_v58 }
 0x1c5   :  { %733 = vmatmul.f32.vlgmr.msrb.gmra.mxu3 %v425_v19  ;;  %v576_v19 = vld [vmem:[#allocation4 + $0x488] sm:$0xff] }
 0x1c6   :  { %v408_v62 = vpop.f32.mrf.mxu0  ;;  %797 = vmatpush.msra.mxu3 %v590_v29  ;;  %787 = vmatpush.msrb.mxu2 %v538_v36  ;;  %v841_v36 = vld [vmem:[%s4447_s2 + $0x10] sm:$0xff] }
 0x1c7   :  { %v409_v7 = vadd.f32 %v408_v62, %v3806_v54 }
 0x1c8   :  { %798 = vmatpush.msra.mxu3 %v588_v40  ;;  %788 = vmatpush.msrb.mxu2 %v536_v2 }
 0x1c9   :  { %v429_v41 = vmax.f32 %v409_v7, 0.0 }
 0x1ca   :  { %799 = vmatpush.msra.mxu3 %v586_v28  ;;  %v382_v53 = vpop.f32.mrf.mxu2  ;;  %v395_v18 = vpop.f32.mrf.mxu3  ;;  %789 = vmatpush.msrb.mxu2 %v534_v38 }
 0x1cb   :  { %693 = vmatmul.f32.vlgmr.msra.gmra.mxu2 %v429_v41  ;;  %v383_v14 = vadd.f32 %v382_v53, %v3806_v54  ;;  %v396_v0 = vadd.f32 %v395_v18, %v3806_v54  ;;  %v840_v53 = vld [vmem:[%s4447_s2 + $0x8] sm:$0xff]  ;;  %v994_v18 = vld [vmem:[#allocation4 + $0x600] sm:$0xff] }
 0x1cc   :  { %800 = vmatpush.msra.mxu3 %v584_v51  ;;  %790 = vmatpush.msrb.mxu2 %v532_v44  ;;  %v993_v44 = vld [vmem:[#allocation4 + $0x5f0] sm:$0xff] }
 0x1cd   :  { %v427_v31 = vmax.f32 %v383_v14, 0.0  ;;  %v428_v10 = vmax.f32 %v396_v0, 0.0  ;;  %v992_v14 = vld [vmem:[#allocation4 + $0x5e0] sm:$0xff] }
 0x1ce   :  { %v410_v12 = vpop.f32.mrf.mxu0  ;;  %801 = vmatpush.msra.mxu3 %v582_v5  ;;  %791 = vmatpush.msrb.mxu2 %v530_v9  ;;  %v991_v5 = vld [vmem:[#allocation4 + $0x5d0] sm:$0xff] }
 0x1cf   :  { %653 = vmatmul.f32.vlgmr.msra.gmra.mxu0 %v427_v31  ;;  %673 = vmatmul.f32.vlgmr.msra.gmra.mxu1 %v428_v10 }
 0x1d0   :  { %802 = vmatpush.msra.mxu3 %v580_v48  ;;  %792 = vmatpush.msrb.mxu2 %v528_v16 }
 0x1d2   :  { %803 = vmatpush.msra.mxu3 %v578_v60  ;;  %v384_v54 = vpop.f32.mrf.mxu2  ;;  %v397_v23 = vpop.f32.mrf.mxu3  ;;  %832 = vmatpush.msra.mxu2 %v592_v56  ;;  %v989_v56 = vld [vmem:[#allocation4 + $0x5b0] sm:$0xff] }
 0x1d3   :  { %793 = vmatmul.f32.vlgmr.msrb.gmra.mxu2 %v428_v10  ;;  %v990_v10 = vld [vmem:[#allocation4 + $0x5c0] sm:$0xff] }
 0x1d4   :  { %804 = vmatpush.msra.mxu3 %v576_v19  ;;  %1010 = vmatpush.msrb.mxu2 %v994_v18  ;;  %v998_v18 = vld [vmem:[#allocation4 + $0x640] sm:$0xff] }
 0x1d6   :  { %805 = vmatpush.msra.mxu3 %v574_v24  ;;  %1011 = vmatpush.msrb.mxu2 %v993_v44  ;;  %v988_v24 = vld [vmem:[#allocation4 + $0x5a0] sm:$0xff]  ;;  %v997_v44 = vld [vmem:[#allocation4 + $0x630] sm:$0xff] }
 0x1d7   :  { %753 = vmatmul.f32.vlgmr.msrb.gmra.mxu0 %v426_v1  ;;  %773 = vmatmul.f32.vlgmr.msrb.gmra.mxu1 %v427_v31 }
 0x1d8   :  { %806 = vmatpush.msra.mxu3 %v572_v27  ;;  %1012 = vmatpush.msrb.mxu2 %v992_v14  ;;  %v981_v14 = vld [vmem:[#allocation4 + $0x530] sm:$0xff] }
 0x1da   :  { %807 = vmatpush.msra.mxu3 %v570_v11  ;;  %1013 = vmatpush.msrb.mxu2 %v991_v5  ;;  %v987_v11 = vld [vmem:[#allocation4 + $0x590] sm:$0xff]  ;;  %v980_v5 = vld [vmem:[#allocation4 + $0x520] sm:$0xff] }
 0x1db   :  { %2689 = vmatmul.msk.f32.vlgmr.msra.gmra.mxu2 %vm593_vm0, %v430_v21  ;;  %vm3944_vm0 = vmpackc.low %vm3502_vm13, %vm3923_vm14  ;;  %vm1080_vm13 = vcmask 56320  }
 0x1dc   :  { %808 = vmatpush.msra.mxu3 %v568_v50  ;;  %1014 = vmatpush.msrb.mxu2 %v990_v10  ;;  %v979_v10 = vld [vmem:[#allocation4 + $0x510] sm:$0xff] }
 0x1de   :  { %809 = vmatpush.msra.mxu3 %v566_v30  ;;  %1015 = vmatpush.msrb.mxu2 %v989_v56 }
 0x1e0   :  { %810 = vmatpush.msra.mxu3 %v564_v63  ;;  %1016 = vmatpush.msrb.mxu2 %v988_v24 }
 0x1e2   :  { %811 = vmatpush.msra.mxu3 %v562_v3  ;;  %v986_v3 = vld [vmem:[#allocation4 + $0x580] sm:$0xff]  ;;  %1017 = vmatpush.msrb.mxu2 %v987_v11 }
 0x1e4   :  { %812 = vmatpush.msra.mxu3 %v560_v4  ;;  %1018 = vmatpush.msrb.mxu2 %v986_v3 }
 0x1e5   :  { %813 = vmatmul.f32.vlgmr.msra.gmra.mxu3 %v429_v41 }
 0x228   :  { %v634_v59 = vpop.f32.mrf.mxu3 }
 0x234   :  { %v614_v1 = vpop.f32.mrf.mxu2 }
 0x235   :  { %v635_v17 = vadd.f32 %v634_v59, %v614_v1 }
 0x23c   :  { %v714_v61 = vpop.f32.mrf.mxu3 }
 0x248   :  { %v734_v15 = vpop.f32.mrf.mxu3 }
 0x24c   :  { %v654_v49 = vpop.f32.mrf.mxu0  ;;  %v674_v33 = vpop.f32.mrf.mxu1 }
 0x24d   :  { %v655_v21 = vadd.f32 %v654_v49, %v635_v17 }
 0x24e   :  { %v694_v6 = vpop.f32.mrf.mxu2 }
 0x24f   :  { %v675_v8 = vadd.f32 %v674_v33, %v655_v21  ;;  %v985_v33 = vld [vmem:[#allocation4 + $0x570] sm:$0xff] }
 0x250   :  { %1019 = vmatpush.msrb.mxu2 %v985_v33 }
 0x251   :  { %v695_v37 = vadd.f32 %v694_v6, %v675_v8 }
 0x253   :  { %v715_v42 = vadd.f32 %v714_v61, %v695_v37 }
 0x254   :  { %v754_v22 = vpop.f32.mrf.mxu0  ;;  %v774_v46 = vpop.f32.mrf.mxu1 }
 0x255   :  { %v755_v25 = vadd.f32 %v754_v22, %v734_v15 }
 0x256   :  { %v794_v26 = vpop.f32.mrf.mxu2 }
 0x257   :  { %v775_v35 = vadd.f32 %v774_v46, %v755_v25 }
 0x259   :  { %v795_v39 = vadd.f32 %v794_v26, %v775_v35  ;;  %v984_v26 = vld [vmem:[#allocation4 + $0x560] sm:$0xff]  ;;  %v983_v35 = vld [vmem:[#allocation4 + $0x550] sm:$0xff] }
 0x25a   :  { %1020 = vmatpush.msrb.mxu2 %v984_v26 }
 0x25c   :  { %1021 = vmatpush.msrb.mxu2 %v983_v35 }
 0x25e   :  { %v834_v52 = vpop.f32.mrf.mxu2 }
 0x268   :  { %v814_v43 = vpop.f32.mrf.mxu3 }
 0x269   :  { %v815_v45 = vadd.f32 %v814_v43, %v795_v39  ;;  %v982_v43 = vld [vmem:[#allocation4 + $0x540] sm:$0xff] }
 0x26a   :  { %1022 = vmatpush.msrb.mxu2 %v982_v43 }
 0x26b   :  { %v835_v32 = vadd.f32 %v834_v52, %v815_v45 }
 0x26c   :  { %1023 = vmatpush.msrb.mxu2 %v981_v14 }
 0x26d   :  { %v2937_v34 = vpack.i.bf16 %v835_v32, %v715_v42  ;;  %v1878_v42 = vld [vmem:[#allocation2 + $0x1e8] sm:$0xff] }
 0x26e   :  { %1024 = vmatpush.msrb.mxu2 %v980_v5 }
 0x26f   :  { %2938 = vrot.lane.b32.xlu1 %v2937_v34, %s3503_s23 }
 0x270   :  { %1025 = vmatpush.msrb.mxu2 %v979_v10  ;;  %v1068_v10 = vld [vmem:[%s4447_s2 + $0x18] sm:$0xff] }
 0x2e1   :  { %v2939_v13 = vpop.permute.xlu1 %2938 }
 0x2e2   :  { %v2941_v47 = vunpack.i.h.bf16 %v2939_v13  ;;  %v3838_v20 = vunpack.i.l.bf16 %v2939_v13  ;;  %v837_v13 = vld [vmem:[#allocation2 + $0x18] sm:$0xff] }
 0x2e4   :  { %v3842_v55 = vsel %vm848_vm1, %v3838_v20, %v2941_v47  ;;  %v852_v57 = vsel %vm848_vm1, 0.0, %v3838_v20  ;;  %v838_v47 = vld [vmem:[#allocation2 + $0x30] sm:$0xff] }
 0x2e5   :  { %v854_v58 = vsel %vm853_vm2, %v3842_v55, 0.0 }
 0x2e6   :  { %v2957_v29 = vpack.i.bf16 %v854_v58, %v852_v57 }
 0x2e8   :  { %2958 = vrot.lane.b32.xlu0 %v2957_v29, %s3504_s24  ;;  %2948 = vrot.lane.b32.xlu1 %v2957_v29, %s3498_s18 }
 0x2e9   :  { %2943 = vrot.lane.b32.xlu2 %v2957_v29, %s3505_s25 }
 0x2f0   :  { %2973 = vrot.lane.b32.xlu0 %v2957_v29, %s3506_s26  ;;  %2963 = vrot.lane.b32.xlu1 %v2957_v29, %s3507_s27 }
 0x2f1   :  { %2953 = vrot.lane.b32.xlu2 %v2957_v29, %s3508_s28 }
 0x2f8   :  { %935 = vperm.xlu0 %2936, %v841_v36   ;;  %2978 = vrot.lane.b32.xlu1 %v2957_v29, %s3500_s20  ;;  %v2603_v36 = vld [vmem:[#allocation4 + $0x830] sm:$0xff] }
 0x2f9   :  { %2968 = vrot.lane.b32.xlu2 %v2957_v29, %s3496_s16 }
 0x301   :  { %930 = vperm.xlu2 %2982, %v840_v53   ;;  %v999_v53 = vld [vmem:[#allocation4 + $0x650] sm:$0xff] }
 0x343   :  { %v2944_v62 = vpop.permute.xlu2 %2943 }
 0x344   :  { %v3859_v40 = vunpack.i.h.bf16 %v2944_v62  ;;  %v2945_v2 = vunpack.i.l.bf16 %v2944_v62 }
 0x346   :  { %v3863_v7 = vsel %vm914_vm3, %v2945_v2, %v3859_v40  ;;  %v927_v28 = vpack.c.bf16 %v3859_v40, %v3859_v40  ;;  %v839_v2 = vpack.c.bf16 %v838_v47, %v837_v13 }
 0x347   :  { %v926_v41 = vpack.c.bf16 %v3863_v7, %v3863_v7 }
 0x348   :  { %v945_v38 = vsel %vm328_vm4, %v927_v28, 0  ;;  %v1003_v28 = vld [vmem:[#allocation4 + $0x690] sm:$0xff] }
 0x349   :  { %964 = vmatpush.bf16.msra.mxu0 %v945_v38  ;;  %v942_v51 = vsel %vm328_vm4, %v926_v41, 0  ;;  %v1002_v41 = vld [vmem:[#allocation4 + $0x680] sm:$0xff]  ;;  %v1001_v38 = vld [vmem:[#allocation4 + $0x670] sm:$0xff] }
 0x34a   :  { %950 = vmatpush.bf16.msra.mxu1 %v942_v51  ;;  %v1000_v51 = vld [vmem:[#allocation4 + $0x660] sm:$0xff] }
 0x34b   :  { %v2954_v0 = vpop.permute.xlu2 %2953 }
 0x34c   :  { %v3874_v9 = vunpack.i.h.bf16 %v2954_v0  ;;  %v2955_v31 = vunpack.i.l.bf16 %v2954_v0  ;;  %v996_v0 = vld [vmem:[#allocation4 + $0x620] sm:$0xff] }
 0x34e   :  { %v3886_v23 = vsel %vm906_vm5, %v2955_v31, %v3874_v9  ;;  %v995_v31 = vld [vmem:[#allocation4 + $0x610] sm:$0xff] }
 0x353   :  { %v2969_v50 = vpop.permute.xlu2 %2968 }
 0x354   :  { %v3896_v22 = vunpack.i.h.bf16 %v2969_v50  ;;  %v2970_v17 = vunpack.i.l.bf16 %v2969_v50 }
 0x356   :  { %v3918_v39 = vsel %vm133_vm8, %v2970_v17, %v3896_v22 }
 0x35a   :  { %v2959_v48 = vpop.permute.xlu0 %2958  ;;  %v2949_v12 = vpop.permute.xlu1 %2948 }
 0x35b   :  { %v3876_v16 = vunpack.i.h.bf16 %v2949_v12  ;;  %v2950_v60 = vunpack.i.l.bf16 %v2949_v12  ;;  %v3890_v30 = vunpack.i.h.bf16 %v2959_v48  ;;  %v2960_v63 = vunpack.i.l.bf16 %v2959_v48  ;;  %v931_v48 = vpop.permute.xlu2 %930 }
 0x35d   :  { %v925_v19 = vpack.c.bf16 %v3874_v9, %v3876_v16  ;;  %v3882_v54 = vsel %vm4451_vm7, %v2950_v60, %v3876_v16  ;;  %v3902_v21 = vsel %vm883_vm6, %v2960_v63, %v3890_v30  ;;  %vm4453_vm7 = vcmask 130048  }
 0x35e   :  { %v924_v27 = vpack.c.bf16 %v3886_v23, %v3882_v54 }
 0x35f   :  { %965 = vmatpush.bf16.msra.mxu0 %v925_v19 }
 0x360   :  { %951 = vmatpush.bf16.msra.mxu1 %v924_v27 }
 0x362   :  { %v2974_v4 = vpop.permute.xlu0 %2973  ;;  %v2964_v59 = vpop.permute.xlu1 %2963 }
 0x363   :  { %v3892_v1 = vunpack.i.h.bf16 %v2974_v4  ;;  %v2975_v49 = vunpack.i.l.bf16 %v2974_v4  ;;  %v3894_v61 = vunpack.i.h.bf16 %v2964_v59  ;;  %v2965_v6 = vunpack.i.l.bf16 %v2964_v59 }
 0x365   :  { %v923_v15 = vpack.c.bf16 %v3894_v61, %v3890_v30  ;;  %v3906_v25 = vsel %vm4450_vm9, %v2965_v6, %v3894_v61  ;;  %v3912_v8 = vsel %vm875_vm12, %v2975_v49, %v3892_v1  ;;  %v921_v37 = vpack.c.bf16 %v3892_v1, %v3896_v22 }
 0x366   :  { %v922_v46 = vpack.c.bf16 %v3906_v25, %v3902_v21  ;;  %v920_v52 = vpack.c.bf16 %v3912_v8, %v3918_v39  ;;  %vm1083_vm9 = vcmask 646144  }
 0x367   :  { %966 = vmatpush.bf16.msra.mxu0 %v923_v15 }
 0x368   :  { %952 = vmatpush.bf16.msra.mxu1 %v922_v46 }
 0x36a   :  { %v2979_v45 = vpop.permute.xlu1 %2978  ;;  %v936_v11 = vpop.permute.xlu0 %935 }
 0x36b   :  { %v3927_v32 = vunpack.i.h.bf16 %v2979_v45  ;;  %v2980_v34 = vunpack.i.l.bf16 %v2979_v45  ;;  %967 = vmatpush.bf16.msra.mxu0 %v921_v37 }
 0x36c   :  { %953 = vmatpush.bf16.msra.mxu1 %v920_v52 }
 0x36d   :  { %v2696_v58 = vpack.c.bf16 %v3927_v32, %v3842_v55  ;;  %v3939_v29 = vsel %vm4452_vm10, %v2980_v34, %v3927_v32  ;;  %vm4018_vm10 = vmpackc.low %vm1083_vm9, %vm1083_vm9 }
 0x36e   :  { %v2692_v62 = vpack.c.bf16 %v3939_v29, %v3838_v20 }
 0x36f   :  { %2697 = vmatpush.bf16.msk.msra.mxu0 %vm3931_vm15, %v2696_v58 }
 0x370   :  { %2693 = vmatpush.bf16.msk.msra.mxu1 %vm3944_vm0, %v2692_v62 }
 0x372   :  { %2698 = vmatmul.msk.bf16.vlgmr.msra.gmra.mxu0 %vm324_vm11, %v839_v2 }
 0x373   :  { %2694 = vmatmul.msk.bf16.vlgmr.msra.gmra.mxu1 %vm324_vm11, %v839_v2  ;;  %v1070_v2 = vld [vmem:[%s4447_s2 + $0x28] sm:$0xff] }
 0x374   :  { %1040 = vmatpush.msrb.mxu1 %v1003_v28  ;;  %v1069_v28 = vld [vmem:[%s4447_s2 + $0x20] sm:$0xff] }
 0x376   :  { %1041 = vmatpush.msrb.mxu1 %v1002_v41  ;;  %v1268_v41 = vld [vmem:[%s4447_s2 + $0x40] sm:$0xff] }
 0x378   :  { %1042 = vmatpush.msrb.mxu1 %v1001_v38  ;;  %v1267_v38 = vld [vmem:[%s4447_s2 + $0x38] sm:$0xff] }
 0x37a   :  { %1043 = vmatpush.msrb.mxu1 %v1000_v51 }
 0x37c   :  { %1044 = vmatpush.msrb.mxu1 %v999_v53 }
 0x37e   :  { %1045 = vmatpush.msrb.mxu1 %v998_v18 }
 0x380   :  { %1046 = vmatpush.msrb.mxu1 %v997_v44 }
 0x382   :  { %1047 = vmatpush.msrb.mxu1 %v996_v0 }
 0x384   :  { %1048 = vmatpush.msrb.mxu1 %v995_v31 }
 0x3ef   :  { %v970_v12 = vpop.f32.mrf.mxu0 }
 0x3f0   :  { %v971_v60 = vadd.f32 %v970_v12, %v931_v48  ;;  %v956_v56 = vpop.f32.mrf.mxu1 }
 0x3f1   :  { %v957_v19 = vadd.f32 %v956_v56, %v931_v48 }
 0x3f2   :  { %v976_v24 = vmax.f32 %v971_v60, 0.0 }
 0x3f3   :  { %v975_v27 = vmax.f32 %v957_v19, 0.0 }
 0x3f4   :  { %2699 = vmatmul.msk.f32.vlgmr.msrb.gmra.mxu1 %vm324_vm11, %v976_v24 }
 0x3f5   :  { %1026 = vmatmul.f32.vlgmr.msrb.gmra.mxu2 %v975_v27 }
 0x3f7   :  { %v972_v50 = vpop.f32.mrf.mxu0 }
 0x3f8   :  { %v973_v63 = vadd.f32 %v972_v50, %v936_v11  ;;  %v958_v3 = vpop.f32.mrf.mxu1 }
 0x3f9   :  { %v959_v4 = vadd.f32 %v958_v3, %v936_v11 }
 0x3fa   :  { %v978_v59 = vmax.f32 %v973_v63, 0.0 }
 0x3fb   :  { %v977_v49 = vmax.f32 %v959_v4, 0.0 }
 0x3fc   :  { %2700 = vmatmul.msk.f32.gmra.mxu1 %vm324_vm11, %v978_v59 }
 0x3fd   :  { %1029 = vmatmul.f32.gmra.mxu2 %v977_v49 }
 0x471   :  { %v1050_v6 = vpop.f32.mrf.mxu1 }
 0x478   :  { %v1027_v33 = vpop.f32.mrf.mxu2 }
 0x479   :  { %v1053_v17 = vpop.f32.mrf.mxu1  ;;  %v1051_v26 = vadd.f32 %v1050_v6, %v1027_v33 }
 0x480   :  { %v1030_v15 = vpop.f32.mrf.mxu2 }
 0x481   :  { %v1054_v46 = vadd.f32 %v1053_v17, %v1030_v15  ;;  %v1057_v15 = vld [vmem:[#allocation2 + $0x50] sm:$0xff] }
 0x483   :  { %v2983_v35 = vpack.i.bf16 %v1054_v46, %v1051_v26  ;;  %v1071_v26 = vld [vmem:[%s4447_s2 + $0x30] sm:$0xff] }
 0x485   :  { %2984 = vrot.lane.b32.xlu1 %v2983_v35, %s3509_s5 }
 0x4f7   :  { %v2985_v37 = vpop.permute.xlu1 %2984 }
 0x4f8   :  { %v2987_v43 = vunpack.i.h.bf16 %v2985_v37  ;;  %v2986_v45 = vunpack.i.l.bf16 %v2985_v37  ;;  %v1059_v37 = vld [vmem:[#allocation2 + $0x68] sm:$0xff] }
 0x4fa   :  { %v1082_v52 = vsel %vm1080_vm13, 0.0, %v2987_v43  ;;  %v1081_v34 = vsel %vm1080_vm13, 0.0, %v2986_v45  ;;  %v1222_v43 = vld [vmem:[#allocation4 + $0x720] sm:$0xff]  ;;  %v1221_v45 = vld [vmem:[#allocation4 + $0x710] sm:$0xff] }
 0x4fb   :  { %v1085_v13 = vsel %vm1083_vm9, %v1082_v52, 0.0  ;;  %v1084_v47 = vsel %vm1083_vm9, %v1081_v34, 0.0  ;;  %v3963_v58 = vpack.c.bf16 %v1082_v52, %v1081_v34  ;;  %1242 = vmatpush.msra.mxu1 %v1222_v43 }
 0x4fc   :  { %v2998_v62 = vpack.i.bf16 %v1085_v13, %v1084_v47 }
 0x4fd   :  { %1243 = vmatpush.msra.mxu1 %v1221_v45 }
 0x4fe   :  { %2999 = vrot.lane.b32.xlu1 %v2998_v62, %s3510_s6  ;;  %2994 = vrot.lane.b32.xlu0 %v2998_v62, %s3507_s27 }
 0x4ff   :  { %2989 = vrot.lane.b32.xlu2 %v2998_v62, %s3511_s7 }
 0x506   :  { %3014 = vrot.lane.b32.xlu1 %v2998_v62, %s3496_s16  ;;  %3009 = vrot.lane.b32.xlu0 %v2998_v62, %s3512_s8 }
 0x507   :  { %3004 = vrot.lane.b32.xlu2 %v2998_v62, %s3513_s9 }
 0x50e   :  { %3024 = vrot.lane.b32.xlu0 %v2998_v62, %s3514_s10  ;;  %1147 = vperm.xlu1 %3028, %v1068_v10   ;;  %v1220_v10 = vld [vmem:[#allocation4 + $0x700] sm:$0xff] }
 0x50f   :  { %3019 = vrot.lane.b32.xlu2 %v2998_v62, %s3500_s20  ;;  %v1065_v62 = vpack.c.bf16 %v1059_v37, %v1057_v15  ;;  %1244 = vmatpush.msra.mxu1 %v1220_v10  ;;  %v1301_v10 = vld [vmem:[#allocation4 + $0x750] sm:$0xff] }
 0x516   :  { %1157 = vperm.xlu0 %2936, %v1070_v2   ;;  %1162 = vperm.xlu1 %3028, %v1071_v26  }
 0x517   :  { %1152 = vperm.xlu2 %2982, %v1069_v28   ;;  %v1056_v28 = vld [vmem:[#allocation2 + $0x48] sm:$0xff] }
 0x51e   :  { %1278 = vperm.xlu0 %2936, %v1268_v41   ;;  %v1058_v41 = vld [vmem:[#allocation2 + $0x60] sm:$0xff] }
 0x51f   :  { %1273 = vperm.xlu2 %2982, %v1267_v38  }
 0x559   :  { %v2990_v51 = vpop.permute.xlu2 %2989 }
 0x55a   :  { %v2992_v53 = vunpack.i.h.bf16 %v2990_v51  ;;  %v2991_v18 = vunpack.i.l.bf16 %v2990_v51  ;;  %v1064_v51 = vpack.c.bf16 %v1058_v41, %v1056_v28 }
 0x55c   :  { %v3985_v44 = vpack.c.bf16 %v2992_v53, %v2991_v18  ;;  %v1061_v53 = vld [vmem:[#allocation2 + $0x80] sm:$0xff]  ;;  %v1063_v18 = vld [vmem:[#allocation2 + $0x98] sm:$0xff] }
 0x55e   :  { %1172 = vmatpush.bf16.msrb.mxu3 %v3985_v44 }
 0x561   :  { %v3005_v56 = vpop.permute.xlu2 %3004 }
 0x562   :  { %v3007_v19 = vunpack.i.h.bf16 %v3005_v56  ;;  %v3006_v24 = vunpack.i.l.bf16 %v3005_v56  ;;  %v1217_v56 = vld [vmem:[#allocation4 + $0x6d0] sm:$0xff] }
 0x564   :  { %v3997_v50 = vpack.c.bf16 %v3007_v19, %v3006_v24  ;;  %v1216_v19 = vld [vmem:[#allocation4 + $0x6c0] sm:$0xff]  ;;  %v1215_v24 = vld [vmem:[#allocation4 + $0x6b0] sm:$0xff] }
 0x569   :  { %v3020_v33 = vpop.permute.xlu2 %3019 }
 0x56a   :  { %v3022_v52 = vunpack.i.h.bf16 %v3020_v33  ;;  %v3021_v34 = vunpack.i.l.bf16 %v3020_v33 }
 0x56c   :  { %v4012_v2 = vpack.c.bf16 %v3022_v52, %v3021_v34 }
 0x570   :  { %v3000_v14 = vpop.permute.xlu1 %2999  ;;  %v2995_v0 = vpop.permute.xlu0 %2994 }
 0x571   :  { %v2997_v5 = vunpack.i.h.bf16 %v2995_v0  ;;  %v2996_v31 = vunpack.i.l.bf16 %v2995_v0  ;;  %v3002_v48 = vunpack.i.h.bf16 %v3000_v14  ;;  %v3001_v12 = vunpack.i.l.bf16 %v3000_v14  ;;  %v1060_v0 = vld [vmem:[#allocation2 + $0x78] sm:$0xff]  ;;  %v1153_v15 = vpop.permute.xlu2 %1152 }
 0x572   :  { %v1067_v14 = vpack.c.bf16 %v1063_v18, %v1061_v53 }
 0x573   :  { %v3991_v60 = vpack.c.bf16 %v2997_v5, %v2996_v31  ;;  %v3994_v27 = vpack.c.bf16 %v3002_v48, %v3001_v12  ;;  %v1062_v5 = vld [vmem:[#allocation2 + $0x90] sm:$0xff]  ;;  %v1218_v12 = vld [vmem:[#allocation4 + $0x6e0] sm:$0xff] }
 0x574   :  { %v1066_v31 = vpack.c.bf16 %v1062_v5, %v1060_v0  ;;  %v1219_v48 = vld [vmem:[#allocation4 + $0x6f0] sm:$0xff] }
 0x575   :  { %1173 = vmatpush.bf16.msrb.mxu3 %v3991_v60  ;;  %1245 = vmatpush.msra.mxu1 %v1219_v48 }
 0x577   :  { %1246 = vmatpush.msra.mxu1 %v1218_v12 }
 0x578   :  { %v3010_v11 = vpop.permute.xlu0 %3009  ;;  %v3015_v4 = vpop.permute.xlu1 %3014 }
 0x579   :  { %1174 = vmatpush.bf16.msrb.mxu3 %v3994_v27  ;;  %v3012_v63 = vunpack.i.h.bf16 %v3010_v11  ;;  %v3011_v3 = vunpack.i.l.bf16 %v3010_v11  ;;  %v3017_v59 = vunpack.i.h.bf16 %v3015_v4  ;;  %v3016_v49 = vunpack.i.l.bf16 %v3015_v4  ;;  %1247 = vmatpush.msra.mxu1 %v1217_v56  ;;  %v1214_v11 = vld [vmem:[#allocation4 + $0x6a0] sm:$0xff] }
 0x57b   :  { %v4000_v6 = vpack.c.bf16 %v3012_v63, %v3011_v3  ;;  %v4006_v13 = vpack.c.bf16 %v3017_v59, %v3016_v49  ;;  %1248 = vmatpush.msra.mxu1 %v1216_v19 }
 0x57d   :  { %1175 = vmatpush.bf16.msrb.mxu3 %v3997_v50  ;;  %1249 = vmatpush.msra.mxu1 %v1215_v24  ;;  %v1264_v24 = vld [vmem:[#allocation2 + $0xa8] sm:$0xff] }
 0x57f   :  { %1250 = vmatpush.msra.mxu1 %v1214_v11  ;;  %v1265_v11 = vld [vmem:[#allocation2 + $0xc0] sm:$0xff] }
 0x580   :  { %v3025_v17 = vpop.permute.xlu0 %3024  ;;  %v1148_v3 = vpop.permute.xlu1 %1147 }
 0x581   :  { %v3027_v46 = vunpack.i.h.bf16 %v3025_v17  ;;  %v3026_v35 = vunpack.i.l.bf16 %v3025_v17  ;;  %1176 = vmatpush.bf16.msrb.mxu3 %v4000_v6 }
 0x583   :  { %v4008_v47 = vpack.c.bf16 %v3027_v46, %v3026_v35 }
 0x585   :  { %1177 = vmatpush.bf16.msrb.mxu3 %v4006_v13  ;;  %1198 = vmatpush.bf16.msrb.mxu0 %v4008_v47 }
 0x588   :  { %2704 = vmatmul.msk.bf16.vlgmr.msrb.gmra.mxu0 %vm4453_vm7, %v1065_v62  ;;  %v1158_v43 = vpop.permute.xlu0 %1157  ;;  %v1163_v41 = vpop.permute.xlu1 %1162 }
 0x589   :  { %1178 = vmatpush.bf16.msrb.mxu3 %v4012_v2 }
 0x58d   :  { %2703 = vmatpush.bf16.msk.msrb.mxu3 %vm4018_vm10, %v3963_v58 }
 0x590   :  { %1180 = vmatmul.bf16.vlgmr.msrb.gmra.mxu3 %v1064_v51 }
 0x598   :  { %2705 = vmatmul.msk.bf16.gmra.mxu0 %vm4453_vm7, %v1067_v14  ;;  %vm1281_vm7 = vcmask 261120  }
 0x5a0   :  { %1185 = vmatmul.bf16.gmra.mxu3 %v1066_v31  ;;  %v1302_v31 = vld [vmem:[#allocation4 + $0x760] sm:$0xff] }
 0x5a1   :  { %1321 = vmatpush.msra.mxu0 %v1302_v31  ;;  %v1353_v31 = vld [vmem:[%s4447_s2 + $0x60] sm:$0xff] }
 0x5a3   :  { %1322 = vmatpush.msra.mxu0 %v1301_v10 }
 0x605   :  { %v1200_v63 = vpop.f32.mrf.mxu0 }
 0x60d   :  { %v1202_v17 = vpop.f32.mrf.mxu0 }
 0x613   :  { %v1181_v4 = vpop.f32.mrf.mxu3 }
 0x614   :  { %v1182_v59 = vadd.f32 %v1181_v4, %v1148_v3  ;;  %v1266_v3 = vpack.c.bf16 %v1265_v11, %v1264_v24  ;;  %v1300_v4 = vld [vmem:[#allocation4 + $0x740] sm:$0xff] }
 0x615   :  { %v1205_v45 = vpop.f32.mrf.mxu0  ;;  %1323 = vmatpush.msra.mxu0 %v1300_v4  ;;  %v1334_v4 = vld [vmem:[#allocation2 + $0xe8] sm:$0xff] }
 0x616   :  { %v1201_v49 = vadd.f32 %v1200_v63, %v1182_v59  ;;  %v1299_v59 = vld [vmem:[#allocation4 + $0x730] sm:$0xff] }
 0x617   :  { %1324 = vmatpush.msra.mxu0 %v1299_v59  ;;  %v1337_v59 = vld [vmem:[#allocation2 + $0x100] sm:$0xff] }
 0x618   :  { %v1210_v33 = vmax.f32 %v1201_v49, 0.0  ;;  %v1274_v49 = vpop.permute.xlu2 %1273 }
 0x61a   :  { %2706 = vmatmul.msk.f32.vlgmr.msra.gmra.mxu1 %vm324_vm11, %v1210_v33 }
 0x61b   :  { %v1183_v26 = vpop.f32.mrf.mxu3 }
 0x61c   :  { %v1184_v46 = vadd.f32 %v1183_v26, %v1153_v15  ;;  %v1279_v15 = vpop.permute.xlu0 %1278 }
 0x61d   :  { %v1207_v18 = vpop.f32.mrf.mxu0 }
 0x61e   :  { %v1203_v35 = vadd.f32 %v1202_v17, %v1184_v46 }
 0x620   :  { %v1211_v37 = vmax.f32 %v1203_v35, 0.0 }
 0x622   :  { %2707 = vmatmul.msk.f32.gmra.mxu1 %vm324_vm11, %v1211_v37 }
 0x623   :  { %v1186_v52 = vpop.f32.mrf.mxu3 }
 0x624   :  { %v1187_v34 = vadd.f32 %v1186_v52, %v1158_v43 }
 0x626   :  { %v1206_v62 = vadd.f32 %v1205_v45, %v1187_v34 }
 0x628   :  { %v1212_v28 = vmax.f32 %v1206_v62, 0.0 }
 0x62a   :  { %2708 = vmatmul.msk.f32.gmra.mxu1 %vm324_vm11, %v1212_v28 }
 0x62b   :  { %v1188_v51 = vpop.f32.mrf.mxu3 }
 0x62c   :  { %v1189_v53 = vadd.f32 %v1188_v51, %v1163_v41 }
 0x62e   :  { %v1208_v14 = vadd.f32 %v1207_v18, %v1189_v53 }
 0x630   :  { %v1213_v0 = vmax.f32 %v1208_v14, 0.0  ;;  %v1352_v14 = vld [vmem:[%s4447_s2 + $0x58] sm:$0xff] }
 0x632   :  { %2709 = vmatmul.msk.f32.gmra.mxu1 %vm324_vm11, %v1213_v0  ;;  %v1351_v0 = vld [vmem:[%s4447_s2 + $0x50] sm:$0xff] }
 0x697   :  { %v1252_v5 = vpop.f32.mrf.mxu1 }
 0x69f   :  { %v1255_v48 = vpop.f32.mrf.mxu1 }
 0x6a0   :  { %v1269_v63 = vpack.c.bf16 %v1255_v48, %v1252_v5  ;;  %v1350_v5 = vld [vmem:[%s4447_s2 + $0x48] sm:$0xff] }
 0x6a7   :  { %v1258_v12 = vpop.f32.mrf.mxu1 }
 0x6af   :  { %v1261_v56 = vpop.f32.mrf.mxu1 }
 0x6b0   :  { %v1270_v19 = vpack.c.bf16 %v1261_v56, %v1258_v12 }
 0x6b2   :  { %1291 = vmatpush.bf16.msra.mxu2 %v1270_v19 }
 0x6b6   :  { %1292 = vmatpush.bf16.msra.mxu2 %v1269_v63 }
 0x6b9   :  { %2710 = vmatmul.msk.bf16.vlgmr.msra.gmra.mxu2 %vm1281_vm7, %v1266_v3 }
 0x73c   :  { %v1294_v33 = vpop.f32.mrf.mxu2 }
 0x73d   :  { %v1295_v17 = vadd.f32 %v1294_v33, %v1274_v49 }
 0x73f   :  { %2711 = vmatmul.msk.f32.vlgmr.msra.gmra.mxu0 %vm1281_vm7, %v1295_v17 }
 0x744   :  { %v1296_v26 = vpop.f32.mrf.mxu2 }
 0x745   :  { %v1297_v46 = vadd.f32 %v1296_v26, %v1279_v15 }
 0x747   :  { %2712 = vmatmul.msk.f32.gmra.mxu0 %vm1281_vm7, %v1297_v46 }
 0x7bc   :  { %v1326_v35 = vpop.f32.mrf.mxu0 }
 0x7c4   :  { %v1329_v37 = vpop.f32.mrf.mxu0 }
 0x7c5   :  { %v3029_v43 = vpack.i.bf16 %v1329_v37, %v1326_v35  ;;  %v1346_v35 = vpack.c.bf16 %v1337_v59, %v1334_v4  ;;  %v1342_v4 = vld [vmem:[#allocation2 + $0x128] sm:$0xff] }
 0x7c7   :  { %3030 = vrot.lane.b32.xlu1 %v3029_v43, %s3509_s5 }
 0x839   :  { %v3031_v45 = vpop.permute.xlu1 %3030 }
 0x83a   :  { %v3033_v52 = vunpack.i.h.bf16 %v3031_v45  ;;  %v3032_v34 = vunpack.i.l.bf16 %v3031_v45 }
 0x83c   :  { %v4035_v62 = vsel %vm1080_vm13, 0.0, %v3033_v52  ;;  %v4038_v28 = vsel %vm1080_vm13, 0.0, %v3032_v34 }
 0x83d   :  { %v1365_v41 = vsel %vm1083_vm9, %v4035_v62, 0.0  ;;  %v1364_v51 = vsel %vm1083_vm9, %v4038_v28, 0.0  ;;  %v2714_v53 = vpack.c.bf16 %v4035_v62, %v4038_v28  ;;  %v1336_v62 = vld [vmem:[#allocation2 + $0xf8] sm:$0xff] }
 0x83e   :  { %v3044_v18 = vpack.i.bf16 %v1365_v41, %v1364_v51 }
 0x840   :  { %3045 = vrot.lane.b32.xlu1 %v3044_v18, %s3511_s7  ;;  %3040 = vrot.lane.b32.xlu0 %v3044_v18, %s3496_s16 }
 0x841   :  { %3035 = vrot.lane.b32.xlu2 %v3044_v18, %s3512_s8 }
 0x848   :  { %3060 = vrot.lane.b32.xlu1 %v3044_v18, %s3510_s6  ;;  %3055 = vrot.lane.b32.xlu0 %v3044_v18, %s3507_s27 }
 0x849   :  { %3050 = vrot.lane.b32.xlu2 %v3044_v18, %s3500_s20 }
 0x850   :  { %1437 = vperm.xlu1 %3028, %v1352_v14   ;;  %3070 = vrot.lane.b32.xlu0 %v3044_v18, %s3513_s9 }
 0x851   :  { %3065 = vrot.lane.b32.xlu2 %v3044_v18, %s3514_s10 }
 0x858   :  { %1432 = vperm.xlu1 %3028, %v1351_v0   ;;  %1427 = vperm.xlu0 %2936, %v1350_v5   ;;  %v1340_v5 = vld [vmem:[#allocation2 + $0x118] sm:$0xff] }
 0x859   :  { %1442 = vperm.xlu2 %2982, %v1353_v31   ;;  %v1343_v31 = vld [vmem:[#allocation2 + $0x130] sm:$0xff] }
 0x89b   :  { %v3036_v10 = vpop.permute.xlu2 %3035 }
 0x89c   :  { %v3038_v48 = vunpack.i.h.bf16 %v3036_v10  ;;  %v3037_v12 = vunpack.i.l.bf16 %v3036_v10  ;;  %v1349_v10 = vpack.c.bf16 %v1343_v31, %v1340_v5 }
 0x89e   :  { %v1419_v56 = vpack.c.bf16 %v3038_v48, %v3037_v12 }
 0x8a0   :  { %1451 = vmatpush.bf16.msra.mxu3 %v1419_v56 }
 0x8a3   :  { %v3051_v19 = vpop.permute.xlu2 %3050 }
 0x8a4   :  { %1452 = vmatpush.bf16.msra.mxu3 %v4000_v6  ;;  %v3053_v6 = vunpack.i.h.bf16 %v3051_v19  ;;  %v3052_v45 = vunpack.i.l.bf16 %v3051_v19 }
 0x8a6   :  { %v1417_v51 = vpack.c.bf16 %v3053_v6, %v3052_v45 }
 0x8ab   :  { %v3066_v24 = vpop.permute.xlu2 %3065 }
 0x8ac   :  { %v3068_v11 = vunpack.i.h.bf16 %v3066_v24  ;;  %v3067_v63 = vunpack.i.l.bf16 %v3066_v24 }
 0x8ae   :  { %v1424_v3 = vpack.c.bf16 %v3068_v11, %v3067_v63  ;;  %v1341_v11 = vld [vmem:[#allocation2 + $0x120] sm:$0xff] }
 0x8b0   :  { %1495 = vmatpush.bf16.msrb.mxu2 %v1424_v3  ;;  %v1339_v3 = vld [vmem:[#allocation2 + $0x110] sm:$0xff] }
 0x8b1   :  { %v1348_v59 = vpack.c.bf16 %v1342_v4, %v1339_v3 }
 0x8b2   :  { %v3046_v49 = vpop.permute.xlu1 %3045  ;;  %v3041_v33 = vpop.permute.xlu0 %3040 }
 0x8b3   :  { %v3048_v17 = vunpack.i.h.bf16 %v3046_v49  ;;  %v3047_v15 = vunpack.i.l.bf16 %v3046_v49  ;;  %v3043_v26 = vunpack.i.h.bf16 %v3041_v33  ;;  %v3042_v46 = vunpack.i.l.bf16 %v3041_v33 }
 0x8b4   :  { %1496 = vmatpush.bf16.msrb.mxu2 %v4008_v47 }
 0x8b5   :  { %v1423_v37 = vpack.c.bf16 %v3048_v17, %v3047_v15  ;;  %v1418_v43 = vpack.c.bf16 %v3043_v26, %v3042_v46 }
 0x8b7   :  { %1453 = vmatpush.bf16.msra.mxu3 %v1418_v43  ;;  %1470 = vmatpush.bf16.msrb.mxu1 %v1423_v37 }
 0x8b8   :  { %2719 = vmatmul.msk.bf16.vlgmr.msrb.gmra.mxu2 %vm1281_vm7, %v1346_v35 }
 0x8ba   :  { %v3056_v52 = vpop.permute.xlu0 %3055  ;;  %v3061_v14 = vpop.permute.xlu1 %3060 }
 0x8bb   :  { %v3058_v34 = vunpack.i.h.bf16 %v3056_v52  ;;  %v3057_v41 = vunpack.i.l.bf16 %v3056_v52  ;;  %1454 = vmatpush.bf16.msra.mxu3 %v4006_v13  ;;  %1471 = vmatpush.bf16.msrb.mxu1 %v3985_v44  ;;  %v3063_v47 = vunpack.i.h.bf16 %v3061_v14  ;;  %v3062_v0 = vunpack.i.l.bf16 %v3061_v14  ;;  %v1332_v44 = vld [vmem:[#allocation2 + $0xd8] sm:$0xff]  ;;  %v1335_v13 = vld [vmem:[#allocation2 + $0xf0] sm:$0xff] }
 0x8bc   :  { %v1344_v24 = vpack.c.bf16 %v1335_v13, %v1332_v44 }
 0x8bd   :  { %v1422_v18 = vpack.c.bf16 %v3058_v34, %v3057_v41  ;;  %v1421_v48 = vpack.c.bf16 %v3063_v47, %v3062_v0  ;;  %v4084_v41 = vld [vmem:[#allocation4 + $0x990] ss:$0 sm:$0xff] }
 0x8bf   :  { %1455 = vmatpush.bf16.msra.mxu3 %v1417_v51  ;;  %1472 = vmatpush.bf16.msrb.mxu1 %v1422_v18 }
 0x8c2   :  { %v3071_v12 = vpop.permute.xlu0 %3070 }
 0x8c3   :  { %1456 = vmatpush.bf16.msra.mxu3 %v4012_v2  ;;  %1473 = vmatpush.bf16.msrb.mxu1 %v3991_v60  ;;  %v3073_v56 = vunpack.i.h.bf16 %v3071_v12  ;;  %v3072_v19 = vunpack.i.l.bf16 %v3071_v12  ;;  %v1333_v2 = vld [vmem:[#allocation2 + $0xe0] sm:$0xff]  ;;  %v1443_v12 = vpop.permute.xlu2 %1442 }
 0x8c4   :  { %v1345_v28 = vpack.c.bf16 %v1336_v62, %v1333_v2 }
 0x8c5   :  { %v1420_v60 = vpack.c.bf16 %v3073_v56, %v3072_v19 }
 0x8c7   :  { %2715 = vmatpush.bf16.msk.msra.mxu3 %vm4018_vm10, %v2714_v53  ;;  %1474 = vmatpush.bf16.msrb.mxu1 %v1421_v48  ;;  %v1338_v53 = vld [vmem:[#allocation2 + $0x108] sm:$0xff] }
 0x8c8   :  { %2720 = vmatmul.msk.bf16.gmra.mxu2 %vm1281_vm7, %v1349_v10  ;;  %v1347_v63 = vpack.c.bf16 %v1341_v11, %v1338_v53 }
 0x8cb   :  { %2718 = vmatpush.bf16.msk.msra.mxu3 %vm4018_vm10, %v3963_v58  ;;  %1475 = vmatpush.bf16.msrb.mxu1 %v3994_v27  ;;  %v1438_v58 = vpop.permute.xlu1 %1437  ;;  %v1428_v27 = vpop.permute.xlu0 %1427 }
 0x8ce   :  { %1459 = vmatmul.bf16.vlgmr.msra.gmra.mxu3 %v1344_v24 }
 0x8cf   :  { %1476 = vmatpush.bf16.msrb.mxu1 %v1420_v60 }
 0x8d3   :  { %1477 = vmatpush.bf16.msrb.mxu1 %v3997_v50  ;;  %v1433_v46 = vpop.permute.xlu1 %1432 }
 0x8d6   :  { %1478 = vmatmul.bf16.vlgmr.msrb.gmra.mxu1 %v1345_v28 }
 0x8de   :  { %1464 = vmatmul.bf16.gmra.mxu3 %v1347_v63 }
 0x8e6   :  { %1483 = vmatmul.bf16.gmra.mxu1 %v1348_v59 }
 0x93b   :  { %v1498_v49 = vpop.f32.mrf.mxu2 }
 0x943   :  { %v1500_v35 = vpop.f32.mrf.mxu2 }
 0x94b   :  { %v1503_v14 = vpop.f32.mrf.mxu2 }
 0x951   :  { %v1460_v33 = vpop.f32.mrf.mxu3 }
 0x952   :  { %v1461_v17 = vadd.f32 %v1460_v33, %v1428_v27 }
 0x953   :  { %v1479_v15 = vpop.f32.mrf.mxu1  ;;  %v1505_v24 = vpop.f32.mrf.mxu2 }
 0x954   :  { %v1480_v26 = vadd.f32 %v1479_v15, %v1461_v17 }
 0x956   :  { %v1499_v50 = vadd.f32 %v1498_v49, %v1480_v26 }
 0x958   :  { %v1508_v52 = vmax.f32 %v1499_v50, 0.0 }
 0x959   :  { %v1462_v37 = vpop.f32.mrf.mxu3 }
 0x95a   :  { %v1463_v43 = vadd.f32 %v1462_v37, %v1433_v46  ;;  %v1512_v47 = vmul.f32 %v1508_v52, %v4084_v41 }
 0x95b   :  { %v1481_v6 = vpop.f32.mrf.mxu1 }
 0x95c   :  { %v1482_v45 = vadd.f32 %v1481_v6, %v1463_v43 }
 0x95e   :  { %v1501_v34 = vadd.f32 %v1500_v35, %v1482_v45 }
 0x960   :  { %v1509_v51 = vmax.f32 %v1501_v34, 0.0  ;;  %v1536_v34 = vld [vmem:[%s4447_s2 + $0x78] sm:$0xff] }
 0x961   :  { %v1465_v18 = vpop.f32.mrf.mxu3 }
 0x962   :  { %v1513_v0 = vmul.f32 %v1509_v51, %v4084_v41  ;;  %v1466_v5 = vadd.f32 %v1465_v18, %v1438_v58  ;;  %v1535_v51 = vld [vmem:[%s4447_s2 + $0x70] sm:$0xff]  ;;  %v1537_v18 = vld [vmem:[%s4447_s2 + $0x80] sm:$0xff] }
 0x963   :  { %v1484_v31 = vpop.f32.mrf.mxu1 }
 0x964   :  { %v3079_v10 = vpack.i.bf16 %v1513_v0, %v1512_v47  ;;  %v1485_v48 = vadd.f32 %v1484_v31, %v1466_v5  ;;  %v1774_v47 = vld [vmem:[%s4447_s2 + $0x88] sm:$0xff]  ;;  %v1775_v0 = vld [vmem:[%s4447_s2 + $0x90] sm:$0xff] }
 0x966   :  { %3080 = vrot.lane.b32.xlu0 %v3079_v10, %s3509_s5  ;;  %v1504_v13 = vadd.f32 %v1503_v14, %v1485_v48  ;;  %v1534_v14 = vld [vmem:[%s4447_s2 + $0x68] sm:$0xff] }
 0x968   :  { %v1510_v2 = vmax.f32 %v1504_v13, 0.0 }
 0x969   :  { %v1467_v44 = vpop.f32.mrf.mxu3 }
 0x96a   :  { %v1468_v56 = vadd.f32 %v1467_v44, %v1443_v12  ;;  %v1514_v53 = vmul.f32 %v1510_v2, %v4084_v41 }
 0x96b   :  { %v1486_v19 = vpop.f32.mrf.mxu1 }
 0x96c   :  { %v1487_v60 = vadd.f32 %v1486_v19, %v1468_v56 }
 0x96e   :  { %v1506_v62 = vadd.f32 %v1505_v24, %v1487_v60 }
 0x970   :  { %v1511_v28 = vmax.f32 %v1506_v62, 0.0 }
 0x972   :  { %v1515_v11 = vmul.f32 %v1511_v28, %v4084_v41 }
 0x974   :  { %v3074_v63 = vpack.i.bf16 %v1515_v11, %v1514_v53 }
 0x976   :  { %3075 = vrot.lane.b32.xlu2 %v3074_v63, %s3509_s5 }
 0x9d0   :  { %v3076_v3 = vpop.permute.xlu2 %3075 }
 0x9d1   :  { %v3078_v4 = vunpack.i.h.bf16 %v3076_v3  ;;  %v3077_v59 = vunpack.i.l.bf16 %v3076_v3 }
 0x9d3   :  { %v4093_v58 = vsel %vm1080_vm13, 0.0, %v3078_v4  ;;  %v4096_v49 = vsel %vm1080_vm13, 0.0, %v3077_v59 }
 0x9d4   :  { %v1561_v27 = vsel %vm1083_vm9, %v4093_v58, 0.0  ;;  %v1560_v33 = vsel %vm1083_vm9, %v4096_v49, 0.0  ;;  %v2722_v17 = vpack.c.bf16 %v4093_v58, %v4096_v49  ;;  %v1518_v58 = vld [vmem:[#allocation2 + $0x148] sm:$0xff]  ;;  %v1521_v49 = vld [vmem:[#allocation2 + $0x160] sm:$0xff] }
 0x9d5   :  { %v3104_v15 = vpack.i.bf16 %v1561_v27, %v1560_v33 }
 0x9d7   :  { %3105 = vrot.lane.b32.xlu2 %v3104_v15, %s3512_s8 }
 0x9d8   :  { %v3081_v26 = vpop.permute.xlu0 %3080 }
 0x9d9   :  { %v3083_v46 = vunpack.i.h.bf16 %v3081_v26  ;;  %v3082_v35 = vunpack.i.l.bf16 %v3081_v26 }
 0x9db   :  { %v4106_v37 = vsel %vm1080_vm13, 0.0, %v3083_v46  ;;  %v4109_v50 = vsel %vm1080_vm13, 0.0, %v3082_v35  ;;  %vm4253_vm13 = vmpackc.low %vm853_vm2, %vm853_vm2 }
 0x9dc   :  { %v1559_v43 = vsel %vm1083_vm9, %v4106_v37, 0.0  ;;  %v1558_v6 = vsel %vm1083_vm9, %v4109_v50, 0.0  ;;  %v2725_v45 = vpack.c.bf16 %v4106_v37, %v4109_v50  ;;  %v1524_v37 = vld [vmem:[#allocation2 + $0x178] sm:$0xff]  ;;  %v1527_v50 = vld [vmem:[#allocation2 + $0x190] sm:$0xff] }
 0x9dd   :  { %v3089_v52 = vpack.i.bf16 %v1559_v43, %v1558_v6  ;;  %v1533_v38 = vpack.c.bf16 %v1527_v50, %v1524_v37 }
 0x9df   :  { %3110 = vrot.lane.b32.xlu2 %v3104_v15, %s3507_s27  ;;  %3090 = vrot.lane.b32.xlu1 %v3089_v52, %s3512_s8 }
 0x9e0   :  { %3085 = vrot.lane.b32.xlu0 %v3089_v52, %s3511_s7 }
 0x9e7   :  { %3115 = vrot.lane.b32.xlu2 %v3089_v52, %s3496_s16  ;;  %3095 = vrot.lane.b32.xlu1 %v3104_v15, %s3511_s7 }
 0x9e8   :  { %3125 = vrot.lane.b32.xlu0 %v3104_v15, %s3496_s16 }
 0x9ef   :  { %3120 = vrot.lane.b32.xlu2 %v3089_v52, %s3510_s6  ;;  %3100 = vrot.lane.b32.xlu1 %v3089_v52, %s3507_s27 }
 0x9f0   :  { %3130 = vrot.lane.b32.xlu0 %v3104_v15, %s3510_s6 }
 0x9f7   :  { %3150 = vrot.lane.b32.xlu2 %v3104_v15, %s3514_s10  ;;  %3140 = vrot.lane.b32.xlu1 %v3104_v15, %s3500_s20 }
 0x9f8   :  { %3135 = vrot.lane.b32.xlu0 %v3089_v52, %s3500_s20 }
 0x9ff   :  { %1692 = vperm.xlu2 %2982, %v1536_v34   ;;  %3145 = vrot.lane.b32.xlu1 %v3104_v15, %s3513_s9 }
 0xa00   :  { %3155 = vrot.lane.b32.xlu0 %v3089_v52, %s3513_s9 }
 0xa07   :  { %1687 = vperm.xlu2 %2982, %v1535_v51   ;;  %3160 = vrot.lane.b32.xlu1 %v3089_v52, %s3514_s10 }
 0xa08   :  { %1697 = vperm.xlu0 %2936, %v1537_v18  }
 0xa0f   :  { %1682 = vperm.xlu1 %3028, %v1534_v14  }
 0xa10   :  { %1780 = vperm.xlu0 %2936, %v1774_v47  }
 0xa17   :  { %1785 = vperm.xlu1 %3028, %v1775_v0  }
 0xa31   :  { %v3106_v5 = vpop.permute.xlu2 %3105 }
 0xa32   :  { %v3108_v31 = vunpack.i.h.bf16 %v3106_v5  ;;  %v3107_v10 = vunpack.i.l.bf16 %v3106_v5 }
 0xa34   :  { %v1669_v48 = vpack.c.bf16 %v3108_v31, %v3107_v10 }
 0xa36   :  { %1706 = vmatpush.bf16.msrb.mxu0 %v1669_v48 }
 0xa39   :  { %v3111_v12 = vpop.permute.xlu2 %3110 }
 0xa3a   :  { %v3113_v52 = vunpack.i.h.bf16 %v3111_v12  ;;  %v3112_v34 = vunpack.i.l.bf16 %v3111_v12 }
 0xa3c   :  { %v1675_v0 = vpack.c.bf16 %v3113_v52, %v3112_v34 }
 0xa41   :  { %v3116_v44 = vpop.permute.xlu2 %3115 }
 0xa42   :  { %v3118_v35 = vunpack.i.h.bf16 %v3116_v44  ;;  %v3117_v43 = vunpack.i.l.bf16 %v3116_v44 }
 0xa44   :  { %v1666_v18 = vpack.c.bf16 %v3118_v35, %v3117_v43  ;;  %v1516_v35 = vld [vmem:[#allocation2 + $0x138] sm:$0xff]  ;;  %v1517_v43 = vld [vmem:[#allocation2 + $0x140] sm:$0xff] }
 0xa49   :  { %v3121_v13 = vpop.permute.xlu2 %3120 }
 0xa4a   :  { %v3122_v12 = vunpack.i.l.bf16 %v3121_v13 }
 0xa51   :  { %v3151_v56 = vpop.permute.xlu2 %3150  ;;  %v3091_v19 = vpop.permute.xlu1 %3090 }
 0xa52   :  { %v3153_v24 = vunpack.i.h.bf16 %v3151_v56  ;;  %v3152_v60 = vunpack.i.l.bf16 %v3151_v56  ;;  %v3093_v2 = vunpack.i.h.bf16 %v3091_v19  ;;  %v3092_v62 = vunpack.i.l.bf16 %v3091_v19  ;;  %v3086_v28 = vpop.permute.xlu0 %3085 }
 0xa53   :  { %v3088_v15 = vunpack.i.h.bf16 %v3086_v28  ;;  %v3087_v26 = vunpack.i.l.bf16 %v3086_v28 }
 0xa54   :  { %v1679_v53 = vpack.c.bf16 %v3153_v24, %v3152_v60  ;;  %v1668_v11 = vpack.c.bf16 %v3093_v2, %v3092_v62  ;;  %v3123_v2 = vunpack.i.h.bf16 %v3121_v13  ;;  %v1519_v13 = vld [vmem:[#allocation2 + $0x150] sm:$0xff] }
 0xa55   :  { %v1676_v51 = vpack.c.bf16 %v3088_v15, %v3087_v26 }
 0xa56   :  { %1707 = vmatpush.bf16.msrb.mxu0 %v1668_v11  ;;  %1750 = vmatpush.bf16.msrb.mxu3 %v1679_v53 }
 0xa59   :  { %v3096_v63 = vpop.permute.xlu1 %3095 }
 0xa5a   :  { %v3098_v3 = vunpack.i.h.bf16 %v3096_v63  ;;  %v3097_v4 = vunpack.i.l.bf16 %v3096_v63  ;;  %v3126_v59 = vpop.permute.xlu0 %3125  ;;  %v1672_v63 = vpack.c.bf16 %v3123_v2, %v3122_v12  ;;  %v1693_v12 = vpop.permute.xlu2 %1692 }
 0xa5b   :  { %v3128_v27 = vunpack.i.h.bf16 %v3126_v59  ;;  %v3127_v33 = vunpack.i.l.bf16 %v3126_v59 }
 0xa5c   :  { %v1677_v46 = vpack.c.bf16 %v3098_v3, %v3097_v4 }
 0xa5d   :  { %v1667_v6 = vpack.c.bf16 %v3128_v27, %v3127_v33 }
 0xa5e   :  { %1725 = vmatpush.bf16.msra.mxu2 %v1677_v46 }
 0xa5f   :  { %1708 = vmatpush.bf16.msrb.mxu0 %v1667_v6  ;;  %v1520_v6 = vld [vmem:[#allocation2 + $0x158] sm:$0xff] }
 0xa61   :  { %v3101_v14 = vpop.permute.xlu1 %3100 }
 0xa62   :  { %v3131_v47 = vpop.permute.xlu0 %3130  ;;  %1726 = vmatpush.bf16.msra.mxu2 %v1676_v51  ;;  %v3103_v5 = vunpack.i.h.bf16 %v3101_v14  ;;  %v3102_v31 = vunpack.i.l.bf16 %v3101_v14  ;;  %v1528_v51 = vpack.c.bf16 %v1519_v13, %v1516_v35 }
 0xa63   :  { %1709 = vmatpush.bf16.msrb.mxu0 %v1666_v18  ;;  %v3133_v48 = vunpack.i.h.bf16 %v3131_v47  ;;  %v3132_v56 = vunpack.i.l.bf16 %v3131_v47  ;;  %v1529_v18 = vpack.c.bf16 %v1520_v6, %v1517_v43  ;;  %v1810_v6 = vld [vmem:[#allocation4 + $0x798] sm:$0xff] }
 0xa64   :  { %v1674_v10 = vpack.c.bf16 %v3103_v5, %v3102_v31  ;;  %v1522_v5 = vld [vmem:[#allocation2 + $0x168] sm:$0xff]  ;;  %v1525_v31 = vld [vmem:[#allocation2 + $0x180] sm:$0xff] }
 0xa65   :  { %v1673_v62 = vpack.c.bf16 %v3133_v48, %v3132_v56  ;;  %v1526_v48 = vld [vmem:[#allocation2 + $0x188] sm:$0xff]  ;;  %v1531_v56 = vpack.c.bf16 %v1525_v31, %v1522_v5 }
 0xa66   :  { %1727 = vmatpush.bf16.msra.mxu2 %v1675_v0  ;;  %v1530_v0 = vpack.c.bf16 %v1521_v49, %v1518_v58 }
 0xa69   :  { %v3141_v19 = vpop.permute.xlu1 %3140 }
 0xa6a   :  { %v3143_v44 = vunpack.i.h.bf16 %v3141_v19  ;;  %v3142_v24 = vunpack.i.l.bf16 %v3141_v19  ;;  %v3136_v60 = vpop.permute.xlu0 %3135  ;;  %1728 = vmatpush.bf16.msra.mxu2 %v1674_v10  ;;  %v1523_v10 = vld [vmem:[#allocation2 + $0x170] sm:$0xff] }
 0xa6b   :  { %v3138_v53 = vunpack.i.h.bf16 %v3136_v60  ;;  %v3137_v11 = vunpack.i.l.bf16 %v3136_v60  ;;  %v1532_v19 = vpack.c.bf16 %v1526_v48, %v1523_v10 }
 0xa6c   :  { %v1665_v28 = vpack.c.bf16 %v3143_v44, %v3142_v24 }
 0xa6d   :  { %v1664_v3 = vpack.c.bf16 %v3138_v53, %v3137_v11  ;;  %v1822_v53 = vld [vmem:[#allocation4 + $0x7f8] sm:$0xff]  ;;  %v1820_v11 = vld [vmem:[#allocation4 + $0x7e8] sm:$0xff] }
 0xa6e   :  { %1710 = vmatpush.bf16.msrb.mxu0 %v1665_v28  ;;  %1729 = vmatpush.bf16.msra.mxu2 %v1673_v62 }
 0xa71   :  { %v3146_v4 = vpop.permute.xlu1 %3145 }
 0xa72   :  { %v3148_v59 = vunpack.i.h.bf16 %v3146_v4  ;;  %v3147_v27 = vunpack.i.l.bf16 %v3146_v4  ;;  %v3156_v33 = vpop.permute.xlu0 %3155  ;;  %1711 = vmatpush.bf16.msrb.mxu0 %v1664_v3  ;;  %1730 = vmatpush.bf16.msra.mxu2 %v1672_v63  ;;  %v1818_v63 = vld [vmem:[#allocation4 + $0x7d8] sm:$0xff]  ;;  %v1816_v4 = vld [vmem:[#allocation4 + $0x7c8] sm:$0xff] }
 0xa73   :  { %v3158_v26 = vunpack.i.h.bf16 %v3156_v33  ;;  %v3157_v46 = vunpack.i.l.bf16 %v3156_v33 }
 0xa74   :  { %v1671_v15 = vpack.c.bf16 %v3148_v59, %v3147_v27  ;;  %v1814_v59 = vld [vmem:[#allocation4 + $0x7b8] sm:$0xff] }
 0xa75   :  { %v1670_v52 = vpack.c.bf16 %v3158_v26, %v3157_v46  ;;  %v1688_v26 = vpop.permute.xlu2 %1687 }
 0xa76   :  { %2723 = vmatpush.bf16.msk.msrb.mxu0 %vm4018_vm10, %v2722_v17  ;;  %1731 = vmatpush.bf16.msra.mxu2 %v1671_v15  ;;  %v1812_v15 = vld [vmem:[#allocation4 + $0x7a8] sm:$0xff] }
 0xa79   :  { %v3161_v34 = vpop.permute.xlu1 %3160 }
 0xa7a   :  { %v3163_v14 = vunpack.i.h.bf16 %v3161_v34  ;;  %v3162_v47 = vunpack.i.l.bf16 %v3161_v34  ;;  %2726 = vmatpush.bf16.msk.msrb.mxu0 %vm4018_vm10, %v2725_v45  ;;  %1732 = vmatpush.bf16.msra.mxu2 %v1670_v52  ;;  %v1698_v35 = vpop.permute.xlu0 %1697  ;;  %vm4464_vm10 = vcmask 883712  }
 0xa7b   :  { %vm4465_vm9 = vmmov %vm4464_vm10 }
 0xa7c   :  { %v1678_v17 = vpack.c.bf16 %v3163_v14, %v3162_v47 }
 0xa7d   :  { %1714 = vmatmul.bf16.vlgmr.msrb.gmra.mxu0 %v1528_v51  ;;  %1733 = vmatmul.bf16.vlgmr.msra.gmra.mxu2 %v1529_v18 }
 0xa7e   :  { %1751 = vmatpush.bf16.msrb.mxu3 %v1678_v17  ;;  %1859 = vmatpush.msra.mxu0 %v1822_v53  ;;  %v1817_v53 = vld [vmem:[#allocation4 + $0x7d0] sm:$0xff] }
 0xa80   :  { %1860 = vmatpush.msra.mxu0 %v1820_v11  ;;  %v1815_v11 = vld [vmem:[#allocation4 + $0x7c0] sm:$0xff] }
 0xa81   :  { %2727 = vmatmul.msk.bf16.vlgmr.msrb.gmra.mxu3 %vm1281_vm7, %v1530_v0  ;;  %v1683_v52 = vpop.permute.xlu1 %1682 }
 0xa82   :  { %1861 = vmatpush.msra.mxu0 %v1818_v63  ;;  %v1813_v63 = vld [vmem:[#allocation4 + $0x7b0] sm:$0xff] }
 0xa84   :  { %1862 = vmatpush.msra.mxu0 %v1816_v4  ;;  %v1807_v4 = vld [vmem:[#allocation4 + $0x780] sm:$0xff] }
 0xa86   :  { %1863 = vmatpush.msra.mxu0 %v1814_v59  ;;  %v1808_v59 = vld [vmem:[#allocation4 + $0x788] sm:$0xff] }
 0xa88   :  { %1864 = vmatpush.msra.mxu0 %v1812_v15  ;;  %v1781_v15 = vpop.permute.xlu0 %1780 }
 0xa8a   :  { %1865 = vmatpush.msra.mxu0 %v1810_v6 }
 0xa8c   :  { %1866 = vmatpush.msra.mxu0 %v1808_v59 }
 0xa8d   :  { %1719 = vmatmul.bf16.gmra.mxu0 %v1531_v56  ;;  %1738 = vmatmul.bf16.gmra.mxu2 %v1532_v19 }
 0xa91   :  { %2728 = vmatmul.msk.bf16.gmra.mxu3 %vm1281_vm7, %v1533_v38 }
 0xafa   :  { %v1715_v45 = vpop.f32.mrf.mxu0 }
 0xafb   :  { %v1716_v51 = vadd.f32 %v1715_v45, %v1683_v52 }
 0xb00   :  { %v1734_v44 = vpop.f32.mrf.mxu2 }
 0xb01   :  { %v1735_v58 = vadd.f32 %v1734_v44, %v1716_v51  ;;  %v1771_v44 = vld [vmem:[#allocation2 + $0x198] sm:$0xff] }
 0xb02   :  { %v1717_v24 = vpop.f32.mrf.mxu0 }
 0xb03   :  { %v1718_v13 = vadd.f32 %v1717_v24, %v1688_v26 }
 0xb04   :  { %v1753_v60 = vpop.f32.mrf.mxu3 }
 0xb05   :  { %v1754_v5 = vadd.f32 %v1753_v60, %v1735_v58 }
 0xb07   :  { %v1763_v19 = vmax.f32 %v1754_v5, 0.0 }
 0xb08   :  { %v1736_v2 = vpop.f32.mrf.mxu2 }
 0xb09   :  { %v1737_v18 = vadd.f32 %v1736_v2, %v1718_v13  ;;  %v1767_v24 = vmul.f32 %v1763_v19, %v4084_v41  ;;  %v1772_v2 = vld [vmem:[#allocation2 + $0x1b0] sm:$0xff] }
 0xb0a   :  { %v1720_v62 = vpop.f32.mrf.mxu0  ;;  %v1773_v60 = vpack.c.bf16 %v1772_v2, %v1771_v44 }
 0xb0b   :  { %v1721_v33 = vadd.f32 %v1720_v62, %v1693_v12  ;;  %v1821_v62 = vld [vmem:[#allocation4 + $0x7f0] sm:$0xff] }
 0xb0c   :  { %v1755_v28 = vpop.f32.mrf.mxu3 }
 0xb0d   :  { %v1756_v49 = vadd.f32 %v1755_v28, %v1737_v18  ;;  %v1819_v28 = vld [vmem:[#allocation4 + $0x7e0] sm:$0xff] }
 0xb0f   :  { %v1764_v48 = vmax.f32 %v1756_v49, 0.0 }
 0xb10   :  { %v1739_v3 = vpop.f32.mrf.mxu2 }
 0xb11   :  { %v1740_v43 = vadd.f32 %v1739_v3, %v1721_v33  ;;  %v1768_v38 = vmul.f32 %v1764_v48, %v4084_v41  ;;  %v1811_v3 = vld [vmem:[#allocation4 + $0x7a0] sm:$0xff]  ;;  %v1806_v33 = vld [vmem:[#allocation4 + $0x778] sm:$0xff] }
 0xb12   :  { %v1722_v46 = vpop.f32.mrf.mxu0  ;;  %1867 = vmatpush.msra.mxu0 %v1806_v33 }
 0xb13   :  { %v1723_v14 = vadd.f32 %v1722_v46, %v1698_v35  ;;  %v1776_v12 = vpack.c.bf16 %v1768_v38, %v1767_v24  ;;  %v1786_v35 = vpop.permute.xlu1 %1785  ;;  %v1881_v24 = vld [vmem:[%s4447_s2 + $0x98] sm:$0xff] }
 0xb14   :  { %v1758_v27 = vpop.f32.mrf.mxu3 }
 0xb15   :  { %v1759_v47 = vadd.f32 %v1758_v27, %v1740_v43  ;;  %v1805_v27 = vld [vmem:[#allocation4 + $0x770] sm:$0xff] }
 0xb17   :  { %v1765_v31 = vmax.f32 %v1759_v47, 0.0 }
 0xb18   :  { %v1741_v34 = vpop.f32.mrf.mxu2 }
 0xb19   :  { %v1742_v17 = vadd.f32 %v1741_v34, %v1723_v14  ;;  %v1769_v37 = vmul.f32 %v1765_v31, %v4084_v41 }
 0xb1c   :  { %v1760_v0 = vpop.f32.mrf.mxu3 }
 0xb1d   :  { %v1761_v10 = vadd.f32 %v1760_v0, %v1742_v17 }
 0xb1f   :  { %v1766_v56 = vmax.f32 %v1761_v10, 0.0 }
 0xb21   :  { %v1770_v50 = vmul.f32 %v1766_v56, %v4084_v41  ;;  %v1809_v41 = vld [vmem:[#allocation4 + $0x790] sm:$0xff] }
 0xb23   :  { %v1777_v45 = vpack.c.bf16 %v1770_v50, %v1769_v37 }
 0xb25   :  { %1797 = vmatpush.bf16.msra.mxu1 %v1777_v45  ;;  %v1882_v45 = vld [vmem:[%s4447_s2 + $0xa0] sm:$0xff] }
 0xb29   :  { %1798 = vmatpush.bf16.msra.mxu1 %v1776_v12 }
 0xb2c   :  { %2729 = vmatmul.msk.bf16.vlgmr.msra.gmra.mxu1 %vm1281_vm7, %v1773_v60 }
 0xb2d   :  { %1836 = vmatpush.msrb.mxu1 %v1821_v62 }
 0xb2f   :  { %1837 = vmatpush.msrb.mxu1 %v1819_v28 }
 0xb31   :  { %1838 = vmatpush.msrb.mxu1 %v1817_v53 }
 0xb33   :  { %1839 = vmatpush.msrb.mxu1 %v1815_v11 }
 0xb35   :  { %1840 = vmatpush.msrb.mxu1 %v1813_v63 }
 0xb37   :  { %1841 = vmatpush.msrb.mxu1 %v1811_v3 }
 0xb39   :  { %1842 = vmatpush.msrb.mxu1 %v1809_v41 }
 0xb3b   :  { %1843 = vmatpush.msrb.mxu1 %v1807_v4 }
 0xb3d   :  { %1844 = vmatpush.msrb.mxu1 %v1805_v27 }
 0xba9   :  { %v1800_v26 = vpop.f32.mrf.mxu1 }
 0xbaa   :  { %v1801_v46 = vadd.f32 %v1800_v26, %v1781_v15 }
 0xbac   :  { %2730 = vmatmul.msk.f32.vlgmr.msrb.gmra.mxu1 %vm324_vm11, %v1801_v46  ;;  %2732 = vmatmul.msk.f32.vlgmr.msra.gmra.mxu0 %vm324_vm11, %v1801_v46 }
 0xbb1   :  { %v1802_v13 = vpop.f32.mrf.mxu1 }
 0xbb2   :  { %v1803_v43 = vadd.f32 %v1802_v13, %v1786_v35 }
 0xbb4   :  { %2731 = vmatmul.msk.f32.gmra.mxu1 %vm324_vm11, %v1803_v43  ;;  %2733 = vmatmul.msk.f32.gmra.mxu0 %vm324_vm11, %v1803_v43 }
 0xc29   :  { %v1846_v6 = vpop.f32.mrf.mxu1  ;;  %v1869_v52 = vpop.f32.mrf.mxu0 }
 0xc2a   :  { %v3169_v34 = vpack.i.bf16 %v1869_v52, %v1846_v6 }
 0xc2c   :  { %3170 = vrot.lane.b32.xlu0 %v3169_v34, %s3503_s23 }
 0xc31   :  { %v1849_v51 = vpop.f32.mrf.mxu1  ;;  %v1872_v18 = vpop.f32.mrf.mxu0 }
 0xc32   :  { %v3164_v14 = vpack.i.bf16 %v1872_v18, %v1849_v51 }
 0xc34   :  { %3165 = vrot.lane.b32.xlu2 %v3164_v14, %s3503_s23 }
 0xc8e   :  { %v3166_v47 = vpop.permute.xlu2 %3165 }
 0xc8f   :  { %v3168_v0 = vunpack.i.h.bf16 %v3166_v47  ;;  %v4175_v5 = vunpack.i.l.bf16 %v3166_v47 }
 0xc91   :  { %v4187_v19 = vsel %vm848_vm1, %v4175_v5, %v3168_v0  ;;  %v1902_v37 = vsel %vm848_vm1, 0.0, %v4175_v5 }
 0xc92   :  { %v1904_v50 = vsel %vm853_vm2, %v4187_v19, 0.0 }
 0xc93   :  { %v3189_v38 = vpack.i.bf16 %v1904_v50, %v1902_v37 }
 0xc9e   :  { %v3171_v58 = vpop.permute.xlu0 %3170 }
 0xc9f   :  { %v3173_v49 = vunpack.i.h.bf16 %v3171_v58  ;;  %v4173_v17 = vunpack.i.l.bf16 %v3171_v58 }
 0xca1   :  { %v4179_v31 = vsel %vm848_vm1, %v4173_v17, %v3173_v49  ;;  %v1901_v10 = vsel %vm848_vm1, 0.0, %v4173_v17 }
 0xca2   :  { %v1903_v48 = vsel %vm853_vm2, %v4179_v31, 0.0 }
 0xca3   :  { %v3184_v56 = vpack.i.bf16 %v1903_v48, %v1901_v10 }
 0xca5   :  { %3185 = vrot.lane.b32.xlu1 %v3184_v56, %s3505_s25  ;;  %3180 = vrot.lane.b32.xlu0 %v3184_v56, %s3506_s26 }
 0xca6   :  { %3175 = vrot.lane.b32.xlu2 %v3184_v56, %s3504_s24 }
 0xcad   :  { %3210 = vrot.lane.b32.xlu0 %v3184_v56, %s3508_s28  ;;  %3190 = vrot.lane.b32.xlu1 %v3189_v38, %s3504_s24 }
 0xcae   :  { %3200 = vrot.lane.b32.xlu2 %v3189_v38, %s3505_s25 }
 0xcb5   :  { %3220 = vrot.lane.b32.xlu0 %v3189_v38, %s3496_s16  ;;  %3195 = vrot.lane.b32.xlu1 %v3189_v38, %s3506_s26 }
 0xcb6   :  { %3205 = vrot.lane.b32.xlu2 %v3184_v56, %s3496_s16 }
 0xcbd   :  { %3230 = vrot.lane.b32.xlu0 %v3189_v38, %s3500_s20  ;;  %3225 = vrot.lane.b32.xlu1 %v3189_v38, %s3508_s28 }
 0xcbe   :  { %3215 = vrot.lane.b32.xlu2 %v3184_v56, %s3500_s20 }
 0xcc5   :  { %3240 = vrot.lane.b32.xlu0 %v3184_v56, %s3507_s27  ;;  %3245 = vrot.lane.b32.xlu1 %v3189_v38, %s3498_s18 }
 0xcc6   :  { %3235 = vrot.lane.b32.xlu2 %v3184_v56, %s3498_s18 }
 0xccd   :  { %2056 = vperm.xlu0 %2936, %v1882_v45   ;;  %3250 = vrot.lane.b32.xlu1 %v3189_v38, %s3507_s27 }
 0xcce   :  { %2051 = vperm.xlu2 %2982, %v1881_v24  }
 0xd00   :  { %v3176_v44 = vpop.permute.xlu2 %3175 }
 0xd01   :  { %v3178_v35 = vunpack.i.h.bf16 %v3176_v44  ;;  %v3177_v13 = vunpack.i.l.bf16 %v3176_v44 }
 0xd08   :  { %v3201_v2 = vpop.permute.xlu2 %3200 }
 0xd09   :  { %v3203_v12 = vunpack.i.h.bf16 %v3201_v2  ;;  %v3202_v62 = vunpack.i.l.bf16 %v3201_v2 }
 0xd0b   :  { %v2048_v60 = vpack.c.bf16 %v3203_v12, %v3203_v12  ;;  %v2016_v28 = vsel %vm914_vm3, %v3202_v62, %v3203_v12 }
 0xd0c   :  { %v2047_v53 = vpack.c.bf16 %v2016_v28, %v2016_v28 }
 0xd0d   :  { %v2067_v11 = vsel %vm328_vm4, %v2048_v60, 0 }
 0xd0e   :  { %2113 = vmatpush.bf16.msrb.mxu0 %v2067_v11  ;;  %v2064_v63 = vsel %vm328_vm4, %v2047_v53, 0  ;;  %vm4462_vm4 = vcmask 1039360  }
 0xd0f   :  { %2085 = vmatpush.bf16.msra.mxu3 %v2064_v63  ;;  %vm4463_vm7 = vmmov %vm4462_vm4 }
 0xd10   :  { %v3206_v52 = vpop.permute.xlu2 %3205 }
 0xd11   :  { %v3208_v38 = vunpack.i.h.bf16 %v3206_v52  ;;  %v3207_v45 = vunpack.i.l.bf16 %v3206_v52 }
 0xd13   :  { %v1931_v53 = vsel %vm133_vm8, %v3207_v45, %v3208_v38 }
 0xd17   :  { %v3186_v3 = vpop.permute.xlu1 %3185  ;;  %v3181_v41 = vpop.permute.xlu0 %3180 }
 0xd18   :  { %v3188_v4 = vunpack.i.h.bf16 %v3186_v3  ;;  %v3187_v59 = vunpack.i.l.bf16 %v3186_v3  ;;  %v3183_v14 = vunpack.i.h.bf16 %v3181_v41  ;;  %v3182_v47 = vunpack.i.l.bf16 %v3181_v41 }
 0xd1a   :  { %v2046_v27 = vpack.c.bf16 %v3188_v4, %v3859_v40  ;;  %v2015_v33 = vsel %vm914_vm3, %v3187_v59, %v3188_v4  ;;  %v1959_v40 = vsel %vm883_vm6, %v3177_v13, %v3178_v35  ;;  %v2028_v4 = vpack.c.bf16 %v3208_v38, %v3896_v22 }
 0xd1b   :  { %v2045_v15 = vpack.c.bf16 %v2015_v33, %v3863_v7  ;;  %v2034_v7 = vpack.c.bf16 %v3178_v35, %v3890_v30  ;;  %v2033_v0 = vpack.c.bf16 %v1959_v40, %v3902_v21  ;;  %v3216_v30 = vpop.permute.xlu2 %3215 }
 0xd1c   :  { %2114 = vmatpush.bf16.msrb.mxu0 %v2046_v27  ;;  %v3218_v59 = vunpack.i.h.bf16 %v3216_v30  ;;  %v3217_v27 = vunpack.i.l.bf16 %v3216_v30 }
 0xd1d   :  { %2086 = vmatpush.bf16.msra.mxu3 %v2045_v15 }
 0xd1e   :  { %v1917_v22 = vsel %vm4463_vm7, %v3217_v27, %v3218_v59  ;;  %vm4472_vm7 = vmmov %vm4465_vm9 }
 0xd1f   :  { %v3211_v26 = vpop.permute.xlu0 %3210  ;;  %v3191_v46 = vpop.permute.xlu1 %3190 }
 0xd20   :  { %v3193_v43 = vunpack.i.h.bf16 %v3191_v46  ;;  %v3192_v6 = vunpack.i.l.bf16 %v3191_v46  ;;  %v3213_v21 = vunpack.i.h.bf16 %v3211_v26  ;;  %v3212_v2 = vunpack.i.l.bf16 %v3211_v26 }
 0xd21   :  { %v2027_v26 = vpack.c.bf16 %v1931_v53, %v3918_v39  ;;  %v2745_v39 = vpack.c.bf16 %v3927_v32, %v4187_v19 }
 0xd22   :  { %v2036_v34 = vpack.c.bf16 %v3894_v61, %v3193_v43  ;;  %v1960_v51 = vsel %vm883_vm6, %v3192_v6, %v3193_v43  ;;  %v2001_v15 = vsel %vm906_vm5, %v3212_v2, %v3213_v21 }
 0xd23   :  { %v2035_v18 = vpack.c.bf16 %v3906_v25, %v1960_v51  ;;  %v1945_v25 = vsel %vm875_vm12, %v3182_v47, %v3183_v14  ;;  %v3236_v35 = vpop.permute.xlu2 %3235 }
 0xd24   :  { %2097 = vmatpush.bf16.msra.mxu1 %v2036_v34  ;;  %v3238_v52 = vunpack.i.h.bf16 %v3236_v35  ;;  %v3237_v34 = vunpack.i.l.bf16 %v3236_v35 }
 0xd25   :  { %2069 = vmatpush.bf16.msrb.mxu2 %v2035_v18 }
 0xd26   :  { %v2040_v32 = vpack.c.bf16 %v3238_v52, %v3876_v16  ;;  %v1876_v16 = vld [vmem:[#allocation2 + $0x1d0] sm:$0xff] }
 0xd27   :  { %v3221_v58 = vpop.permute.xlu0 %3220  ;;  %v3196_v49 = vpop.permute.xlu1 %3195 }
 0xd28   :  { %v3223_v10 = vunpack.i.h.bf16 %v3221_v58  ;;  %v3222_v48 = vunpack.i.l.bf16 %v3221_v58  ;;  %v3198_v56 = vunpack.i.h.bf16 %v3196_v49  ;;  %v3197_v61 = vunpack.i.l.bf16 %v3196_v49  ;;  %2098 = vmatpush.bf16.msra.mxu1 %v2034_v7 }
 0xd29   :  { %2070 = vmatpush.bf16.msrb.mxu2 %v2033_v0  ;;  %v1987_v49 = vsel %vm4465_vm9, %v3237_v34, %v3238_v52  ;;  %v1875_v0 = vld [vmem:[#allocation2 + $0x1c8] sm:$0xff] }
 0xd2a   :  { %v2032_v37 = vpack.c.bf16 %v3198_v56, %v3183_v14  ;;  %v1946_v50 = vsel %vm875_vm12, %v3197_v61, %v3198_v56  ;;  %v1932_v44 = vsel %vm133_vm8, %v3222_v48, %v3223_v10  ;;  %v2030_v12 = vpack.c.bf16 %v3892_v1, %v3223_v10  ;;  %v1877_v10 = vld [vmem:[#allocation2 + $0x1e0] sm:$0xff] }
 0xd2b   :  { %v2031_v24 = vpack.c.bf16 %v1946_v50, %v1945_v25  ;;  %v2029_v28 = vpack.c.bf16 %v3912_v8, %v1932_v44  ;;  %v2736_v14 = vpack.c.bf16 %v3939_v29, %v4175_v5  ;;  %v2741_v5 = vpack.c.bf16 %v4173_v17, %v3838_v20  ;;  %v2052_v38 = vpop.permute.xlu2 %2051  ;;  %v58_v44 = vld [vmem:[#allocation4 + $0x9a0] ss:$8 sm:$0x3] }
 0xd2c   :  { %2099 = vmatpush.bf16.msra.mxu1 %v2032_v37  ;;  %v2039_v48 = vpack.c.bf16 %v1987_v49, %v3882_v54  ;;  %v1879_v56 = vpack.c.bf16 %v1877_v10, %v1875_v0  ;;  %v1880_v17 = vpack.c.bf16 %v1878_v42, %v1876_v16  ;;  %v4278_v53 = vperm.slane %v58_v44, 0 }
 0xd2d   :  { %2071 = vmatpush.bf16.msrb.mxu2 %v2031_v24 }
 0xd2f   :  { %v3231_v62 = vpop.permute.xlu0 %3230  ;;  %v3226_v60 = vpop.permute.xlu1 %3225 }
 0xd30   :  { %v3233_v11 = vunpack.i.h.bf16 %v3231_v62  ;;  %v3232_v63 = vunpack.i.l.bf16 %v3231_v62  ;;  %v3228_v3 = vunpack.i.h.bf16 %v3226_v60  ;;  %v3227_v41 = vunpack.i.l.bf16 %v3226_v60  ;;  %2100 = vmatpush.bf16.msra.mxu1 %v2030_v12 }
 0xd31   :  { %2072 = vmatpush.bf16.msrb.mxu2 %v2029_v28  ;;  %v4276_v60 = vperm.slane %v58_v44, 1 }
 0xd32   :  { %v2044_v33 = vpack.c.bf16 %v3228_v3, %v3213_v21  ;;  %v2002_v1 = vsel %vm906_vm5, %v3227_v41, %v3228_v3  ;;  %v1918_v46 = vsel %vm4462_vm4, %v3232_v63, %v3233_v11  ;;  %v2026_v13 = vpack.c.bf16 %v3233_v11, %v3218_v59 }
 0xd33   :  { %v2043_v8 = vpack.c.bf16 %v2002_v1, %v2001_v15  ;;  %v2025_v6 = vpack.c.bf16 %v1918_v46, %v1917_v22  ;;  %vm2059_vm4 = vcmask 719872  }
 0xd34   :  { %2101 = vmatpush.bf16.msra.mxu1 %v2028_v4  ;;  %2115 = vmatpush.bf16.msrb.mxu0 %v2044_v33 }
 0xd35   :  { %2073 = vmatpush.bf16.msrb.mxu2 %v2027_v26  ;;  %2087 = vmatpush.bf16.msra.mxu3 %v2043_v8 }
 0xd37   :  { %v3246_v43 = vpop.permute.xlu1 %3245  ;;  %v3241_v47 = vpop.permute.xlu0 %3240 }
 0xd38   :  { %v3248_v51 = vunpack.i.h.bf16 %v3246_v43  ;;  %v3247_v18 = vunpack.i.l.bf16 %v3246_v43  ;;  %2102 = vmatpush.bf16.msra.mxu1 %v2026_v13  ;;  %v3243_v57 = vunpack.i.h.bf16 %v3241_v47  ;;  %v3242_v29 = vunpack.i.l.bf16 %v3241_v47 }
 0xd39   :  { %2074 = vmatpush.bf16.msrb.mxu2 %v2025_v6 }
 0xd3a   :  { %v2042_v40 = vpack.c.bf16 %v3874_v9, %v3248_v51  ;;  %v1988_v7 = vsel %vm4464_vm10, %v3247_v18, %v3248_v51  ;;  %vm4473_vm10 = vmmov %vm4472_vm7  ;;  %v2606_v9 = vld [vmem:[#allocation4 + $0x860] sm:$0xff] }
 0xd3b   :  { %v2041_v58 = vpack.c.bf16 %v3886_v23, %v1988_v7  ;;  %v2748_v23 = vpack.c.bf16 %v4179_v31, %v3842_v55 }
 0xd3c   :  { %2746 = vmatpush.bf16.msk.msra.mxu1 %vm3931_vm15, %v2745_v39  ;;  %2116 = vmatpush.bf16.msrb.mxu0 %v2042_v40  ;;  %vm4263_vm15 = vmpackc.low %vm3923_vm14, %vm3923_vm14  ;;  %vm4470_vm14 = vcmask 949248  }
 0xd3d   :  { %2737 = vmatpush.bf16.msk.msrb.mxu2 %vm3944_vm0, %v2736_v14  ;;  %2088 = vmatpush.bf16.msra.mxu3 %v2041_v58  ;;  %v1973_v37 = vsel %vm4470_vm14, %v3242_v29, %v3243_v57  ;;  %vm4471_vm0 = vmmov %vm4470_vm14  ;;  %v2145_v29 = vld [vmem:[%s4447_s2 + $0xb0] sm:$0xff] }
 0xd3e   :  { %vm4474_vm9 = vmmov %vm4471_vm0 }
 0xd3f   :  { %v3251_v19 = vpop.permute.xlu1 %3250  ;;  %v2057_v11 = vpop.permute.xlu0 %2056  ;;  %vm4475_vm14 = vmmov %vm4471_vm0 }
 0xd40   :  { %v3253_v61 = vunpack.i.h.bf16 %v3251_v19  ;;  %v3252_v55 = vunpack.i.l.bf16 %v3251_v19  ;;  %2749 = vmatpush.bf16.msk.msra.mxu1 %vm4253_vm13, %v2748_v23  ;;  %2117 = vmatpush.bf16.msrb.mxu0 %v2040_v32 }
 0xd41   :  { %2742 = vmatpush.bf16.msk.msrb.mxu2 %vm4263_vm15, %v2741_v5  ;;  %2089 = vmatpush.bf16.msra.mxu3 %v2039_v48 }
 0xd42   :  { %v2038_v31 = vpack.c.bf16 %v3253_v61, %v3243_v57  ;;  %v1974_v20 = vsel %vm4471_vm0, %v3252_v55, %v3253_v61  ;;  %v2144_v57 = vld [vmem:[%s4447_s2 + $0xa8] sm:$0xff]  ;;  %vm4476_vm0 = vcmask 130048  }
 0xd43   :  { %2105 = vmatmul.bf16.vlgmr.msra.gmra.mxu1 %v1879_v56  ;;  %v2037_v54 = vpack.c.bf16 %v1974_v20, %v1973_v37 }
 0xd44   :  { %2077 = vmatmul.bf16.vlgmr.msrb.gmra.mxu2 %v1879_v56  ;;  %2118 = vmatpush.bf16.msrb.mxu0 %v2038_v31 }
 0xd45   :  { %2090 = vmatpush.bf16.msra.mxu3 %v2037_v54 }
 0xd47   :  { %2750 = vmatmul.msk.bf16.vlgmr.msrb.gmra.mxu0 %vm2059_vm4, %v1880_v17 }
 0xd48   :  { %2743 = vmatmul.msk.bf16.vlgmr.msra.gmra.mxu3 %vm2059_vm4, %v1880_v17  ;;  %vm4477_vm4 = vcmask 1039360  }
 0xdc0   :  { %v2106_v25 = vpop.f32.mrf.mxu1 }
 0xdc1   :  { %v2107_v45 = vadd.f32 %v2106_v25, %v2052_v38 }
 0xdc4   :  { %v2120_v50 = vpop.f32.mrf.mxu0 }
 0xdc5   :  { %v2121_v24 = vadd.f32 %v2120_v50, %v2107_v45 }
 0xdc7   :  { %v2078_v30 = vpop.f32.mrf.mxu2  ;;  %v2126_v62 = vmax.f32 %v2121_v24, 0.0 }
 0xdc8   :  { %v2079_v21 = vadd.f32 %v2078_v30, %v2052_v38  ;;  %v2108_v2 = vpop.f32.mrf.mxu1 }
 0xdc9   :  { %v2109_v3 = vadd.f32 %v2108_v2, %v2057_v11  ;;  %v2135_v59 = vmul.f32 %v4276_v60, %v2126_v62 }
 0xdcb   :  { %v2092_v12 = vpop.f32.mrf.mxu3 }
 0xdcc   :  { %v2093_v28 = vadd.f32 %v2092_v12, %v2079_v21  ;;  %v2122_v63 = vpop.f32.mrf.mxu0 }
 0xdcd   :  { %v2123_v33 = vadd.f32 %v2122_v63, %v2109_v3 }
 0xdce   :  { %v2125_v41 = vmax.f32 %v2093_v28, 0.0 }
 0xdcf   :  { %v2080_v4 = vpop.f32.mrf.mxu2  ;;  %v2128_v8 = vmax.f32 %v2123_v33, 0.0 }
 0xdd0   :  { %v2134_v27 = vmul.f32 %v4278_v53, %v2125_v41  ;;  %v2081_v15 = vadd.f32 %v2080_v4, %v2057_v11 }
 0xdd1   :  { %v2137_v13 = vmul.f32 %v4276_v60, %v2128_v8 }
 0xdd2   :  { %v3254_v1 = vpack.i.bf16 %v2135_v59, %v2134_v27 }
 0xdd3   :  { %v2094_v26 = vpop.f32.mrf.mxu3 }
 0xdd4   :  { %v2095_v46 = vadd.f32 %v2094_v26, %v2081_v15  ;;  %3255 = vrot.lane.b32.xlu1 %v3254_v1, %s3503_s23 }
 0xdd6   :  { %v2127_v35 = vmax.f32 %v2095_v46, 0.0 }
 0xdd8   :  { %v2136_v22 = vmul.f32 %v4278_v53, %v2127_v35 }
 0xdda   :  { %v3259_v43 = vpack.i.bf16 %v2137_v13, %v2136_v22 }
 0xddc   :  { %3260 = vrot.lane.b32.xlu2 %v3259_v43, %s3503_s23 }
 0xe36   :  { %v3261_v6 = vpop.permute.xlu2 %3260 }
 0xe37   :  { %v3263_v52 = vunpack.i.h.bf16 %v3261_v6  ;;  %v4286_v34 = vunpack.i.l.bf16 %v3261_v6 }
 0xe39   :  { %v4292_v40 = vsel %vm848_vm1, %v4286_v34, %v3263_v52  ;;  %v2165_v10 = vsel %vm848_vm1, 0.0, %v4286_v34 }
 0xe3a   :  { %v2167_v23 = vsel %vm853_vm2, %v4292_v40, 0.0 }
 0xe3b   :  { %v3289_v32 = vpack.i.bf16 %v2167_v23, %v2165_v10  ;;  %v2139_v23 = vld [vmem:[#allocation2 + $0x200] sm:$0xff] }
 0xe46   :  { %v3256_v51 = vpop.permute.xlu1 %3255 }
 0xe47   :  { %v3258_v18 = vunpack.i.h.bf16 %v3256_v51  ;;  %v4288_v39 = vunpack.i.l.bf16 %v3256_v51 }
 0xe49   :  { %v4296_v7 = vsel %vm848_vm1, %v4288_v39, %v3258_v18  ;;  %v2164_v14 = vsel %vm848_vm1, 0.0, %v4288_v39  ;;  %v2754_v47 = vpack.c.bf16 %v4286_v34, %v4288_v39 }
 0xe4a   :  { %v2166_v58 = vsel %vm853_vm2, %v4296_v7, 0.0  ;;  %v2758_v49 = vpack.c.bf16 %v4292_v40, %v4296_v7 }
 0xe4b   :  { %v3274_v0 = vpack.i.bf16 %v2166_v58, %v2164_v14 }
 0xe4d   :  { %3275 = vrot.lane.b32.xlu1 %v3274_v0, %s3507_s27  ;;  %3270 = vrot.lane.b32.xlu2 %v3274_v0, %s3498_s18 }
 0xe4e   :  { %3265 = vrot.lane.b32.xlu0 %v3274_v0, %s3508_s28 }
 0xe55   :  { %3290 = vrot.lane.b32.xlu1 %v3289_v32, %s3508_s28  ;;  %3285 = vrot.lane.b32.xlu2 %v3274_v0, %s3505_s25 }
 0xe56   :  { %3280 = vrot.lane.b32.xlu0 %v3274_v0, %s3504_s24 }
 0xe5d   :  { %3295 = vrot.lane.b32.xlu1 %v3274_v0, %s3506_s26  ;;  %3305 = vrot.lane.b32.xlu2 %v3289_v32, %s3507_s27 }
 0xe5e   :  { %3300 = vrot.lane.b32.xlu0 %v3289_v32, %s3498_s18 }
 0xe65   :  { %3310 = vrot.lane.b32.xlu1 %v3289_v32, %s3504_s24  ;;  %3325 = vrot.lane.b32.xlu2 %v3289_v32, %s3506_s26 }
 0xe66   :  { %3315 = vrot.lane.b32.xlu0 %v3289_v32, %s3505_s25 }
 0xe6d   :  { %3330 = vrot.lane.b32.xlu1 %v3289_v32, %s3496_s16  ;;  %3335 = vrot.lane.b32.xlu2 %v3274_v0, %s3500_s20 }
 0xe6e   :  { %3320 = vrot.lane.b32.xlu0 %v3274_v0, %s3496_s16 }
 0xe75   :  { %2304 = vperm.xlu1 %3028, %v2144_v57   ;;  %2309 = vperm.xlu2 %2982, %v2145_v29  }
 0xe76   :  { %3340 = vrot.lane.b32.xlu0 %v3289_v32, %s3500_s20  ;;  %v2141_v32 = vld [vmem:[#allocation2 + $0x218] sm:$0xff] }
 0xea7   :  { %v3271_v5 = vpop.permute.xlu2 %3270 }
 0xea8   :  { %v3273_v50 = vunpack.i.h.bf16 %v3271_v5  ;;  %v3272_v38 = vunpack.i.l.bf16 %v3271_v5 }
 0xeaa   :  { %v2250_v62 = vsel %vm4472_vm7, %v3272_v38, %v3273_v50  ;;  %vm4478_vm7 = vmmov %vm4477_vm4 }
 0xeaf   :  { %v3286_v56 = vpop.permute.xlu2 %3285 }
 0xeb0   :  { %v3288_v59 = vunpack.i.h.bf16 %v3286_v56  ;;  %v3287_v27 = vunpack.i.l.bf16 %v3286_v56 }
 0xeb2   :  { %v2278_v14 = vsel %vm914_vm3, %v3287_v27, %v3288_v59 }
 0xeb7   :  { %v3306_v45 = vpop.permute.xlu2 %3305 }
 0xeb8   :  { %v3308_v28 = vunpack.i.h.bf16 %v3306_v45  ;;  %v3307_v11 = vunpack.i.l.bf16 %v3306_v45 }
 0xeba   :  { %v2237_v8 = vsel %vm4475_vm14, %v3307_v11, %v3308_v28  ;;  %vm4487_vm14 = vmmov %vm4476_vm0 }
 0xebf   :  { %v3276_v19 = vpop.permute.xlu1 %3275  ;;  %v3326_v46 = vpop.permute.xlu2 %3325 }
 0xec0   :  { %v3266_v48 = vpop.permute.xlu0 %3265  ;;  %v3278_v44 = vunpack.i.h.bf16 %v3276_v19  ;;  %v3277_v21 = vunpack.i.l.bf16 %v3276_v19  ;;  %v3328_v57 = vunpack.i.h.bf16 %v3326_v46  ;;  %v3327_v29 = vunpack.i.l.bf16 %v3326_v46 }
 0xec1   :  { %v3268_v61 = vunpack.i.h.bf16 %v3266_v48  ;;  %v3267_v55 = vunpack.i.l.bf16 %v3266_v48 }
 0xec2   :  { %v2236_v4 = vsel %vm4474_vm9, %v3277_v21, %v3278_v44  ;;  %v2295_v1 = vpack.c.bf16 %v3308_v28, %v3278_v44 }
 0xec3   :  { %v2264_v20 = vsel %vm906_vm5, %v3267_v55, %v3268_v61  ;;  %v2294_v43 = vpack.c.bf16 %v2237_v8, %v2236_v4  ;;  %v2138_v4 = vld [vmem:[#allocation2 + $0x1f8] sm:$0xff] }
 0xec7   :  { %v3291_v16 = vpop.permute.xlu1 %3290 }
 0xec8   :  { %v3293_v42 = vunpack.i.h.bf16 %v3291_v16  ;;  %v3292_v31 = vunpack.i.l.bf16 %v3291_v16  ;;  %v3281_v37 = vpop.permute.xlu0 %3280 }
 0xec9   :  { %v3283_v33 = vunpack.i.h.bf16 %v3281_v37  ;;  %v3282_v15 = vunpack.i.l.bf16 %v3281_v37 }
 0xeca   :  { %v2265_v54 = vsel %vm906_vm5, %v3292_v31, %v3293_v42  ;;  %v2299_v17 = vpack.c.bf16 %v3293_v42, %v3268_v61  ;;  %v2143_v61 = vpack.c.bf16 %v2141_v32, %v2139_v23  ;;  %v2209_v31 = vsel %vm875_vm12, %v3327_v29, %v3328_v57 }
 0xecb   :  { %v2298_v25 = vpack.c.bf16 %v2265_v54, %v2264_v20  ;;  %v2222_v0 = vsel %vm883_vm6, %v3282_v15, %v3283_v33 }
 0xecc   :  { %2343 = vmatpush.bf16.msra.mxu0 %v2299_v17 }
 0xecd   :  { %2315 = vmatpush.bf16.msra.mxu2 %v2298_v25 }
 0xecf   :  { %v3296_v30 = vpop.permute.xlu1 %3295 }
 0xed0   :  { %v3301_v24 = vpop.permute.xlu0 %3300  ;;  %v3298_v6 = vunpack.i.h.bf16 %v3296_v30  ;;  %v3297_v52 = vunpack.i.l.bf16 %v3296_v30 }
 0xed1   :  { %v3303_v2 = vunpack.i.h.bf16 %v3301_v24  ;;  %v3302_v12 = vunpack.i.l.bf16 %v3301_v24  ;;  %v3336_v24 = vpop.permute.xlu2 %3335 }
 0xed2   :  { %v2208_v55 = vsel %vm875_vm12, %v3297_v52, %v3298_v6  ;;  %v2291_v16 = vpack.c.bf16 %v3328_v57, %v3298_v6  ;;  %v3338_v21 = vunpack.i.h.bf16 %v3336_v24 }
 0xed3   :  { %v2297_v63 = vpack.c.bf16 %v3303_v2, %v3273_v50  ;;  %v2251_v3 = vsel %vm4473_vm10, %v3302_v12, %v3303_v2  ;;  %v2290_v17 = vpack.c.bf16 %v2209_v31, %v2208_v55  ;;  %v3337_v2 = vunpack.i.l.bf16 %v3336_v24  ;;  %vm4479_vm10 = vmmov %vm4476_vm0 }
 0xed4   :  { %v2296_v41 = vpack.c.bf16 %v2251_v3, %v2250_v62 }
 0xed5   :  { %2344 = vmatpush.bf16.msra.mxu0 %v2297_v63  ;;  %v2180_v63 = vsel %vm4477_vm4, %v3337_v2, %v3338_v21 }
 0xed6   :  { %2316 = vmatpush.bf16.msra.mxu2 %v2296_v41 }
 0xed7   :  { %v3311_v26 = vpop.permute.xlu1 %3310 }
 0xed8   :  { %v3313_v35 = vunpack.i.h.bf16 %v3311_v26  ;;  %v3312_v13 = vunpack.i.l.bf16 %v3311_v26  ;;  %v3316_v22 = vpop.permute.xlu0 %3315 }
 0xed9   :  { %v3318_v51 = vunpack.i.h.bf16 %v3316_v22  ;;  %v3317_v18 = vunpack.i.l.bf16 %v3316_v22  ;;  %2345 = vmatpush.bf16.msra.mxu0 %v2295_v1 }
 0xeda   :  { %v2293_v58 = vpack.c.bf16 %v3313_v35, %v3283_v33  ;;  %2317 = vmatpush.bf16.msra.mxu2 %v2294_v43  ;;  %v2223_v10 = vsel %vm883_vm6, %v3312_v13, %v3313_v35  ;;  %v2310_v13 = vpop.permute.xlu2 %2309 }
 0xedb   :  { %v2279_v5 = vsel %vm914_vm3, %v3317_v18, %v3318_v51  ;;  %v2292_v19 = vpack.c.bf16 %v2223_v10, %v2222_v0  ;;  %v2301_v56 = vpack.c.bf16 %v3318_v51, %v3288_v59  ;;  %v2140_v59 = vld [vmem:[#allocation2 + $0x210] sm:$0xff] }
 0xedc   :  { %v2300_v48 = vpack.c.bf16 %v2279_v5, %v2278_v14  ;;  %v2142_v27 = vpack.c.bf16 %v2140_v59, %v2138_v4 }
 0xedd   :  { %2346 = vmatpush.bf16.msra.mxu0 %v2293_v58 }
 0xede   :  { %2318 = vmatpush.bf16.msra.mxu2 %v2292_v19  ;;  %2336 = vmatpush.bf16.msrb.mxu3 %v2300_v48 }
 0xedf   :  { %v3331_v42 = vpop.permute.xlu1 %3330 }
 0xee0   :  { %v3333_v37 = vunpack.i.h.bf16 %v3331_v42  ;;  %v3332_v20 = vunpack.i.l.bf16 %v3331_v42  ;;  %v3321_v54 = vpop.permute.xlu0 %3320 }
 0xee1   :  { %v3323_v25 = vunpack.i.h.bf16 %v3321_v54  ;;  %v3322_v50 = vunpack.i.l.bf16 %v3321_v54  ;;  %2756 = vmatmul.msk.bf16.vlgmr.msrb.gmra.mxu3 %vm4476_vm0, %v2143_v61  ;;  %2347 = vmatpush.bf16.msra.mxu0 %v2291_v16 }
 0xee2   :  { %2364 = vmatpush.bf16.msra.mxu3 %v2301_v56  ;;  %2319 = vmatpush.bf16.msra.mxu2 %v2290_v17  ;;  %v2195_v38 = vsel %vm133_vm8, %v3332_v20, %v3333_v37 }
 0xee3   :  { %v2289_v45 = vpack.c.bf16 %v3333_v37, %v3323_v25  ;;  %v2194_v30 = vsel %vm133_vm8, %v3322_v50, %v3323_v25 }
 0xee4   :  { %v2288_v44 = vpack.c.bf16 %v2195_v38, %v2194_v30 }
 0xee5   :  { %2348 = vmatpush.bf16.msra.mxu0 %v2289_v45  ;;  %v2383_v45 = vld [vmem:[%s4447_s2 + $0xb8] sm:$0xff] }
 0xee6   :  { %2320 = vmatpush.bf16.msra.mxu2 %v2288_v44 }
 0xee7   :  { %v2305_v26 = vpop.permute.xlu1 %2304 }
 0xee8   :  { %v3341_v12 = vpop.permute.xlu0 %3340 }
 0xee9   :  { %v3343_v62 = vunpack.i.h.bf16 %v3341_v12  ;;  %v3342_v28 = vunpack.i.l.bf16 %v3341_v12 }
 0xeeb   :  { %v2287_v11 = vpack.c.bf16 %v3343_v62, %v3338_v21  ;;  %v2181_v3 = vsel %vm4478_vm7, %v3342_v28, %v3343_v62 }
 0xeec   :  { %v2286_v41 = vpack.c.bf16 %v2181_v3, %v2180_v63 }
 0xeed   :  { %2349 = vmatpush.bf16.msra.mxu0 %v2287_v11 }
 0xeee   :  { %2321 = vmatpush.bf16.msra.mxu2 %v2286_v41 }
 0xef1   :  { %2759 = vmatpush.bf16.msk.msra.mxu0 %vm4253_vm13, %v2758_v49  ;;  %2760 = vmatmul.msk.bf16.vlgmr.msra.gmra.mxu3 %vm4479_vm10, %v2143_v61 }
 0xef2   :  { %2755 = vmatpush.bf16.msk.msra.mxu2 %vm4263_vm15, %v2754_v47 }
 0xef4   :  { %2351 = vmatmul.bf16.vlgmr.msra.gmra.mxu0 %v2142_v27 }
 0xef5   :  { %2323 = vmatmul.bf16.vlgmr.msra.gmra.mxu2 %v2142_v27 }
 0xf64   :  { %v2338_v33 = vpop.f32.mrf.mxu3 }
 0xf6c   :  { %v2340_v15 = vpop.f32.mrf.mxu3 }
 0xf71   :  { %v2352_v1 = vpop.f32.mrf.mxu0 }
 0xf72   :  { %v2353_v8 = vadd.f32 %v2352_v1, %v2305_v26 }
 0xf74   :  { %v2366_v46 = vpop.f32.mrf.mxu3 }
 0xf75   :  { %v2367_v40 = vadd.f32 %v2366_v46, %v2353_v8 }
 0xf77   :  { %v2372_v22 = vmax.f32 %v2367_v40, 0.0 }
 0xf78   :  { %v2324_v7 = vpop.f32.mrf.mxu2 }
 0xf79   :  { %v2325_v35 = vadd.f32 %v2324_v7, %v2305_v26  ;;  %v2354_v49 = vpop.f32.mrf.mxu0  ;;  %v2376_v47 = vmul.f32 %v2372_v22, %v4276_v60 }
 0xf7a   :  { %v2355_v6 = vadd.f32 %v2354_v49, %v2310_v13 }
 0xf7b   :  { %v2339_v43 = vadd.f32 %v2338_v33, %v2325_v35 }
 0xf7c   :  { %v2368_v34 = vpop.f32.mrf.mxu3 }
 0xf7d   :  { %v2371_v39 = vmax.f32 %v2339_v43, 0.0  ;;  %v2369_v51 = vadd.f32 %v2368_v34, %v2355_v6 }
 0xf7f   :  { %v2375_v52 = vmul.f32 %v2371_v39, %v4278_v53  ;;  %v2374_v0 = vmax.f32 %v2369_v51, 0.0 }
 0xf80   :  { %v2326_v18 = vpop.f32.mrf.mxu2 }
 0xf81   :  { %v2327_v14 = vadd.f32 %v2326_v18, %v2310_v13  ;;  %v3344_v58 = vpack.i.bf16 %v2376_v47, %v2375_v52  ;;  %v2378_v32 = vmul.f32 %v2374_v0, %v4276_v60 }
 0xf83   :  { %v2341_v10 = vadd.f32 %v2340_v15, %v2327_v14  ;;  %3345 = vrot.lane.b32.xlu0 %v3344_v58, %s3503_s23 }
 0xf85   :  { %v2373_v23 = vmax.f32 %v2341_v10, 0.0 }
 0xf87   :  { %v2377_v57 = vmul.f32 %v2373_v23, %v4278_v53 }
 0xf89   :  { %v3349_v29 = vpack.i.bf16 %v2378_v32, %v2377_v57  ;;  %v2615_v32 = vld [vmem:[#allocation4 + $0x8f0] sm:$0xff]  ;;  %v2614_v57 = vld [vmem:[#allocation4 + $0x8e0] sm:$0xff] }
 0xf8a   :  { %2628 = vmatpush.msrb.mxu0 %v2615_v32  ;;  %v2618_v32 = vld [vmem:[#allocation4 + $0x920] sm:$0xff] }
 0xf8b   :  { %3350 = vrot.lane.b32.xlu1 %v3349_v29, %s3503_s23 }
 0xf8c   :  { %2629 = vmatpush.msrb.mxu0 %v2614_v57  ;;  %v2601_v57 = vld [vmem:[#allocation4 + $0x810] sm:$0xff] }
 0xff5   :  { %v3346_v5 = vpop.permute.xlu0 %3345 }
 0xff6   :  { %v3348_v19 = vunpack.i.h.bf16 %v3346_v5  ;;  %v4366_v48 = vunpack.i.l.bf16 %v3346_v5 }
 0xff8   :  { %v4372_v16 = vsel %vm848_vm1, %v4366_v48, %v3348_v19  ;;  %v2402_v60 = vsel %vm848_vm1, 0.0, %v4366_v48 }
 0xff9   :  { %v2404_v17 = vsel %vm853_vm2, %v4372_v16, 0.0 }
 0xffa   :  { %v3379_v50 = vpack.i.bf16 %v2404_v17, %v2402_v60 }
 0xffd   :  { %v3351_v56 = vpop.permute.xlu1 %3350 }
 0xffe   :  { %v3353_v61 = vunpack.i.h.bf16 %v3351_v56  ;;  %v4368_v55 = vunpack.i.l.bf16 %v3351_v56 }
0x1000   :  { %v4378_v53 = vsel %vm848_vm1, %v4368_v55, %v3353_v61  ;;  %v2403_v42 = vsel %vm848_vm1, 0.0, %v4368_v55  ;;  %v2764_v31 = vpack.c.bf16 %v4368_v55, %v4366_v48  ;;  %vm4480_vm1 = vcmask 883712   ;;  %v2380_v61 = vld [vmem:[#allocation2 + $0x230] sm:$0xff]  ;;  %v2604_v48 = vld [vmem:[#allocation4 + $0x840] sm:$0xff] }
0x1001   :  { %v2768_v37 = vpack.c.bf16 %v4378_v53, %v4372_v16  ;;  %v3364_v20 = vpack.i.bf16 %v2403_v42, %v2402_v60  ;;  %v2405_v54 = vsel %vm853_vm2, %v4378_v53, 0.0  ;;  %vm4481_vm2 = vmmov %vm4480_vm1  ;;  %v2623_v16 = vld [vmem:[#allocation4 + $0x970] sm:$0xff]  ;;  %v2622_v53 = vld [vmem:[#allocation4 + $0x960] sm:$0xff] }
0x1002   :  { %v3374_v25 = vpack.i.bf16 %v2405_v54, %v2404_v17  ;;  %v3399_v38 = vpack.i.bf16 %v2405_v54, %v2403_v42  ;;  %v2613_v42 = vld [vmem:[#allocation4 + $0x8d0] sm:$0xff]  ;;  %v2620_v55 = vld [vmem:[#allocation4 + $0x940] sm:$0xff] }
0x1003   :  { %3365 = vrot.lane.b32.xlu2 %v3364_v20, %s3507_s27  ;;  %3360 = vrot.lane.b32.xlu0 %v3364_v20, %s3498_s18 }
0x1004   :  { %3355 = vrot.lane.b32.xlu1 %v3364_v20, %s3508_s28  ;;  %2630 = vmatpush.msrb.mxu0 %v2613_v42 }
0x100b   :  { %3375 = vrot.lane.b32.xlu0 %v3374_v25, %s3498_s18  ;;  %3370 = vrot.lane.b32.xlu2 %v3374_v25, %s3508_s28 }
0x100c   :  { %3395 = vrot.lane.b32.xlu1 %v3374_v25, %s3504_s24 }
0x1013   :  { %3380 = vrot.lane.b32.xlu0 %v3379_v50, %s3505_s25  ;;  %3390 = vrot.lane.b32.xlu2 %v3374_v25, %s3507_s27  ;;  %v2612_v50 = vld [vmem:[#allocation4 + $0x8c0] sm:$0xff] }
0x1014   :  { %3400 = vrot.lane.b32.xlu1 %v3399_v38, %s3505_s25  ;;  %2631 = vmatpush.msrb.mxu0 %v2612_v50 }
0x101b   :  { %3385 = vrot.lane.b32.xlu0 %v3364_v20, %s3504_s24  ;;  %3405 = vrot.lane.b32.xlu2 %v3374_v25, %s3506_s26 }
0x101c   :  { %3415 = vrot.lane.b32.xlu1 %v3374_v25, %s3496_s16 }
0x1023   :  { %3420 = vrot.lane.b32.xlu0 %v3374_v25, %s3500_s20  ;;  %3410 = vrot.lane.b32.xlu2 %v3364_v20, %s3506_s26  ;;  %v2382_v25 = vpack.c.bf16 %v2380_v61, %v2380_v61 }
0x1024   :  { %3425 = vrot.lane.b32.xlu1 %v3364_v20, %s3496_s16 }
0x102b   :  { %2542 = vperm.xlu0 %2936, %v2383_v45   ;;  %3430 = vrot.lane.b32.xlu2 %v3364_v20, %s3500_s20 }
0x105d   :  { %v3366_v30 = vpop.permute.xlu2 %3365 }
0x105e   :  { %v3368_v40 = vunpack.i.h.bf16 %v3366_v30  ;;  %v3367_v7 = vunpack.i.l.bf16 %v3366_v30  ;;  %v2611_v30 = vld [vmem:[#allocation4 + $0x8b0] sm:$0xff] }
0x105f   :  { %2632 = vmatpush.msrb.mxu0 %v2611_v30 }
0x1065   :  { %v3371_v24 = vpop.permute.xlu2 %3370 }
0x1066   :  { %v3373_v44 = vunpack.i.h.bf16 %v3371_v24  ;;  %v3372_v21 = vunpack.i.l.bf16 %v3371_v24 }
0x1068   :  { %v2537_v2 = vpack.c.bf16 %v3373_v44, %v3372_v21 }
0x106a   :  { %2574 = vmatpush.bf16.msrb.mxu3 %v2537_v2 }
0x106d   :  { %v3391_v28 = vpop.permute.xlu2 %3390 }
0x106e   :  { %v3393_v59 = vunpack.i.h.bf16 %v3391_v28  ;;  %v3392_v27 = vunpack.i.l.bf16 %v3391_v28 }
0x1070   :  { %v2533_v39 = vpack.c.bf16 %v3393_v59, %v3392_v27 }
0x1075   :  { %v3361_v12 = vpop.permute.xlu0 %3360  ;;  %v3406_v22 = vpop.permute.xlu2 %3405 }
0x1076   :  { %v3356_v62 = vpop.permute.xlu1 %3355  ;;  %v3363_v15 = vunpack.i.h.bf16 %v3361_v12  ;;  %v3362_v1 = vunpack.i.l.bf16 %v3361_v12  ;;  %v3408_v29 = vunpack.i.h.bf16 %v3406_v22  ;;  %v3407_v5 = vunpack.i.l.bf16 %v3406_v22 }
0x1077   :  { %v3358_v11 = vunpack.i.h.bf16 %v3356_v62  ;;  %v3357_v63 = vunpack.i.l.bf16 %v3356_v62 }
0x1078   :  { %v2529_v38 = vpack.c.bf16 %v3408_v29, %v3407_v5 }
0x1079   :  { %v2502_v3 = vsel %vm906_vm5, %v3357_v63, %v3372_v21  ;;  %v2503_v41 = vsel %vm906_vm5, %v3358_v11, %v3373_v44  ;;  %vm4482_vm5 = vmmov %vm4474_vm9  ;;  %v2610_v11 = vld [vmem:[#allocation4 + $0x8a0] sm:$0xff] }
0x107a   :  { %v2536_v4 = vpack.c.bf16 %v2503_v41, %v2502_v3  ;;  %v2474_v6 = vsel %vm4482_vm5, %v3367_v7, %v3392_v27  ;;  %vm4483_vm9 = vmmov %vm4482_vm5  ;;  %2633 = vmatpush.msrb.mxu0 %v2610_v11 }
0x107b   :  { %v2475_v34 = vsel %vm4483_vm9, %v3368_v40, %v3393_v59  ;;  %v2609_v59 = vld [vmem:[#allocation4 + $0x890] sm:$0xff] }
0x107c   :  { %2548 = vmatpush.bf16.msrb.mxu1 %v2536_v4  ;;  %v2532_v18 = vpack.c.bf16 %v2475_v34, %v2474_v6  ;;  %2634 = vmatpush.msrb.mxu0 %v2609_v59 }
0x107d   :  { %v3376_v33 = vpop.permute.xlu0 %3375  ;;  %v3411_v54 = vpop.permute.xlu2 %3410 }
0x107e   :  { %v4411_v26 = vpop.permute.xlu1 %3395  ;;  %v3378_v8 = vunpack.i.h.bf16 %v3376_v33  ;;  %v3377_v46 = vunpack.i.l.bf16 %v3376_v33  ;;  %v3413_v24 = vunpack.i.h.bf16 %v3411_v54  ;;  %v3412_v44 = vunpack.i.l.bf16 %v3411_v54 }
0x107f   :  { %v3398_v47 = vunpack.i.h.bf16 %v4411_v26  ;;  %v3397_v52 = vunpack.i.l.bf16 %v4411_v26 }
0x1080   :  { %v2535_v35 = vpack.c.bf16 %v3378_v8, %v3377_v46  ;;  %v2488_v49 = vsel %vm4480_vm1, %v3362_v1, %v3377_v46  ;;  %v2489_v13 = vsel %vm4481_vm2, %v3363_v15, %v3378_v8  ;;  %v2446_v27 = vsel %vm875_vm12, %v3412_v44, %v3407_v5  ;;  %v2600_v5 = vld [vmem:[#allocation4 + $0x800] sm:$0xff] }
0x1081   :  { %v2534_v43 = vpack.c.bf16 %v2489_v13, %v2488_v49  ;;  %v2531_v19 = vpack.c.bf16 %v3398_v47, %v3397_v52  ;;  %v2447_v33 = vsel %vm875_vm12, %v3413_v24, %v3408_v29  ;;  %vm4486_vm12 = vmmov %vm4477_vm4  ;;  %v2617_v29 = vld [vmem:[#allocation4 + $0x910] sm:$0xff] }
0x1082   :  { %2575 = vmatpush.bf16.msrb.mxu3 %v2535_v35  ;;  %v2528_v1 = vpack.c.bf16 %v2447_v33, %v2446_v27 }
0x1083   :  { %2549 = vmatpush.bf16.msrb.mxu1 %v2534_v43 }
0x1085   :  { %v3381_v51 = vpop.permute.xlu0 %3380  ;;  %v3431_v26 = vpop.permute.xlu2 %3430 }
0x1086   :  { %v3401_v14 = vpop.permute.xlu1 %3400  ;;  %v3383_v58 = vunpack.i.h.bf16 %v3381_v51  ;;  %v3382_v0 = vunpack.i.l.bf16 %v3381_v51  ;;  %2576 = vmatpush.bf16.msrb.mxu3 %v2533_v39  ;;  %v3433_v13 = vunpack.i.h.bf16 %v3431_v26  ;;  %v3432_v22 = vunpack.i.l.bf16 %v3431_v26  ;;  %v2379_v39 = vld [vmem:[#allocation2 + $0x228] sm:$0xff] }
0x1087   :  { %v3403_v10 = vunpack.i.h.bf16 %v3401_v14  ;;  %v3402_v23 = vunpack.i.l.bf16 %v3401_v14  ;;  %2550 = vmatpush.bf16.msrb.mxu1 %v2532_v18  ;;  %v2381_v51 = vpack.c.bf16 %v2379_v39, %v2379_v39  ;;  %v2608_v14 = vld [vmem:[#allocation4 + $0x880] sm:$0xff] }
0x1088   :  { %v2516_v56 = vsel %vm914_vm3, %v3382_v0, %v3383_v58  ;;  %v2607_v0 = vld [vmem:[#allocation4 + $0x870] sm:$0xff]  ;;  %2635 = vmatpush.msrb.mxu0 %v2608_v14 }
0x1089   :  { %v2517_v60 = vsel %vm914_vm3, %v3402_v23, %v3403_v10  ;;  %v2539_v17 = vpack.c.bf16 %v3403_v10, %v3383_v58  ;;  %vm4484_vm3 = vmmov %vm4476_vm0  ;;  %v2624_v58 = vld [vmem:[#allocation4 + $0x980] sm:$0xff]  ;;  %v2621_v10 = vld [vmem:[#allocation4 + $0x950] sm:$0xff] }
0x108a   :  { %v2538_v20 = vpack.c.bf16 %v2517_v60, %v2516_v56  ;;  %2577 = vmatpush.bf16.msrb.mxu3 %v2531_v19  ;;  %2636 = vmatpush.msrb.mxu0 %v2607_v0  ;;  %v2602_v23 = vld [vmem:[#allocation4 + $0x820] sm:$0xff] }
0x108b   :  { %v2616_v19 = vld [vmem:[#allocation4 + $0x900] sm:$0xff] }
0x108c   :  { %2568 = vmatpush.bf16.msrb.mxu2 %v2538_v20  ;;  %2637 = vmatpush.msrb.mxu0 %v2606_v9 }
0x108d   :  { %v3386_v45 = vpop.permute.xlu0 %3385 }
0x108e   :  { %v3416_v21 = vpop.permute.xlu1 %3415  ;;  %v3388_v2 = vunpack.i.h.bf16 %v3386_v45  ;;  %v3387_v12 = vunpack.i.l.bf16 %v3386_v45  ;;  %2578 = vmatpush.bf16.msrb.mxu3 %v2529_v38 }
0x108f   :  { %v3418_v62 = vunpack.i.h.bf16 %v3416_v21  ;;  %v3417_v28 = vunpack.i.l.bf16 %v3416_v21  ;;  %2766 = vmatmul.msk.bf16.vlgmr.msrb.gmra.mxu2 %vm4484_vm3, %v2382_v25 }
0x1090   :  { %2594 = vmatpush.bf16.msra.mxu2 %v2539_v17  ;;  %v2460_v63 = vsel %vm883_vm6, %v3387_v12, %v3397_v52  ;;  %v2461_v3 = vsel %vm883_vm6, %v3388_v2, %v3398_v47  ;;  %vm4485_vm6 = vmmov %vm4477_vm4 }
0x1091   :  { %v2527_v41 = vpack.c.bf16 %v3418_v62, %v3417_v28  ;;  %v2530_v4 = vpack.c.bf16 %v2461_v3, %v2460_v63 }
0x1093   :  { %2579 = vmatpush.bf16.msrb.mxu3 %v2527_v41  ;;  %2551 = vmatpush.bf16.msrb.mxu1 %v2530_v4 }
0x1095   :  { %v3421_v15 = vpop.permute.xlu0 %3420 }
0x1096   :  { %v3426_v8 = vpop.permute.xlu1 %3425  ;;  %v3423_v46 = vunpack.i.h.bf16 %v3421_v15  ;;  %v3422_v40 = vunpack.i.l.bf16 %v3421_v15 }
0x1097   :  { %v3428_v7 = vunpack.i.h.bf16 %v3426_v8  ;;  %v3427_v35 = vunpack.i.l.bf16 %v3426_v8  ;;  %2552 = vmatpush.bf16.msrb.mxu1 %v2528_v1 }
0x1098   :  { %v2525_v49 = vpack.c.bf16 %v3423_v46, %v3422_v40  ;;  %v2418_v47 = vsel %vm4485_vm6, %v3432_v22, %v3422_v40  ;;  %v2419_v52 = vsel %vm4486_vm12, %v3433_v13, %v3423_v46 }
0x1099   :  { %v2432_v43 = vsel %vm133_vm8, %v3427_v35, %v3417_v28  ;;  %v2433_v6 = vsel %vm133_vm8, %v3428_v7, %v3418_v62  ;;  %v2524_v18 = vpack.c.bf16 %v2419_v52, %v2418_v47 }
0x109a   :  { %2580 = vmatpush.bf16.msrb.mxu3 %v2525_v49  ;;  %v2526_v34 = vpack.c.bf16 %v2433_v6, %v2432_v43 }
0x109c   :  { %2553 = vmatpush.bf16.msrb.mxu1 %v2526_v34 }
0x109d   :  { %v2543_v42 = vpop.permute.xlu0 %2542 }
0x109e   :  { %2769 = vmatpush.bf16.msk.msrb.mxu3 %vm4253_vm13, %v2768_v37  ;;  %v2605_v37 = vld [vmem:[#allocation4 + $0x850] sm:$0xff] }
0x109f   :  { %2770 = vmatmul.msk.bf16.vlgmr.msra.gmra.mxu2 %vm4487_vm14, %v2382_v25  ;;  %2638 = vmatpush.msrb.mxu0 %v2605_v37 }
0x10a0   :  { %2554 = vmatpush.bf16.msrb.mxu1 %v2524_v18 }
0x10a1   :  { %2582 = vmatmul.bf16.vlgmr.msrb.gmra.mxu3 %v2381_v51  ;;  %2639 = vmatpush.msrb.mxu0 %v2604_v48 }
0x10a3   :  { %2640 = vmatpush.msrb.mxu0 %v2603_v36 }
0x10a4   :  { %2765 = vmatpush.bf16.msk.msrb.mxu1 %vm4263_vm15, %v2764_v31  ;;  %v2619_v31 = vld [vmem:[#allocation4 + $0x930] sm:$0xff] }
0x10a5   :  { %2641 = vmatpush.msrb.mxu0 %v2602_v23 }
0x10a7   :  { %2556 = vmatmul.bf16.vlgmr.msrb.gmra.mxu1 %v2381_v51  ;;  %2642 = vmatpush.msrb.mxu0 %v2601_v57 }
0x10a8   :  { %2655 = vmatpush.msra.mxu1 %v2624_v58 }
0x10a9   :  { %2643 = vmatpush.msrb.mxu0 %v2600_v5 }
0x10aa   :  { %2656 = vmatpush.msra.mxu1 %v2623_v16 }
0x10ac   :  { %2657 = vmatpush.msra.mxu1 %v2622_v53 }
0x10ae   :  { %2658 = vmatpush.msra.mxu1 %v2621_v10 }
0x10b0   :  { %2659 = vmatpush.msra.mxu1 %v2620_v55 }
0x10b2   :  { %2660 = vmatpush.msra.mxu1 %v2619_v31 }
0x10b4   :  { %2661 = vmatpush.msra.mxu1 %v2618_v32 }
0x10b6   :  { %2662 = vmatpush.msra.mxu1 %v2617_v29 }
0x10b8   :  { %2663 = vmatpush.msra.mxu1 %v2616_v19 }
0x1112   :  { %v2570_v56 = vpop.f32.mrf.mxu2 }
0x111a   :  { %v2572_v61 = vpop.f32.mrf.mxu2 }
0x1122   :  { %v2596_v60 = vpop.f32.mrf.mxu2 }
0x1124   :  { %v2557_v20 = vpop.f32.mrf.mxu1  ;;  %v2583_v54 = vpop.f32.mrf.mxu3 }
0x1125   :  { %v2558_v17 = vadd.f32 %v2557_v20, %v2543_v42  ;;  %v2584_v25 = vadd.f32 %v2583_v54, %v2543_v42 }
0x1127   :  { %v2571_v50 = vadd.f32 %v2570_v56, %v2558_v17  ;;  %v2597_v38 = vadd.f32 %v2596_v60, %v2584_v25 }
0x1129   :  { %2644 = vmatmul.f32.vlgmr.msrb.gmra.mxu0 %v2571_v50  ;;  %2771 = vmatmul.msk.f32.vlgmr.msra.gmra.mxu1 %vm324_vm11, %v2597_v38 }
0x112a   :  { %v2598_v45 = vpop.f32.mrf.mxu2 }
0x112c   :  { %v2559_v30 = vpop.f32.mrf.mxu1  ;;  %v2585_v24 = vpop.f32.mrf.mxu3 }
0x11a6   :  { %v2645_v44 = vpop.f32.mrf.mxu0  ;;  %v2665_v21 = vpop.f32.mrf.mxu1 }
0x11a7   :  { %v2666_v2 = vadd.f32 %v2665_v21, %v2645_v44 }
0x11a9   :  { %2668 = vst [vmem:[%s4449_s4] sm:$0xff] %v2666_v2 }
0x11aa   :  { %2673 = vsyncpa [#allocation3], 1 }
0x11ab   :  { %2674 = vsyncpa [#allocation5], 1 }

</bundles_post_ra>
